<compile_context>
chip_gen: v7x
topology: tpu7x:2x2x1
jax: 0.10.0
libtpu: 0.0.40
codegen_flags: <defaults>
</compile_context>

<pallas_src>
import jax
import jax.numpy as jnp
from jax.experimental import pallas as pl
from jax.experimental.pallas import tpu as pltpu


# bf16 MXU inputs with f32 accumulation (perf review: f32 matmuls run at a
# fraction of MXU peak on all generations).  Parity tolerance vs the f32
# reference is loosened accordingly in __main__.
USE_BF16_MXU = True


def _mxu(x):
    return x.astype(jnp.bfloat16) if USE_BF16_MXU else x


def _dot(a, b):
    return jnp.dot(_mxu(a), _mxu(b), preferred_element_type=jnp.float32)


def _repeat(a, k, axis):
    """Nearest-neighbour repeat along `axis` (reshape/broadcast only)."""
    s = a.shape
    a = a.reshape(s[:axis + 1] + (1,) + s[axis + 1:])
    a = jnp.broadcast_to(a, s[:axis + 1] + (k,) + s[axis + 1:])
    return a.reshape(s[:axis] + (s[axis] * k,) + s[axis + 1:])


_DEPTH_TILE_BUDGET = 2 * 1024 * 1024  # bytes of blocks touched per grid step


def _pick_depth_tile(depth, bytes_per_depth, budget=_DEPTH_TILE_BUDGET):
    td = int(max(1, min(depth, budget // max(int(bytes_per_depth), 1))))
    while depth % td:
        td -= 1
    return td


def _mosaic(*semantics):
    # Explicit scoped-VMEM limit: >= v5e default, == v6e/v7x default; the
    # depth-tile budget keeps double-buffered working sets well inside it.
    return pltpu.CompilerParams(dimension_semantics=semantics,
                                vmem_limit_bytes=32 * 1024 * 1024)


# ----------------------------- Pallas kernels ------------------------------

def _up_add_kernel(x_ref, x2_ref, w_ref, b_ref, o_ref):
    """ConvTranspose3d (kernel == stride) + (k,k,k) interleave + bias + `+ x2`.

    One small matmul per tap (full contraction over Cin); the interleave into
    the upsampled layout is done in-registers with repeats + iota-mask selects
    and the output block is written exactly once (lane-dense, unmasked store).
    """
    _, Td, H, W, Cin = x_ref.shape
    k3, _, Cup = w_ref.shape
    Dk, Hk, Wk = o_ref.shape[1], o_ref.shape[2], o_ref.shape[3]
    k = Hk // H

    xr = _mxu(x_ref[0].reshape(Td * H * W, Cin))
    wr = _mxu(w_ref[...])                                        # (k^3, Cin, Cup)

    shp = (Dk, Hk, Wk, 1)
    md = jax.lax.broadcasted_iota(jnp.int32, shp, 0) % k
    mh = jax.lax.broadcasted_iota(jnp.int32, shp, 1) % k
    mw = jax.lax.broadcasted_iota(jnp.int32, shp, 2) % k
    tap_id = (md * k + mh) * k + mw                              # tap feeding each pos

    acc = jnp.zeros((Dk, Hk, Wk, Cup), jnp.float32)
    for t in range(k3):
        y = jnp.dot(xr, wr[t], preferred_element_type=jnp.float32)
        y = y.reshape(Td, H, W, Cup)
        y = _repeat(_repeat(_repeat(y, k, 0), k, 1), k, 2)       # (Dk, Hk, Wk, Cup)
        acc = jnp.where(tap_id == t, y, acc)
    o_ref[0] = acc + b_ref[...].reshape(1, 1, 1, Cup) + x2_ref[0]


def _conv331_kernel(xm_ref, xc_ref, xp_ref, w_ref, b_ref, o_ref, st_ref):
    """(3,3,1) conv, zero-pad (1,1,0), bias, fused per-(n,d) IN1 partial stats.

    kd is folded in-kernel: 3 clamped depth fetches, boundary taps zeroed with
    a scalar mask.  Taps accumulate into a register value; single block store;
    stats come from the register result (no output re-read).
    """
    d = pl.program_id(1)
    nd = pl.num_programs(1)
    _, _, Ho, Wo, Cin = xc_ref.shape
    Cout = o_ref.shape[-1]
    rows = Ho * Wo

    m_prev = (d > 0).astype(jnp.float32)          # zero-padding at the D edges
    m_next = (d < nd - 1).astype(jnp.float32)
    zrow = jnp.zeros((1, Wo, Cin), jnp.float32)

    wr = _mxu(w_ref[...])                                        # (9, Cin, Cout)
    acc = jnp.zeros((rows, Cout), jnp.float32)
    t = 0
    for xd in (xm_ref[0, 0] * m_prev, xc_ref[0, 0], xp_ref[0, 0] * m_next):
        taps = (jnp.concatenate([zrow, xd[:-1]], axis=0),        # kh=0 -> x[h-1]
                xd,                                              # kh=1 -> x[h]
                jnp.concatenate([xd[1:], zrow], axis=0))         # kh=2 -> x[h+1]
        for tap in taps:
            acc = acc + jnp.dot(_mxu(tap.reshape(rows, Cin)), wr[t],
                                preferred_element_type=jnp.float32)
            t += 1
    y = acc + b_ref[...]
    o_ref[0, 0] = y.reshape(Ho, Wo, Cout)
    st_ref[0, 0, 0:1, :] = jnp.sum(y, axis=0, keepdims=True)
    st_ref[0, 0, 1:2, :] = jnp.sum(y * y, axis=0, keepdims=True)


def _conv113_kernel(x_ref, mu_ref, inv_ref, w_ref, b_ref, o_ref, st_ref, hp_ref):
    """IN1 normalize + ReLU (fused) -> (1,1,3) conv, zero-pad W, bias, IN2 stats."""
    _, Td, Ho, Wo, C = x_ref.shape
    Cout = o_ref.shape[-1]
    rows = Td * Ho * Wo

    mu = mu_ref[0].reshape(1, 1, 1, C)
    inv = inv_ref[0].reshape(1, 1, 1, C)
    # TODO(synk): Dropout3d is identity (inference semantics).
    h = jnp.maximum((x_ref[0] - mu) * inv, 0.0)                  # (Td, Ho, Wo, C)

    # Zero-padded copy of h along W in a small VMEM scratch: the two shifted
    # taps are then plain static-offset loads (no sublane interleave ops).
    zcol = jnp.zeros((Td, Ho, 1, C), jnp.float32)
    hp_ref[:, :, 0:1, :] = zcol
    hp_ref[:, :, Wo + 1:Wo + 2, :] = zcol
    hp_ref[:, :, 1:Wo + 1, :] = h

    wr = _mxu(w_ref[...])                                        # (3, C, Cout)
    acc = jnp.dot(_mxu(h.reshape(rows, C)), wr[1],
                  preferred_element_type=jnp.float32)
    acc = acc + jnp.dot(_mxu(hp_ref[:, :, 0:Wo, :].reshape(rows, C)), wr[0],
                        preferred_element_type=jnp.float32)      # x[w-1]
    acc = acc + jnp.dot(_mxu(hp_ref[:, :, 2:Wo + 2, :].reshape(rows, C)), wr[2],
                        preferred_element_type=jnp.float32)      # x[w+1]
    y = acc + b_ref[...]
    o_ref[0] = y.reshape(Td, Ho, Wo, Cout)
    st_ref[0, 0, 0:1, :] = jnp.sum(y, axis=0, keepdims=True)
    st_ref[0, 0, 1:2, :] = jnp.sum(y * y, axis=0, keepdims=True)


def _final_kernel(h_ref, mu_ref, inv_ref, x_ref, w_ref, b_ref, o_ref):
    """IN2 normalize + conv2 (1x1x1) + residual add + ReLU, all fused."""
    _, Td, Ho, Wo, Cup = x_ref.shape
    Cout = o_ref.shape[-1]
    mu = mu_ref[0].reshape(1, 1, 1, Cout)
    inv = inv_ref[0].reshape(1, 1, 1, Cout)
    hn = (h_ref[0] - mu) * inv
    g = _dot(x_ref[0].reshape(Td * Ho * Wo, Cup), w_ref[...]) + b_ref[...]
    o_ref[0] = jnp.maximum(hn + g.reshape(Td, Ho, Wo, Cout), 0.0)


# ------------------------------ kernel wrappers -----------------------------

def _up_add(x, x2, w, b, k):
    N, D, H, W, Cin = x.shape
    Cup = w.shape[-1]
    Hk, Wk = H * k, W * k
    per_d = (H * W * Cin + 2 * (k ** 3) * H * W * Cup) * 4
    td = _pick_depth_tile(D, per_d)
    return pl.pallas_call(
        _up_add_kernel,
        out_shape=jax.ShapeDtypeStruct((N, D * k, Hk, Wk, Cup), jnp.float32),
        grid=(N, D // td),
        in_specs=[pl.BlockSpec((1, td, H, W, Cin), lambda n, d: (n, d, 0, 0, 0)),
                  pl.BlockSpec((1, td * k, Hk, Wk, Cup), lambda n, d: (n, d, 0, 0, 0)),
                  pl.BlockSpec((k ** 3, Cin, Cup), lambda n, d: (0, 0, 0)),
                  pl.BlockSpec((1, Cup), lambda n, d: (0, 0))],
        out_specs=pl.BlockSpec((1, td * k, Hk, Wk, Cup), lambda n, d: (n, d, 0, 0, 0)),
        compiler_params=_mosaic("parallel", "parallel"),
    )(x, x2, w, b)


def _conv331(x, w, b):
    N, Do, Ho, Wo, Cin = x.shape
    Cout = w.shape[-1]

    # TODO(synk): the clamped neighbour fetches re-read each depth slab 3x; a
    # rolling-window (carried VMEM halo) variant would cut that to 1x at the
    # cost of a sequential depth axis.
    def xm(n, d): return (n, jnp.maximum(d - 1, 0), 0, 0, 0)
    def xc(n, d): return (n, d, 0, 0, 0)
    def xp(n, d): return (n, jnp.minimum(d + 1, Do - 1), 0, 0, 0)

    xspec = lambda im: pl.BlockSpec((1, 1, Ho, Wo, Cin), im)
    return pl.pallas_call(
        _conv331_kernel,
        out_shape=(jax.ShapeDtypeStruct((N, Do, Ho, Wo, Cout), jnp.float32),
                   jax.ShapeDtypeStruct((N, Do, 2, Cout), jnp.float32)),
        grid=(N, Do),
        in_specs=[xspec(xm), xspec(xc), xspec(xp),
                  pl.BlockSpec((9, Cin, Cout), lambda n, d: (0, 0, 0)),
                  pl.BlockSpec((1, Cout), lambda n, d: (0, 0))],
        out_specs=[pl.BlockSpec((1, 1, Ho, Wo, Cout), lambda n, d: (n, d, 0, 0, 0)),
                   pl.BlockSpec((1, 1, 2, Cout), lambda n, d: (n, d, 0, 0))],
        compiler_params=_mosaic("parallel", "parallel"),
    )(x, x, x, w, b)


def _conv113(x, mean, invstd, w, b):
    N, Do, Ho, Wo, C = x.shape
    Cout = w.shape[-1]
    td = _pick_depth_tile(Do, Ho * Wo * (C + Cout) * 4)
    nb = Do // td
    return pl.pallas_call(
        _conv113_kernel,
        out_shape=(jax.ShapeDtypeStruct((N, Do, Ho, Wo, Cout), jnp.float32),
                   jax.ShapeDtypeStruct((N, nb, 2, Cout), jnp.float32)),
        grid=(N, nb),
        in_specs=[pl.BlockSpec((1, td, Ho, Wo, C), lambda n, d: (n, d, 0, 0, 0)),
                  pl.BlockSpec((1, 1, C), lambda n, d: (n, 0, 0)),
                  pl.BlockSpec((1, 1, C), lambda n, d: (n, 0, 0)),
                  pl.BlockSpec((3, C, Cout), lambda n, d: (0, 0, 0)),
                  pl.BlockSpec((1, Cout), lambda n, d: (0, 0))],
        out_specs=[pl.BlockSpec((1, td, Ho, Wo, Cout), lambda n, d: (n, d, 0, 0, 0)),
                   pl.BlockSpec((1, 1, 2, Cout), lambda n, d: (n, d, 0, 0))],
        scratch_shapes=[pltpu.VMEM((td, Ho, Wo + 2, C), jnp.float32)],
        compiler_params=_mosaic("parallel", "parallel"),
    )(x, mean, invstd, w, b)


def _final(h, mean, invstd, xsum, w, b):
    N, Do, Ho, Wo, Cout = h.shape
    Cup = xsum.shape[-1]
    td = _pick_depth_tile(Do, Ho * Wo * (2 * Cout + Cup) * 4)
    return pl.pallas_call(
        _final_kernel,
        out_shape=jax.ShapeDtypeStruct((N, Do, Ho, Wo, Cout), jnp.float32),
        grid=(N, Do // td),
        in_specs=[pl.BlockSpec((1, td, Ho, Wo, Cout), lambda n, d: (n, d, 0, 0, 0)),
                  pl.BlockSpec((1, 1, Cout), lambda n, d: (n, 0, 0)),
                  pl.BlockSpec((1, 1, Cout), lambda n, d: (n, 0, 0)),
                  pl.BlockSpec((1, td, Ho, Wo, Cup), lambda n, d: (n, d, 0, 0, 0)),
                  pl.BlockSpec((Cup, Cout), lambda n, d: (0, 0)),
                  pl.BlockSpec((1, Cout), lambda n, d: (0, 0))],
        out_specs=pl.BlockSpec((1, td, Ho, Wo, Cout), lambda n, d: (n, d, 0, 0, 0)),
        compiler_params=_mosaic("parallel", "parallel"),
    )(h, mean, invstd, xsum, w, b)


def _finalize_stats(stats, L, eps):
    """(N, nblk, 2, C) partial [sum, sumsq] -> mean, 1/sqrt(var+eps) (biased)."""
    # TODO(synk): E[x^2]-E[x]^2 in f32 can lose precision for very large
    # volumes; a compensated / shifted accumulation would be more robust.
    s = jnp.sum(stats, axis=1)                      # (N, 2, C)
    mean = s[:, 0:1, :] / L
    var = s[:, 1:2, :] / L - mean * mean
    invstd = jax.lax.rsqrt(jnp.maximum(var, 0.0) + eps)
    return mean, invstd


# ------------------------------ forward pass -------------------------------

def up_sum_forward(params, x1, x2, kernel_size=2, stride=2, eps=1e-5):
    """Up_sum.forward (attention_block=None).  x1, x2 are NCDHW float32."""
    # TODO(synk): only kernel_size == stride (non-overlapping ConvTranspose) is
    # implemented; the overlapping case needs an accumulating scatter.
    assert kernel_size == stride
    k = kernel_size
    N, Cin, D, H, W = x1.shape
    up_w, up_b = params['up_w'], params['up_b']     # (Cin, Cup, k, k, k), (Cup,)
    Cup = up_w.shape[1]

    x1_cl = jnp.transpose(x1, (0, 2, 3, 4, 1))      # (N, D, H, W, Cin)
    x2_cl = jnp.transpose(x2, (0, 2, 3, 4, 1))      # (N, Do, Ho, Wo, Cup)
    Do, Ho, Wo = x2_cl.shape[1:4]

    w_up = jnp.transpose(up_w, (2, 3, 4, 0, 1)).reshape(k ** 3, Cin, Cup)
    b_up = up_b.reshape(1, Cup)

    # ---- fused: ConvTranspose3d + interleave + `x_1 + x2` -> xsum
    if (Do, Ho, Wo) == (D * k, H * k, W * k):
        xsum = _up_add(x1_cl, x2_cl, w_up, b_up, k)
    else:
        # TODO(synk): odd-sized skip connections take a rare extra XLA pad+add
        # pass; the common exact-2x case is fully fused.
        y = _up_add(x1_cl, jnp.zeros((N, D * k, H * k, W * k, Cup), jnp.float32),
                    w_up, b_up, k)
        y = jnp.pad(y, ((0, 0), (0, Do - D * k), (0, Ho - H * k),
                        (0, Wo - W * k), (0, 0)), mode='edge')
        xsum = y + x2_cl
    L = Do * Ho * Wo
    Cout = params['c1a_w'].shape[0]

    # ---- conv1[0]: (3,3,1) conv + bias, fused IN1 partial stats
    w1a = jnp.transpose(params['c1a_w'][:, :, :, :, 0], (2, 3, 1, 0)).reshape(9, Cup, Cout)
    conv1a, st1 = _conv331(xsum, w1a, params['c1a_b'].reshape(1, Cout))
    mean1, invstd1 = _finalize_stats(st1, L, eps)

    # ---- IN1 + ReLU (fused in-kernel) -> conv1[1]: (1,1,3) conv + IN2 stats
    w1b = jnp.transpose(params['c1b_w'][:, :, 0, 0, :], (2, 1, 0))     # (3, Cout, Cout)
    conv1b, st2 = _conv113(conv1a, mean1, invstd1, w1b, params['c1b_b'].reshape(1, Cout))
    mean2, invstd2 = _finalize_stats(st2, L, eps)

    # ---- IN2 normalize + conv2 (1x1x1) + add + ReLU, fused
    w2 = jnp.transpose(params['c2_w'][:, :, 0, 0, 0], (1, 0))          # (Cup, Cout)
    out = _final(conv1b, mean2, invstd2, xsum, w2, params['c2_b'].reshape(1, Cout))
    return jnp.transpose(out, (0, 4, 1, 2, 3))      # back to NCDHW


# ------------------------- pure-JAX reference (check) ----------------------

def _conv3d_ref(x, w, b, padding):
    out = jax.lax.conv_general_dilated(
        x, w, window_strides=(1, 1, 1), padding=padding,
        dimension_numbers=('NCDHW', 'OIDHW', 'NCDHW'),
        precision=jax.lax.Precision.HIGHEST)
    return out + b[None, :, None, None, None]


def _inorm_ref(x, eps=1e-5):
    mean = x.mean(axis=(2, 3, 4), keepdims=True)
    var = ((x - mean) ** 2).mean(axis=(2, 3, 4), keepdims=True)
    return (x - mean) / jnp.sqrt(var + eps)


def up_sum_ref(params, x1, x2, k=2, s=2):
    up_w, up_b = params['up_w'], params['up_b']
    w_conv = jnp.transpose(jnp.flip(up_w, axis=(2, 3, 4)), (1, 0, 2, 3, 4))
    y = jax.lax.conv_general_dilated(
        x1, w_conv, window_strides=(1, 1, 1),
        padding=[(k - 1, k - 1)] * 3, lhs_dilation=(s, s, s),
        dimension_numbers=('NCDHW', 'OIDHW', 'NCDHW'),
        precision=jax.lax.Precision.HIGHEST) + up_b[None, :, None, None, None]
    x = y + x2
    h = _conv3d_ref(x, params['c1a_w'], params['c1a_b'], [(1, 1), (1, 1), (0, 0)])
    h = jax.nn.relu(_inorm_ref(h))
    h = _conv3d_ref(h, params['c1b_w'], params['c1b_b'], [(0, 0), (0, 0), (1, 1)])
    h = _inorm_ref(h)
    g = _conv3d_ref(x, params['c2_w'], params['c2_b'], [(0, 0), (0, 0), (0, 0)])
    return jax.nn.relu(h + g)


# ------------------------------ params / main -------------------------------

def init_params(key, in_chns, out_chns, k):
    up_chns = in_chns // 2                         # halves=True
    ks = jax.random.split(key, 8)

    def u(kk, shape, fan_in):
        bound = 1.0 / jnp.sqrt(jnp.float32(fan_in))
        return jax.random.uniform(kk, shape, jnp.float32, -bound, bound)

    return {
        'up_w':  u(ks[0], (in_chns, up_chns, k, k, k), in_chns * k ** 3),
        'up_b':  u(ks[1], (up_chns,), in_chns * k ** 3),
        'c1a_w': u(ks[2], (out_chns, up_chns, 3, 3, 1), up_chns * 9),
        'c1a_b': u(ks[3], (out_chns,), up_chns * 9),
        'c1b_w': u(ks[4], (out_chns, out_chns, 1, 1, 3), out_chns * 3),
        'c1b_b': u(ks[5], (out_chns,), out_chns * 3),
        'c2_w':  u(ks[6], (out_chns, up_chns, 1, 1, 1), up_chns),
        'c2_b':  u(ks[7], (out_chns,), up_chns),
    }


if __name__ == "__main__":
    key = jax.random.PRNGKey(0)
    in_chns, out_chns, k, s = 8, 4, 2, 2
    N, D, H, W = 2, 4, 4, 4
    up_chns = in_chns // 2

    kp, kx1, kx2 = jax.random.split(key, 3)
    params = init_params(kp, in_chns, out_chns, k)
    x1 = jax.random.normal(kx1, (N, in_chns, D, H, W), jnp.float32)
    x2 = jax.random.normal(kx2, (N, up_chns, D * s, H * s, W * s), jnp.float32)

    out = jax.block_until_ready(up_sum_forward(params, x1, x2, kernel_size=k, stride=s))

    ref = up_sum_ref(params, x1, x2, k=k, s=s)
    assert out.shape == ref.shape == (N, out_chns, D * s, H * s, W * s)
    tol = 5e-2 if USE_BF16_MXU else 1e-3           # bf16 MXU inputs vs f32 reference
    assert jnp.allclose(out, ref, atol=tol, rtol=tol), \
        float(jnp.max(jnp.abs(out - ref)))
    print("KERNEL_OK")
</pallas_src>

<mosaic_0001>
module attributes {stable_mosaic.version = 11 : i64} {
  func.func @_up_add_kernel(%arg0: i32, %arg1: i32, %arg2: memref<1x4x4x4x8xf32, #tpu.memory_space<vmem>>, %arg3: memref<1x8x8x8x4xf32, #tpu.memory_space<vmem>>, %arg4: memref<8x8x4xf32, #tpu.memory_space<vmem>>, %arg5: memref<1x4xf32, #tpu.memory_space<vmem>>, %arg6: memref<1x8x8x8x4xf32, #tpu.memory_space<vmem>>) attributes {dimension_semantics = [#tpu.dimension_semantics<parallel>, #tpu.dimension_semantics<parallel>], iteration_bounds = array<i64: 2, 1>, scalar_prefetch = 0 : i64, scratch_operands = 0 : i64, tpu.core_type = #tpu.core_type<tc>, window_params = [{transform_indices = @transform_0, window_bounds = array<i64: 1, 4, 4, 4, 8>}, {transform_indices = @transform_1, window_bounds = array<i64: 1, 8, 8, 8, 4>}, {pipeline_mode = #tpu.pipeline_mode<synchronous>, transform_indices = @transform_2, window_bounds = array<i64: 8, 8, 4>}, {pipeline_mode = #tpu.pipeline_mode<synchronous>, transform_indices = @transform_3, window_bounds = array<i64: 1, 4>}, {transform_indices = @transform_4, window_bounds = array<i64: 1, 8, 8, 8, 4>}]} {
    %c0 = arith.constant 0 : index
    %c0_0 = arith.constant 0 : index
    %c0_1 = arith.constant 0 : index
    %c0_2 = arith.constant 0 : index
    %c0_3 = arith.constant 0 : index
    %0 = vector.load %arg2[%c0, %c0_0, %c0_1, %c0_2, %c0_3] : memref<1x4x4x4x8xf32, #tpu.memory_space<vmem>>, vector<1x4x4x4x8xf32>
    %1 = vector.shape_cast %0 : vector<1x4x4x4x8xf32> to vector<4x4x4x8xf32>
    %2 = vector.shape_cast %1 : vector<4x4x4x8xf32> to vector<64x8xf32>
    %3 = arith.truncf %2 : vector<64x8xf32> to vector<64x8xbf16>
    %c0_4 = arith.constant 0 : index
    %c0_5 = arith.constant 0 : index
    %c0_6 = arith.constant 0 : index
    %4 = vector.load %arg4[%c0_4, %c0_5, %c0_6] : memref<8x8x4xf32, #tpu.memory_space<vmem>>, vector<8x8x4xf32>
    %5 = arith.truncf %4 : vector<8x8x4xf32> to vector<8x8x4xbf16>
    %6 = tpu.iota {dimensions = array<i32: 0>} : vector<8x8x8x1xi32>
    %c2_i32 = arith.constant 2 : i32
    %c0_i32 = arith.constant 0 : i32
    %7 = arith.cmpi eq, %c2_i32, %c0_i32 : i32
    %c1_i32 = arith.constant 1 : i32
    %8 = arith.select %7, %c1_i32, %c2_i32 : i32
    %9 = vector.broadcast %8 : i32 to vector<8x8x8x1xi32>
    %10 = arith.remsi %6, %9 : vector<8x8x8x1xi32>
    %c0_i32_7 = arith.constant 0 : i32
    %11 = vector.broadcast %c0_i32_7 : i32 to vector<8x8x8x1xi32>
    %12 = arith.cmpi ne, %10, %11 : vector<8x8x8x1xi32>
    %c0_i32_8 = arith.constant 0 : i32
    %13 = vector.broadcast %c0_i32_8 : i32 to vector<8x8x8x1xi32>
    %14 = arith.cmpi slt, %10, %13 : vector<8x8x8x1xi32>
    %c0_i32_9 = arith.constant 0 : i32
    %15 = arith.cmpi slt, %8, %c0_i32_9 : i32
    %16 = vector.broadcast %15 : i1 to vector<8x8x8x1xi1>
    %17 = vector.broadcast %16 : vector<8x8x8x1xi1> to vector<8x8x8x1xi1>
    %18 = arith.xori %14, %17 : vector<8x8x8x1xi1>
    %19 = arith.andi %18, %12 : vector<8x8x8x1xi1>
    %20 = vector.broadcast %8 : i32 to vector<8x8x8x1xi32>
    %21 = arith.addi %10, %20 : vector<8x8x8x1xi32>
    %22 = arith.select %19, %21, %10 : vector<8x8x8x1xi1>, vector<8x8x8x1xi32>
    %23 = tpu.iota {dimensions = array<i32: 1>} : vector<8x8x8x1xi32>
    %c2_i32_10 = arith.constant 2 : i32
    %c0_i32_11 = arith.constant 0 : i32
    %24 = arith.cmpi eq, %c2_i32_10, %c0_i32_11 : i32
    %c1_i32_12 = arith.constant 1 : i32
    %25 = arith.select %24, %c1_i32_12, %c2_i32_10 : i32
    %26 = vector.broadcast %25 : i32 to vector<8x8x8x1xi32>
    %27 = arith.remsi %23, %26 : vector<8x8x8x1xi32>
    %c0_i32_13 = arith.constant 0 : i32
    %28 = vector.broadcast %c0_i32_13 : i32 to vector<8x8x8x1xi32>
    %29 = arith.cmpi ne, %27, %28 : vector<8x8x8x1xi32>
    %c0_i32_14 = arith.constant 0 : i32
    %30 = vector.broadcast %c0_i32_14 : i32 to vector<8x8x8x1xi32>
    %31 = arith.cmpi slt, %27, %30 : vector<8x8x8x1xi32>
    %c0_i32_15 = arith.constant 0 : i32
    %32 = arith.cmpi slt, %25, %c0_i32_15 : i32
    %33 = vector.broadcast %32 : i1 to vector<8x8x8x1xi1>
    %34 = vector.broadcast %33 : vector<8x8x8x1xi1> to vector<8x8x8x1xi1>
    %35 = arith.xori %31, %34 : vector<8x8x8x1xi1>
    %36 = arith.andi %35, %29 : vector<8x8x8x1xi1>
    %37 = vector.broadcast %25 : i32 to vector<8x8x8x1xi32>
    %38 = arith.addi %27, %37 : vector<8x8x8x1xi32>
    %39 = arith.select %36, %38, %27 : vector<8x8x8x1xi1>, vector<8x8x8x1xi32>
    %40 = tpu.iota {dimensions = array<i32: 2>} : vector<8x8x8x1xi32>
    %c2_i32_16 = arith.constant 2 : i32
    %c0_i32_17 = arith.constant 0 : i32
    %41 = arith.cmpi eq, %c2_i32_16, %c0_i32_17 : i32
    %c1_i32_18 = arith.constant 1 : i32
    %42 = arith.select %41, %c1_i32_18, %c2_i32_16 : i32
    %43 = vector.broadcast %42 : i32 to vector<8x8x8x1xi32>
    %44 = arith.remsi %40, %43 : vector<8x8x8x1xi32>
    %c0_i32_19 = arith.constant 0 : i32
    %45 = vector.broadcast %c0_i32_19 : i32 to vector<8x8x8x1xi32>
    %46 = arith.cmpi ne, %44, %45 : vector<8x8x8x1xi32>
    %c0_i32_20 = arith.constant 0 : i32
    %47 = vector.broadcast %c0_i32_20 : i32 to vector<8x8x8x1xi32>
    %48 = arith.cmpi slt, %44, %47 : vector<8x8x8x1xi32>
    %c0_i32_21 = arith.constant 0 : i32
    %49 = arith.cmpi slt, %42, %c0_i32_21 : i32
    %50 = vector.broadcast %49 : i1 to vector<8x8x8x1xi1>
    %51 = vector.broadcast %50 : vector<8x8x8x1xi1> to vector<8x8x8x1xi1>
    %52 = arith.xori %48, %51 : vector<8x8x8x1xi1>
    %53 = arith.andi %52, %46 : vector<8x8x8x1xi1>
    %54 = vector.broadcast %42 : i32 to vector<8x8x8x1xi32>
    %55 = arith.addi %44, %54 : vector<8x8x8x1xi32>
    %56 = arith.select %53, %55, %44 : vector<8x8x8x1xi1>, vector<8x8x8x1xi32>
    %c2_i32_22 = arith.constant 2 : i32
    %57 = vector.broadcast %c2_i32_22 : i32 to vector<8x8x8x1xi32>
    %58 = arith.muli %22, %57 : vector<8x8x8x1xi32>
    %59 = arith.addi %58, %39 : vector<8x8x8x1xi32>
    %c2_i32_23 = arith.constant 2 : i32
    %60 = vector.broadcast %c2_i32_23 : i32 to vector<8x8x8x1xi32>
    %61 = arith.muli %59, %60 : vector<8x8x8x1xi32>
    %62 = arith.addi %61, %56 : vector<8x8x8x1xi32>
    %cst = arith.constant 0.000000e+00 : f32
    %63 = vector.broadcast %cst : f32 to vector<8x8x8x4xf32>
    %64 = vector.extract_strided_slice %5 {offsets = [0, 0, 0], sizes = [1, 8, 4], strides = [1, 1, 1]} : vector<8x8x4xbf16> to vector<1x8x4xbf16>
    %65 = vector.shape_cast %64 : vector<1x8x4xbf16> to vector<8x4xbf16>
    %cst_24 = arith.constant dense<0.000000e+00> : vector<64x4xf32>
    %66 = tpu.matmul %3, %65, %cst_24 {dimension_numbers = #tpu.dot_dimension_numbers<[1], [0], [0], [1], [0, 0, 1, 1], [], []>} : vector<64x8xbf16>, vector<8x4xbf16>, vector<64x4xf32> -> vector<64x4xf32>
    %67 = vector.shape_cast %66 : vector<64x4xf32> to vector<4x4x4x4xf32>
    %68 = vector.shape_cast %67 : vector<4x4x4x4xf32> to vector<4x1x4x4x4xf32>
    %69 = vector.shape_cast %68 : vector<4x1x4x4x4xf32> to vector<4x1x4x4x4xf32>
    %70 = vector.broadcast %69 : vector<4x1x4x4x4xf32> to vector<4x2x4x4x4xf32>
    %71 = vector.shape_cast %70 : vector<4x2x4x4x4xf32> to vector<8x4x4x4xf32>
    %72 = vector.shape_cast %71 : vector<8x4x4x4xf32> to vector<8x4x1x4x4xf32>
    %73 = vector.shape_cast %72 : vector<8x4x1x4x4xf32> to vector<8x4x1x4x4xf32>
    %74 = vector.broadcast %73 : vector<8x4x1x4x4xf32> to vector<8x4x2x4x4xf32>
    %75 = vector.shape_cast %74 : vector<8x4x2x4x4xf32> to vector<8x8x4x4xf32>
    %76 = vector.shape_cast %75 : vector<8x8x4x4xf32> to vector<8x8x4x1x4xf32>
    %77 = vector.shape_cast %76 : vector<8x8x4x1x4xf32> to vector<8x8x4x1x4xf32>
    %78 = vector.broadcast %77 : vector<8x8x4x1x4xf32> to vector<8x8x4x2x4xf32>
    %79 = vector.shape_cast %78 : vector<8x8x4x2x4xf32> to vector<8x8x8x4xf32>
    %c0_i32_25 = arith.constant 0 : i32
    %80 = vector.broadcast %c0_i32_25 : i32 to vector<8x8x8x1xi32>
    %81 = arith.cmpi eq, %62, %80 : vector<8x8x8x1xi32>
    %82 = vector.shape_cast %81 : vector<8x8x8x1xi1> to vector<8x8x8x1xi1>
    %83 = vector.broadcast %82 : vector<8x8x8x1xi1> to vector<8x8x8x4xi1>
    %84 = arith.select %83, %79, %63 : vector<8x8x8x4xi1>, vector<8x8x8x4xf32>
    %85 = vector.extract_strided_slice %5 {offsets = [1, 0, 0], sizes = [1, 8, 4], strides = [1, 1, 1]} : vector<8x8x4xbf16> to vector<1x8x4xbf16>
    %86 = vector.shape_cast %85 : vector<1x8x4xbf16> to vector<8x4xbf16>
    %cst_26 = arith.constant dense<0.000000e+00> : vector<64x4xf32>
    %87 = tpu.matmul %3, %86, %cst_26 {dimension_numbers = #tpu.dot_dimension_numbers<[1], [0], [0], [1], [0, 0, 1, 1], [], []>} : vector<64x8xbf16>, vector<8x4xbf16>, vector<64x4xf32> -> vector<64x4xf32>
    %88 = vector.shape_cast %87 : vector<64x4xf32> to vector<4x4x4x4xf32>
    %89 = vector.shape_cast %88 : vector<4x4x4x4xf32> to vector<4x1x4x4x4xf32>
    %90 = vector.shape_cast %89 : vector<4x1x4x4x4xf32> to vector<4x1x4x4x4xf32>
    %91 = vector.broadcast %90 : vector<4x1x4x4x4xf32> to vector<4x2x4x4x4xf32>
    %92 = vector.shape_cast %91 : vector<4x2x4x4x4xf32> to vector<8x4x4x4xf32>
    %93 = vector.shape_cast %92 : vector<8x4x4x4xf32> to vector<8x4x1x4x4xf32>
    %94 = vector.shape_cast %93 : vector<8x4x1x4x4xf32> to vector<8x4x1x4x4xf32>
    %95 = vector.broadcast %94 : vector<8x4x1x4x4xf32> to vector<8x4x2x4x4xf32>
    %96 = vector.shape_cast %95 : vector<8x4x2x4x4xf32> to vector<8x8x4x4xf32>
    %97 = vector.shape_cast %96 : vector<8x8x4x4xf32> to vector<8x8x4x1x4xf32>
    %98 = vector.shape_cast %97 : vector<8x8x4x1x4xf32> to vector<8x8x4x1x4xf32>
    %99 = vector.broadcast %98 : vector<8x8x4x1x4xf32> to vector<8x8x4x2x4xf32>
    %100 = vector.shape_cast %99 : vector<8x8x4x2x4xf32> to vector<8x8x8x4xf32>
    %c1_i32_27 = arith.constant 1 : i32
    %101 = vector.broadcast %c1_i32_27 : i32 to vector<8x8x8x1xi32>
    %102 = arith.cmpi eq, %62, %101 : vector<8x8x8x1xi32>
    %103 = vector.shape_cast %102 : vector<8x8x8x1xi1> to vector<8x8x8x1xi1>
    %104 = vector.broadcast %103 : vector<8x8x8x1xi1> to vector<8x8x8x4xi1>
    %105 = arith.select %104, %100, %84 : vector<8x8x8x4xi1>, vector<8x8x8x4xf32>
    %106 = vector.extract_strided_slice %5 {offsets = [2, 0, 0], sizes = [1, 8, 4], strides = [1, 1, 1]} : vector<8x8x4xbf16> to vector<1x8x4xbf16>
    %107 = vector.shape_cast %106 : vector<1x8x4xbf16> to vector<8x4xbf16>
    %cst_28 = arith.constant dense<0.000000e+00> : vector<64x4xf32>
    %108 = tpu.matmul %3, %107, %cst_28 {dimension_numbers = #tpu.dot_dimension_numbers<[1], [0], [0], [1], [0, 0, 1, 1], [], []>} : vector<64x8xbf16>, vector<8x4xbf16>, vector<64x4xf32> -> vector<64x4xf32>
    %109 = vector.shape_cast %108 : vector<64x4xf32> to vector<4x4x4x4xf32>
    %110 = vector.shape_cast %109 : vector<4x4x4x4xf32> to vector<4x1x4x4x4xf32>
    %111 = vector.shape_cast %110 : vector<4x1x4x4x4xf32> to vector<4x1x4x4x4xf32>
    %112 = vector.broadcast %111 : vector<4x1x4x4x4xf32> to vector<4x2x4x4x4xf32>
    %113 = vector.shape_cast %112 : vector<4x2x4x4x4xf32> to vector<8x4x4x4xf32>
    %114 = vector.shape_cast %113 : vector<8x4x4x4xf32> to vector<8x4x1x4x4xf32>
    %115 = vector.shape_cast %114 : vector<8x4x1x4x4xf32> to vector<8x4x1x4x4xf32>
    %116 = vector.broadcast %115 : vector<8x4x1x4x4xf32> to vector<8x4x2x4x4xf32>
    %117 = vector.shape_cast %116 : vector<8x4x2x4x4xf32> to vector<8x8x4x4xf32>
    %118 = vector.shape_cast %117 : vector<8x8x4x4xf32> to vector<8x8x4x1x4xf32>
    %119 = vector.shape_cast %118 : vector<8x8x4x1x4xf32> to vector<8x8x4x1x4xf32>
    %120 = vector.broadcast %119 : vector<8x8x4x1x4xf32> to vector<8x8x4x2x4xf32>
    %121 = vector.shape_cast %120 : vector<8x8x4x2x4xf32> to vector<8x8x8x4xf32>
    %c2_i32_29 = arith.constant 2 : i32
    %122 = vector.broadcast %c2_i32_29 : i32 to vector<8x8x8x1xi32>
    %123 = arith.cmpi eq, %62, %122 : vector<8x8x8x1xi32>
    %124 = vector.shape_cast %123 : vector<8x8x8x1xi1> to vector<8x8x8x1xi1>
    %125 = vector.broadcast %124 : vector<8x8x8x1xi1> to vector<8x8x8x4xi1>
    %126 = arith.select %125, %121, %105 : vector<8x8x8x4xi1>, vector<8x8x8x4xf32>
    %127 = vector.extract_strided_slice %5 {offsets = [3, 0, 0], sizes = [1, 8, 4], strides = [1, 1, 1]} : vector<8x8x4xbf16> to vector<1x8x4xbf16>
    %128 = vector.shape_cast %127 : vector<1x8x4xbf16> to vector<8x4xbf16>
    %cst_30 = arith.constant dense<0.000000e+00> : vector<64x4xf32>
    %129 = tpu.matmul %3, %128, %cst_30 {dimension_numbers = #tpu.dot_dimension_numbers<[1], [0], [0], [1], [0, 0, 1, 1], [], []>} : vector<64x8xbf16>, vector<8x4xbf16>, vector<64x4xf32> -> vector<64x4xf32>
    %130 = vector.shape_cast %129 : vector<64x4xf32> to vector<4x4x4x4xf32>
    %131 = vector.shape_cast %130 : vector<4x4x4x4xf32> to vector<4x1x4x4x4xf32>
    %132 = vector.shape_cast %131 : vector<4x1x4x4x4xf32> to vector<4x1x4x4x4xf32>
    %133 = vector.broadcast %132 : vector<4x1x4x4x4xf32> to vector<4x2x4x4x4xf32>
    %134 = vector.shape_cast %133 : vector<4x2x4x4x4xf32> to vector<8x4x4x4xf32>
    %135 = vector.shape_cast %134 : vector<8x4x4x4xf32> to vector<8x4x1x4x4xf32>
    %136 = vector.shape_cast %135 : vector<8x4x1x4x4xf32> to vector<8x4x1x4x4xf32>
    %137 = vector.broadcast %136 : vector<8x4x1x4x4xf32> to vector<8x4x2x4x4xf32>
    %138 = vector.shape_cast %137 : vector<8x4x2x4x4xf32> to vector<8x8x4x4xf32>
    %139 = vector.shape_cast %138 : vector<8x8x4x4xf32> to vector<8x8x4x1x4xf32>
    %140 = vector.shape_cast %139 : vector<8x8x4x1x4xf32> to vector<8x8x4x1x4xf32>
    %141 = vector.broadcast %140 : vector<8x8x4x1x4xf32> to vector<8x8x4x2x4xf32>
    %142 = vector.shape_cast %141 : vector<8x8x4x2x4xf32> to vector<8x8x8x4xf32>
    %c3_i32 = arith.constant 3 : i32
    %143 = vector.broadcast %c3_i32 : i32 to vector<8x8x8x1xi32>
    %144 = arith.cmpi eq, %62, %143 : vector<8x8x8x1xi32>
    %145 = vector.shape_cast %144 : vector<8x8x8x1xi1> to vector<8x8x8x1xi1>
    %146 = vector.broadcast %145 : vector<8x8x8x1xi1> to vector<8x8x8x4xi1>
    %147 = arith.select %146, %142, %126 : vector<8x8x8x4xi1>, vector<8x8x8x4xf32>
    %148 = vector.extract_strided_slice %5 {offsets = [4, 0, 0], sizes = [1, 8, 4], strides = [1, 1, 1]} : vector<8x8x4xbf16> to vector<1x8x4xbf16>
    %149 = vector.shape_cast %148 : vector<1x8x4xbf16> to vector<8x4xbf16>
    %cst_31 = arith.constant dense<0.000000e+00> : vector<64x4xf32>
    %150 = tpu.matmul %3, %149, %cst_31 {dimension_numbers = #tpu.dot_dimension_numbers<[1], [0], [0], [1], [0, 0, 1, 1], [], []>} : vector<64x8xbf16>, vector<8x4xbf16>, vector<64x4xf32> -> vector<64x4xf32>
    %151 = vector.shape_cast %150 : vector<64x4xf32> to vector<4x4x4x4xf32>
    %152 = vector.shape_cast %151 : vector<4x4x4x4xf32> to vector<4x1x4x4x4xf32>
    %153 = vector.shape_cast %152 : vector<4x1x4x4x4xf32> to vector<4x1x4x4x4xf32>
    %154 = vector.broadcast %153 : vector<4x1x4x4x4xf32> to vector<4x2x4x4x4xf32>
    %155 = vector.shape_cast %154 : vector<4x2x4x4x4xf32> to vector<8x4x4x4xf32>
    %156 = vector.shape_cast %155 : vector<8x4x4x4xf32> to vector<8x4x1x4x4xf32>
    %157 = vector.shape_cast %156 : vector<8x4x1x4x4xf32> to vector<8x4x1x4x4xf32>
    %158 = vector.broadcast %157 : vector<8x4x1x4x4xf32> to vector<8x4x2x4x4xf32>
    %159 = vector.shape_cast %158 : vector<8x4x2x4x4xf32> to vector<8x8x4x4xf32>
    %160 = vector.shape_cast %159 : vector<8x8x4x4xf32> to vector<8x8x4x1x4xf32>
    %161 = vector.shape_cast %160 : vector<8x8x4x1x4xf32> to vector<8x8x4x1x4xf32>
    %162 = vector.broadcast %161 : vector<8x8x4x1x4xf32> to vector<8x8x4x2x4xf32>
    %163 = vector.shape_cast %162 : vector<8x8x4x2x4xf32> to vector<8x8x8x4xf32>
    %c4_i32 = arith.constant 4 : i32
    %164 = vector.broadcast %c4_i32 : i32 to vector<8x8x8x1xi32>
    %165 = arith.cmpi eq, %62, %164 : vector<8x8x8x1xi32>
    %166 = vector.shape_cast %165 : vector<8x8x8x1xi1> to vector<8x8x8x1xi1>
    %167 = vector.broadcast %166 : vector<8x8x8x1xi1> to vector<8x8x8x4xi1>
    %168 = arith.select %167, %163, %147 : vector<8x8x8x4xi1>, vector<8x8x8x4xf32>
    %169 = vector.extract_strided_slice %5 {offsets = [5, 0, 0], sizes = [1, 8, 4], strides = [1, 1, 1]} : vector<8x8x4xbf16> to vector<1x8x4xbf16>
    %170 = vector.shape_cast %169 : vector<1x8x4xbf16> to vector<8x4xbf16>
    %cst_32 = arith.constant dense<0.000000e+00> : vector<64x4xf32>
    %171 = tpu.matmul %3, %170, %cst_32 {dimension_numbers = #tpu.dot_dimension_numbers<[1], [0], [0], [1], [0, 0, 1, 1], [], []>} : vector<64x8xbf16>, vector<8x4xbf16>, vector<64x4xf32> -> vector<64x4xf32>
    %172 = vector.shape_cast %171 : vector<64x4xf32> to vector<4x4x4x4xf32>
    %173 = vector.shape_cast %172 : vector<4x4x4x4xf32> to vector<4x1x4x4x4xf32>
    %174 = vector.shape_cast %173 : vector<4x1x4x4x4xf32> to vector<4x1x4x4x4xf32>
    %175 = vector.broadcast %174 : vector<4x1x4x4x4xf32> to vector<4x2x4x4x4xf32>
    %176 = vector.shape_cast %175 : vector<4x2x4x4x4xf32> to vector<8x4x4x4xf32>
    %177 = vector.shape_cast %176 : vector<8x4x4x4xf32> to vector<8x4x1x4x4xf32>
    %178 = vector.shape_cast %177 : vector<8x4x1x4x4xf32> to vector<8x4x1x4x4xf32>
    %179 = vector.broadcast %178 : vector<8x4x1x4x4xf32> to vector<8x4x2x4x4xf32>
    %180 = vector.shape_cast %179 : vector<8x4x2x4x4xf32> to vector<8x8x4x4xf32>
    %181 = vector.shape_cast %180 : vector<8x8x4x4xf32> to vector<8x8x4x1x4xf32>
    %182 = vector.shape_cast %181 : vector<8x8x4x1x4xf32> to vector<8x8x4x1x4xf32>
    %183 = vector.broadcast %182 : vector<8x8x4x1x4xf32> to vector<8x8x4x2x4xf32>
    %184 = vector.shape_cast %183 : vector<8x8x4x2x4xf32> to vector<8x8x8x4xf32>
    %c5_i32 = arith.constant 5 : i32
    %185 = vector.broadcast %c5_i32 : i32 to vector<8x8x8x1xi32>
    %186 = arith.cmpi eq, %62, %185 : vector<8x8x8x1xi32>
    %187 = vector.shape_cast %186 : vector<8x8x8x1xi1> to vector<8x8x8x1xi1>
    %188 = vector.broadcast %187 : vector<8x8x8x1xi1> to vector<8x8x8x4xi1>
    %189 = arith.select %188, %184, %168 : vector<8x8x8x4xi1>, vector<8x8x8x4xf32>
    %190 = vector.extract_strided_slice %5 {offsets = [6, 0, 0], sizes = [1, 8, 4], strides = [1, 1, 1]} : vector<8x8x4xbf16> to vector<1x8x4xbf16>
    %191 = vector.shape_cast %190 : vector<1x8x4xbf16> to vector<8x4xbf16>
    %cst_33 = arith.constant dense<0.000000e+00> : vector<64x4xf32>
    %192 = tpu.matmul %3, %191, %cst_33 {dimension_numbers = #tpu.dot_dimension_numbers<[1], [0], [0], [1], [0, 0, 1, 1], [], []>} : vector<64x8xbf16>, vector<8x4xbf16>, vector<64x4xf32> -> vector<64x4xf32>
    %193 = vector.shape_cast %192 : vector<64x4xf32> to vector<4x4x4x4xf32>
    %194 = vector.shape_cast %193 : vector<4x4x4x4xf32> to vector<4x1x4x4x4xf32>
    %195 = vector.shape_cast %194 : vector<4x1x4x4x4xf32> to vector<4x1x4x4x4xf32>
    %196 = vector.broadcast %195 : vector<4x1x4x4x4xf32> to vector<4x2x4x4x4xf32>
    %197 = vector.shape_cast %196 : vector<4x2x4x4x4xf32> to vector<8x4x4x4xf32>
    %198 = vector.shape_cast %197 : vector<8x4x4x4xf32> to vector<8x4x1x4x4xf32>
    %199 = vector.shape_cast %198 : vector<8x4x1x4x4xf32> to vector<8x4x1x4x4xf32>
    %200 = vector.broadcast %199 : vector<8x4x1x4x4xf32> to vector<8x4x2x4x4xf32>
    %201 = vector.shape_cast %200 : vector<8x4x2x4x4xf32> to vector<8x8x4x4xf32>
    %202 = vector.shape_cast %201 : vector<8x8x4x4xf32> to vector<8x8x4x1x4xf32>
    %203 = vector.shape_cast %202 : vector<8x8x4x1x4xf32> to vector<8x8x4x1x4xf32>
    %204 = vector.broadcast %203 : vector<8x8x4x1x4xf32> to vector<8x8x4x2x4xf32>
    %205 = vector.shape_cast %204 : vector<8x8x4x2x4xf32> to vector<8x8x8x4xf32>
    %c6_i32 = arith.constant 6 : i32
    %206 = vector.broadcast %c6_i32 : i32 to vector<8x8x8x1xi32>
    %207 = arith.cmpi eq, %62, %206 : vector<8x8x8x1xi32>
    %208 = vector.shape_cast %207 : vector<8x8x8x1xi1> to vector<8x8x8x1xi1>
    %209 = vector.broadcast %208 : vector<8x8x8x1xi1> to vector<8x8x8x4xi1>
    %210 = arith.select %209, %205, %189 : vector<8x8x8x4xi1>, vector<8x8x8x4xf32>
    %211 = vector.extract_strided_slice %5 {offsets = [7, 0, 0], sizes = [1, 8, 4], strides = [1, 1, 1]} : vector<8x8x4xbf16> to vector<1x8x4xbf16>
    %212 = vector.shape_cast %211 : vector<1x8x4xbf16> to vector<8x4xbf16>
    %cst_34 = arith.constant dense<0.000000e+00> : vector<64x4xf32>
    %213 = tpu.matmul %3, %212, %cst_34 {dimension_numbers = #tpu.dot_dimension_numbers<[1], [0], [0], [1], [0, 0, 1, 1], [], []>} : vector<64x8xbf16>, vector<8x4xbf16>, vector<64x4xf32> -> vector<64x4xf32>
    %214 = vector.shape_cast %213 : vector<64x4xf32> to vector<4x4x4x4xf32>
    %215 = vector.shape_cast %214 : vector<4x4x4x4xf32> to vector<4x1x4x4x4xf32>
    %216 = vector.shape_cast %215 : vector<4x1x4x4x4xf32> to vector<4x1x4x4x4xf32>
    %217 = vector.broadcast %216 : vector<4x1x4x4x4xf32> to vector<4x2x4x4x4xf32>
    %218 = vector.shape_cast %217 : vector<4x2x4x4x4xf32> to vector<8x4x4x4xf32>
    %219 = vector.shape_cast %218 : vector<8x4x4x4xf32> to vector<8x4x1x4x4xf32>
    %220 = vector.shape_cast %219 : vector<8x4x1x4x4xf32> to vector<8x4x1x4x4xf32>
    %221 = vector.broadcast %220 : vector<8x4x1x4x4xf32> to vector<8x4x2x4x4xf32>
    %222 = vector.shape_cast %221 : vector<8x4x2x4x4xf32> to vector<8x8x4x4xf32>
    %223 = vector.shape_cast %222 : vector<8x8x4x4xf32> to vector<8x8x4x1x4xf32>
    %224 = vector.shape_cast %223 : vector<8x8x4x1x4xf32> to vector<8x8x4x1x4xf32>
    %225 = vector.broadcast %224 : vector<8x8x4x1x4xf32> to vector<8x8x4x2x4xf32>
    %226 = vector.shape_cast %225 : vector<8x8x4x2x4xf32> to vector<8x8x8x4xf32>
    %c7_i32 = arith.constant 7 : i32
    %227 = vector.broadcast %c7_i32 : i32 to vector<8x8x8x1xi32>
    %228 = arith.cmpi eq, %62, %227 : vector<8x8x8x1xi32>
    %229 = vector.shape_cast %228 : vector<8x8x8x1xi1> to vector<8x8x8x1xi1>
    %230 = vector.broadcast %229 : vector<8x8x8x1xi1> to vector<8x8x8x4xi1>
    %231 = arith.select %230, %226, %210 : vector<8x8x8x4xi1>, vector<8x8x8x4xf32>
    %c0_35 = arith.constant 0 : index
    %c0_36 = arith.constant 0 : index
    %232 = vector.load %arg5[%c0_35, %c0_36] : memref<1x4xf32, #tpu.memory_space<vmem>>, vector<1x4xf32>
    %233 = vector.shape_cast %232 : vector<1x4xf32> to vector<1x1x1x4xf32>
    %234 = vector.broadcast %233 : vector<1x1x1x4xf32> to vector<8x8x8x4xf32>
    %235 = arith.addf %231, %234 : vector<8x8x8x4xf32>
    %c0_37 = arith.constant 0 : index
    %c0_38 = arith.constant 0 : index
    %c0_39 = arith.constant 0 : index
    %c0_40 = arith.constant 0 : index
    %c0_41 = arith.constant 0 : index
    %236 = vector.load %arg3[%c0_37, %c0_38, %c0_39, %c0_40, %c0_41] : memref<1x8x8x8x4xf32, #tpu.memory_space<vmem>>, vector<1x8x8x8x4xf32>
    %237 = vector.shape_cast %236 : vector<1x8x8x8x4xf32> to vector<8x8x8x4xf32>
    %238 = arith.addf %235, %237 : vector<8x8x8x4xf32>
    %c0_42 = arith.constant 0 : index
    %c0_43 = arith.constant 0 : index
    %c0_44 = arith.constant 0 : index
    %c0_45 = arith.constant 0 : index
    %c0_46 = arith.constant 0 : index
    %239 = vector.load %arg6[%c0_42, %c0_43, %c0_44, %c0_45, %c0_46] : memref<1x8x8x8x4xf32, #tpu.memory_space<vmem>>, vector<1x8x8x8x4xf32>
    %240 = vector.shape_cast %239 : vector<1x8x8x8x4xf32> to vector<8x8x8x4xf32>
    %241 = vector.shape_cast %238 : vector<8x8x8x4xf32> to vector<1x8x8x8x4xf32>
    tpu.vector_store %arg6[%c0_42, %c0_43, %c0_44, %c0_45, %c0_46], %241 {strides = array<i32>} : memref<1x8x8x8x4xf32, #tpu.memory_space<vmem>>, vector<1x8x8x8x4xf32>,
    return
  }
  func.func @transform_0(%arg0: i32, %arg1: i32) -> (i32, i32, i32, i32, i32) {
    %c0_i32 = arith.constant 0 : i32
    %c0_i32_0 = arith.constant 0 : i32
    %c0_i32_1 = arith.constant 0 : i32
    %c0_i32_2 = arith.constant 0 : i32
    return %arg0, %arg1, %c0_i32, %c0_i32_0, %c0_i32_1 : i32, i32, i32, i32, i32
  }
  func.func @transform_1(%arg0: i32, %arg1: i32) -> (i32, i32, i32, i32, i32) {
    %c0_i32 = arith.constant 0 : i32
    %c0_i32_0 = arith.constant 0 : i32
    %c0_i32_1 = arith.constant 0 : i32
    %c0_i32_2 = arith.constant 0 : i32
    return %arg0, %arg1, %c0_i32, %c0_i32_0, %c0_i32_1 : i32, i32, i32, i32, i32
  }
  func.func @transform_2(%arg0: i32, %arg1: i32) -> (i32, i32, i32) {
    %c0_i32 = arith.constant 0 : i32
    %c0_i32_0 = arith.constant 0 : i32
    %c0_i32_1 = arith.constant 0 : i32
    %c0_i32_2 = arith.constant 0 : i32
    return %c0_i32, %c0_i32_0, %c0_i32_1 : i32, i32, i32
  }
  func.func @transform_3(%arg0: i32, %arg1: i32) -> (i32, i32) {
    %c0_i32 = arith.constant 0 : i32
    %c0_i32_0 = arith.constant 0 : i32
    %c0_i32_1 = arith.constant 0 : i32
    return %c0_i32, %c0_i32_0 : i32, i32
  }
  func.func @transform_4(%arg0: i32, %arg1: i32) -> (i32, i32, i32, i32, i32) {
    %c0_i32 = arith.constant 0 : i32
    %c0_i32_0 = arith.constant 0 : i32
    %c0_i32_1 = arith.constant 0 : i32
    %c0_i32_2 = arith.constant 0 : i32
    return %arg0, %arg1, %c0_i32, %c0_i32_0, %c0_i32_1 : i32, i32, i32, i32, i32
  }
}

</mosaic_0001>

<bundles_post_ra>
// kernel: tpu_custom_call.1
= control target key start
LH: loop header
LB: loop body
LE: loop exit
PB: predicated region body
PF: predicated region fallthrough
CT: control target
= control target key end

     0   :  { %s9732_s15 = smov 0   ;;  %s9734_s16 = smov 0   ;;  %s11897_s0 = inlined_call_operand.vmem [shape: f32[2,4,4,4,8], index: 0, kind: input, shape index: {}]   ;;  %s11898_s1 = inlined_call_operand.vmem [shape: f32[2,8,8,8,4], index: 1, kind: input, shape index: {}]   ;;  %s11899_s2 = inlined_call_operand.vmem [shape: f32[8,8,4], index: 2, kind: input, shape index: {}]   ;;  %s11900_s3 = inlined_call_operand.vmem [shape: f32[1,4], index: 3, kind: input, shape index: {}]   ;;  %s11901_s4 = inlined_call_operand.vmem [shape: f32[2,8,8,8,4], index: 4, kind: output, shape index: {}]  }
   0x1   :  { %s9736_s17 = smov 0  }
   0x2 LB: > { %s26_s18 = sadd.s32 1, %s9699_s16  ;;  %p9470_p0 = scmp.ge.s32.totalorder %s9703_s17, 1  ;;  %s9703_s17 = sphi %s9736_s17, %s14_s17   ;;  %s9699_s16 = sphi %s9734_s16, %s11903_s16   ;;  %s9695_s15 = sphi %s9732_s15, %s11902_s15  }
   0x3   : > { %p28_p1 = scmp.ge.s32.totalorder %s26_s18, 2  ;;  %p202_p2 = scmp.lt.s32.totalorder %s9703_s17, 3 }
   0x5   : > { %s11905_s18 = smov (%p28_p1, %s26_s18), 0  ;;  %p203_p3 = pnand %p9470_p0, %p202_p2 }
   0x6   : > { %v334_v0 = vld [vmem:[%s11899_s2] sm:$0xff] (!%p203_p3)  ;;  %vm380_vm0 = vcmask (!%p203_p3), 1043456   ;;  %v335_v1 = vld [vmem:[%s11899_s2 + $0x8] sm:$0xff] (!%p203_p3)  ;;  %p249_p4 = scmp.lt.s32.totalorder (!%p203_p3), %s9695_s15, 1  ;;  %v336_v2 = vld [vmem:[%s11899_s2 + $0x10] sm:$0xff] (!%p203_p3)  ;;  %vm367_vm1 = vcmask (!%p203_p3), 64512   ;;  %v350_v36 = vlaneseq (!%p203_p3) }
   0x7   : > { %206 = sbr.rel (%p203_p3) target bundleno = 807 (0x327), region = 36  ;;  %v342_v3 = vpack.c.bf16 (!%p203_p3), %v334_v0, %v334_v0  ;;  %v343_v4 = vpack.c.bf16 (!%p203_p3), %v335_v1, %v335_v1  ;;  %v344_v5 = vpack.c.bf16 (!%p203_p3), %v336_v2, %v336_v2  ;;  %v337_v6 = vld [vmem:[%s11899_s2 + $0x18] sm:$0xff] (!%p203_p3)  ;;  %v338_v12 = vld [vmem:[%s11899_s2 + $0x20] sm:$0xff] (!%p203_p3)  ;;  %v339_v13 = vld [vmem:[%s11899_s2 + $0x28] sm:$0xff] (!%p203_p3)  ;;  %v9705_v37 = vmov (!%p203_p3), 1966171168  }
   0x8   : > { %v345_v7 = vpack.c.bf16 (!%p203_p3), %v337_v6, %v337_v6  ;;  %v346_v22 = vpack.c.bf16 (!%p203_p3), %v338_v12, %v338_v12  ;;  %v347_v23 = vpack.c.bf16 (!%p203_p3), %v339_v13, %v339_v13  ;;  %v340_v28 = vld [vmem:[%s11899_s2 + $0x30] sm:$0xff] (!%p203_p3)  ;;  %v341_v29 = vld [vmem:[%s11899_s2 + $0x38] sm:$0xff] (!%p203_p3)  ;;  %v466_v38 = vunpack.c.l.s4 (!%p203_p3), %v9705_v37 }
   0x9   : > { %9635 = vmatprep.subr.msk.bf16.mxu0 (!%p203_p3), %vm380_vm0, %v342_v3  ;;  %v382_v8 = vsel (!%p203_p3), %vm380_vm0, %v342_v3, 0  ;;  %9636 = vmatprep.subr.msk.bf16.mxu1 (!%p203_p3), %vm380_vm0, %v343_v4  ;;  %v1470_v9 = vsel (!%p203_p3), %vm380_vm0, %v343_v4, 0  ;;  %v2558_v18 = vsel (!%p203_p3), %vm380_vm0, %v344_v5, 0  ;;  %v348_v32 = vpack.c.bf16 (!%p203_p3), %v340_v28, %v340_v28 }
   0xa   : > { %9556 = vmatpush3.bf16.msra.mxu0 (!%p203_p3), %v382_v8  ;;  %9566 = vmatpush3.bf16.msra.mxu1 (!%p203_p3), %v1470_v9  ;;  %v3646_v19 = vsel (!%p203_p3), %vm380_vm0, %v345_v7, 0  ;;  %v4734_v30 = vsel (!%p203_p3), %vm380_vm0, %v346_v22, 0  ;;  %v5822_v31 = vsel (!%p203_p3), %vm380_vm0, %v347_v23, 0  ;;  %v349_v33 = vpack.c.bf16 (!%p203_p3), %v341_v29, %v341_v29 }
   0xb   : > { %9637 = vmatprep.subr.msk.bf16.mxu0 (!%p203_p3), %vm380_vm0, %v344_v5  ;;  %9638 = vmatprep.subr.msk.bf16.mxu1 (!%p203_p3), %vm380_vm0, %v345_v7  ;;  %v6910_v34 = vsel (!%p203_p3), %vm380_vm0, %v348_v32, 0  ;;  %v9706_v39 = vmov (!%p203_p3), 1983009808   ;;  %v351_v41 = vshrl.u32 (!%p203_p3), %v350_v36, 7  ;;  %v467_v42 = vunpack.c.0.s8 (!%p203_p3), %v466_v38 }
   0xc   : > { %v7998_v35 = vsel (!%p203_p3), %vm380_vm0, %v349_v33, 0  ;;  %v1120_v40 = vunpack.c.l.s4 (!%p203_p3), %v9706_v39  ;;  %vm9284_vm4 = vcmask (!%p203_p3), 31744  }
   0xd   : > { %v9828_v44 = vsub.s32 (!%p203_p3), %v467_v42, %v351_v41  ;;  %v9830_v45 = vand.u32 (!%p203_p3), 1, %v351_v41  ;;  %v9832_v47 = vsub.s32 (!%p203_p3), 0, %v351_v41 }
   0xe   : > { %s11907_s15 = smov (!%p249_p4, %s9695_s15), 1  ;;  %v1121_v43 = vunpack.c.0.s8 %v1120_v40 }
   0xf   : > { %s9512_s27 = sshll.u32 %s11907_s15, 6  ;;  %vm1105_vm2 = vcmp.eq.s32.totalorder %v9830_v45, 0  ;;  %vm2193_vm3 = vcmp.eq.s32.totalorder %v9830_v45, 1  ;;  %s9513_s13 = sshll.u32 %s11907_s15, 9 }
  0x10   : > { %s257_s30 = scalar_lea.vmem %s11897_s0, %s9512_s27  ;;  %v9834_v48 = vsub.s32 %v1121_v43, %v351_v41  ;;  %s9933_s20 = scalar_lea.vmem %s11898_s1, %s9513_s13 }
  0x11   : > { %v9669_v10 = vld [vmem:[%s257_s30] sm:$0xff]   ;;  %v9670_v11 = vld [vmem:[%s257_s30 + $0x8] sm:$0xff]   ;;  %v9671_v15 = vld [vmem:[%s257_s30 + $0x10] sm:$0xff]   ;;  %s9973_s25 = scalar_lea.vmem %s11901_s4, %s9513_s13 }
  0x12   : > { %v330_v14 = vpack.c.bf16 %v9670_v11, %v9669_v10  ;;  %v9672_v16 = vld [vmem:[%s257_s30 + $0x18] sm:$0xff]   ;;  %v9673_v20 = vld [vmem:[%s257_s30 + $0x20] sm:$0xff]   ;;  %v9674_v21 = vld [vmem:[%s257_s30 + $0x28] sm:$0xff]  }
  0x13   : > { %v331_v17 = vpack.c.bf16 %v9672_v16, %v9671_v15  ;;  %v332_v24 = vpack.c.bf16 %v9674_v21, %v9673_v20  ;;  %v9675_v25 = vld [vmem:[%s257_s30 + $0x30] sm:$0xff]   ;;  %v9676_v26 = vld [vmem:[%s257_s30 + $0x38] sm:$0xff]  }
  0x14   : > { %9557 = vmatprep.mubr.msk.bf16.mxu0 %vm367_vm1, %v330_v14  ;;  %9567 = vmatprep.mubr.msk.bf16.mxu1 %vm367_vm1, %v330_v14  ;;  %v333_v27 = vpack.c.bf16 %v9676_v26, %v9675_v25 }
  0x15   : > { %9558 = vmatmul.mubr.msk.bf16.vlgmr.msra.gmra.mrb[0].mxu0 %vm367_vm1, %v331_v17  ;;  %9568 = vmatmul.mubr.msk.bf16.vlgmr.msra.gmra.mrb[0].mxu1 %vm367_vm1, %v331_v17 }
  0x16   : > { %9576 = vmatpush3.bf16.msra.mxu0 %v2558_v18  ;;  %9586 = vmatpush3.bf16.msra.mxu1 %v3646_v19 }
  0x17   : > { %9561 = vmatprep.mubr.msk.bf16.mxu0 %vm367_vm1, %v332_v24  ;;  %9571 = vmatprep.mubr.msk.bf16.mxu1 %vm367_vm1, %v332_v24 }
  0x18   : > { %9639 = vmatprep.subr.msk.bf16.mxu0 %vm380_vm0, %v346_v22  ;;  %9640 = vmatprep.subr.msk.bf16.mxu1 %vm380_vm0, %v347_v23 }
  0x1d   : > { %9562 = vmatmul.mubr.msk.bf16.gmra.mrb[4].mxu0 %vm367_vm1, %v333_v27  ;;  %9572 = vmatmul.mubr.msk.bf16.gmra.mrb[4].mxu1 %vm367_vm1, %v333_v27 }
  0x1e   : > { %9577 = vmatprep.mubr.msk.bf16.mxu0 %vm367_vm1, %v330_v14  ;;  %9587 = vmatprep.mubr.msk.bf16.mxu1 %vm367_vm1, %v330_v14 }
  0x25   : > { %9578 = vmatmul.mubr.msk.bf16.vlgmr.msra.gmra.mrb[8].mxu0 %vm367_vm1, %v331_v17  ;;  %9588 = vmatmul.mubr.msk.bf16.vlgmr.msra.gmra.mrb[8].mxu1 %vm367_vm1, %v331_v17 }
  0x26   : > { %9596 = vmatpush3.bf16.msra.mxu0 %v4734_v30  ;;  %9606 = vmatpush3.bf16.msra.mxu1 %v5822_v31 }
  0x27   : > { %9581 = vmatprep.mubr.msk.bf16.mxu0 %vm367_vm1, %v332_v24  ;;  %9591 = vmatprep.mubr.msk.bf16.mxu1 %vm367_vm1, %v332_v24 }
  0x28   : > { %9641 = vmatprep.subr.msk.bf16.mxu0 %vm380_vm0, %v348_v32  ;;  %9642 = vmatprep.subr.msk.bf16.mxu1 %vm380_vm0, %v349_v33 }
  0x2d   : > { %9582 = vmatmul.mubr.msk.bf16.gmra.mrb[12].mxu0 %vm367_vm1, %v333_v27  ;;  %9592 = vmatmul.mubr.msk.bf16.gmra.mrb[12].mxu1 %vm367_vm1, %v333_v27 }
  0x2e   : > { %9597 = vmatprep.mubr.msk.bf16.mxu0 %vm367_vm1, %v330_v14  ;;  %9607 = vmatprep.mubr.msk.bf16.mxu1 %vm367_vm1, %v330_v14 }
  0x35   : > { %9598 = vmatmul.mubr.msk.bf16.vlgmr.msra.gmra.mrb[16].mxu0 %vm367_vm1, %v331_v17  ;;  %9608 = vmatmul.mubr.msk.bf16.vlgmr.msra.gmra.mrb[16].mxu1 %vm367_vm1, %v331_v17 }
  0x36   : > { %9616 = vmatpush3.bf16.msra.mxu0 %v6910_v34  ;;  %9626 = vmatpush3.bf16.msra.mxu1 %v7998_v35 }
  0x37   : > { %9601 = vmatprep.mubr.msk.bf16.mxu0 %vm367_vm1, %v332_v24  ;;  %9611 = vmatprep.mubr.msk.bf16.mxu1 %vm367_vm1, %v332_v24 }
  0x3d   : > { %9602 = vmatmul.mubr.msk.bf16.gmra.mrb[20].mxu0 %vm367_vm1, %v333_v27  ;;  %9612 = vmatmul.mubr.msk.bf16.gmra.mrb[20].mxu1 %vm367_vm1, %v333_v27 }
  0x3e   : > { %9617 = vmatprep.mubr.msk.bf16.mxu0 %vm367_vm1, %v330_v14  ;;  %9627 = vmatprep.mubr.msk.bf16.mxu1 %vm367_vm1, %v330_v14 }
  0x45   : > { %9618 = vmatmul.mubr.msk.bf16.vlgmr.msra.gmra.mrb[24].mxu0 %vm367_vm1, %v331_v17  ;;  %9628 = vmatmul.mubr.msk.bf16.vlgmr.msra.gmra.mrb[24].mxu1 %vm367_vm1, %v331_v17 }
  0x46   : > { %9621 = vmatprep.mubr.msk.bf16.mxu0 %vm367_vm1, %v332_v24  ;;  %9631 = vmatprep.mubr.msk.bf16.mxu1 %vm367_vm1, %v332_v24 }
  0x4d   : > { %9622 = vmatmul.mubr.msk.bf16.gmra.mrb[28].mxu0 %vm367_vm1, %v333_v27  ;;  %9632 = vmatmul.mubr.msk.bf16.gmra.mrb[28].mxu1 %vm367_vm1, %v333_v27 }
  0xe8   : > { %v9559_v46 = vpop.f32.mrb[0].mxu0  ;;  %v9569_v49 = vpop.f32.mrb[0].mxu1 }
  0xe9   : > { %v459_v50 = vcombine.high %v9559_v46, %v9559_v46  ;;  %v567_v51 = vrot.slane %v9559_v46, %v9828_v44  ;;  %v1547_v52 = vcombine.high %v9569_v49, %v9569_v49  ;;  %v1655_v53 = vrot.slane %v9569_v49, %v9828_v44  ;;  %v9838_v54 = vpop.f32.mrb[1].mxu0  ;;  %v9840_v55 = vpop.f32.mrb[1].mxu1 }
  0xea   : > { %v457_v56 = vcombine.high %v9838_v54, %v9838_v54  ;;  %v9846_v57 = vrot.slane %v9838_v54, %v9828_v44  ;;  %v1545_v58 = vcombine.high %v9840_v55, %v9840_v55  ;;  %v9852_v59 = vrot.slane %v9840_v55, %v9828_v44  ;;  %v9854_v60 = vpop.f32.mrb[2].mxu0  ;;  %v9856_v61 = vpop.f32.mrb[2].mxu1 }
  0xeb   : > { %v568_v62 = vcombine.high %v567_v51, %v567_v51  ;;  %v575_v63 = vrot.slane %v567_v51, %v9828_v44  ;;  %v591_v0 = vrot.slane %v459_v50, %v9828_v44  ;;  %v1656_v1 = vcombine.high %v1655_v53, %v1655_v53  ;;  %v9860_v2 = vpop.f32.mrb[3].mxu0  ;;  %v9862_v3 = vpop.f32.mrb[3].mxu1 }
  0xec   : > { %v1663_v4 = vrot.slane %v1655_v53, %v9828_v44  ;;  %v1679_v5 = vrot.slane %v1547_v52, %v9828_v44  ;;  %v472_v6 = vcombine.high %v9846_v57, %v9846_v57  ;;  %v9870_v7 = vrot.slane %v9846_v57, %v9828_v44 }
  0xed   : > { %v582_v8 = vrot.slane %v568_v62, %v9828_v44  ;;  %v583_v9 = vcombine.high %v575_v63, %v575_v63  ;;  %v592_v10 = vcombine.high %v591_v0, %v591_v0  ;;  %v599_v11 = vrot.slane %v591_v0, %v9828_v44 }
  0xee   : > { %v916_v12 = vrot.slane %v575_v63, %v9832_v47  ;;  %v1670_v13 = vrot.slane %v1656_v1, %v9828_v44  ;;  %v1671_v14 = vcombine.high %v1663_v4, %v1663_v4  ;;  %v1680_v15 = vcombine.high %v1679_v5, %v1679_v5 }
  0xef   : > { %v584_v16 = vcombine.high %v582_v8, %v582_v8  ;;  %v606_v17 = vrot.slane %v592_v10, %v9828_v44  ;;  %v607_v18 = vcombine.high %v599_v11, %v599_v11  ;;  %v920_v19 = vrot.slane %v582_v8, %v9832_v47 }
  0xf0   : > { %v924_v20 = vrot.slane %v583_v9, %v9832_v47  ;;  %v932_v21 = vrot.slane %v599_v11, %v9832_v47  ;;  %v1672_v22 = vcombine.high %v1670_v13, %v1670_v13  ;;  %v1687_v23 = vrot.slane %v1679_v5, %v9828_v44  ;;  %v9882_v24 = vpop.f32.mrb[4].mxu0  ;;  %v9884_v25 = vpop.f32.mrb[4].mxu1 }
  0xf1   : > { %v608_v26 = vcombine.high %v606_v17, %v606_v17  ;;  %v928_v27 = vrot.slane %v584_v16, %v9832_v47  ;;  %v936_v28 = vrot.slane %v606_v17, %v9832_v47  ;;  %v940_v29 = vrot.slane %v607_v18, %v9832_v47  ;;  %v9889_v30 = vpop.f32.mrb[5].mxu0  ;;  %v9891_v31 = vpop.f32.mrb[5].mxu1 }
  0xf2   : > { %v1185_v32 = vcombine.low %v916_v12, %v920_v19  ;;  %v1694_v33 = vrot.slane %v1680_v15, %v9828_v44  ;;  %v1695_v34 = vcombine.high %v1687_v23, %v1687_v23  ;;  %v2004_v35 = vrot.slane %v1663_v4, %v9832_v47  ;;  %v9896_v36 = vpop.f32.mrb[6].mxu0  ;;  %v9898_v37 = vpop.f32.mrb[6].mxu1 }
  0xf3   : > { %v944_v38 = vrot.slane %v608_v26, %v9832_v47  ;;  %v1186_v39 = vcombine.low %v924_v20, %v928_v27  ;;  %v1202_v40 = vcombine.low %v932_v21, %v936_v28  ;;  %v2008_v41 = vrot.slane %v1670_v13, %v9832_v47  ;;  %v9902_v42 = vpop.f32.mrb[7].mxu0  ;;  %v9904_v43 = vpop.f32.mrb[7].mxu1  ;;  %v9948_v28 = vld [vmem:[%s11900_s3] ss:$0 sm:$0xff] }
  0xf4   : > { %v1193_v46 = vrot.slane %v1185_v32, %v9834_v48  ;;  %v1696_v49 = vcombine.high %v1694_v33, %v1694_v33  ;;  %v2012_v50 = vrot.slane %v1671_v14, %v9832_v47  ;;  %v2016_v51 = vrot.slane %v1672_v22, %v9832_v47 }
  0xf5   : > { %v1200_v52 = vrot.slane %v1186_v39, %v9834_v48  ;;  %v1203_v53 = vcombine.low %v940_v29, %v944_v38  ;;  %v1210_v57 = vrot.slane %v1202_v40, %v9834_v48  ;;  %v2020_v62 = vrot.slane %v1687_v23, %v9832_v47  ;;  %v9172_v38 = vld [vmem:[%s9933_s20 + $0x80] sm:$0xff] }
  0xf6   : > { %v2024_v63 = vrot.slane %v1694_v33, %v9832_v47  ;;  %v2028_v0 = vrot.slane %v1695_v34, %v9832_v47  ;;  %v2032_v1 = vrot.slane %v1696_v49, %v9832_v47  ;;  %v2273_v4 = vcombine.low %v2004_v35, %v2008_v41 }
  0xf7   : > { %v1201_v5 = vcombine.low %v1193_v46, %v1200_v52  ;;  %v1217_v8 = vrot.slane %v1203_v53, %v9834_v48  ;;  %v2274_v9 = vcombine.low %v2012_v50, %v2016_v51  ;;  %v486_v10 = vrot.slane %v472_v6, %v9828_v44  ;;  %v9174_v50 = vld [vmem:[%s9933_s20 + $0x90] sm:$0xff] }
  0xf8   : > { %v2281_v11 = vrot.slane %v2273_v4, %v9834_v48  ;;  %v2290_v12 = vcombine.low %v2020_v62, %v2024_v63  ;;  %v2291_v13 = vcombine.low %v2028_v0, %v2032_v1  ;;  %v487_v14 = vcombine.high %v9870_v7, %v9870_v7  ;;  %v9921_v15 = vpop.f32.mrb[8].mxu0  ;;  %v9923_v16 = vpop.f32.mrb[8].mxu1 }
  0xf9   : > { %v1218_v17 = vcombine.low %v1210_v57, %v1217_v8  ;;  %v1421_v18 = vsel %vm1105_vm2, %v1201_v5, 0.0  ;;  %v2288_v19 = vrot.slane %v2274_v9, %v9834_v48  ;;  %v488_v20 = vcombine.high %v486_v10, %v486_v10  ;;  %v9952_v54 = vpop.f32.mrb[9].mxu0 }
  0xfa   : > { %v2298_v6 = vrot.slane %v2290_v12, %v9834_v48  ;;  %v2305_v21 = vrot.slane %v2291_v13, %v9834_v48  ;;  %v495_v22 = vrot.slane %v457_v56, %v9828_v44  ;;  %v852_v23 = vrot.slane %v9870_v7, %v9832_v47 }
  0xfb   : > { %v1423_v26 = vsel %vm1105_vm2, %v1218_v17, 0.0  ;;  %v2289_v27 = vcombine.low %v2281_v11, %v2288_v19  ;;  %v856_v29 = vrot.slane %v486_v10, %v9832_v47  ;;  %v860_v32 = vrot.slane %v487_v14, %v9832_v47 }
  0xfc   : > { %v2306_v56 = vcombine.low %v2298_v6, %v2305_v21  ;;  %v496_v33 = vcombine.high %v495_v22, %v495_v22  ;;  %v503_v7 = vrot.slane %v495_v22, %v9828_v44  ;;  %v864_v34 = vrot.slane %v488_v20, %v9832_v47  ;;  %v9994_v6 = vpop.f32.mrb[9].mxu1 }
  0xfd   : > { %v2509_v35 = vsel %vm2193_vm3, %v2289_v27, %v1421_v18  ;;  %v1117_v39 = vcombine.low %v852_v23, %v856_v29  ;;  %v1560_v40 = vcombine.high %v9852_v59, %v9852_v59  ;;  %v1567_v41 = vrot.slane %v9852_v59, %v9828_v44 }
  0xfe   : > { %v2511_v46 = vsel %vm2193_vm3, %v2306_v56, %v1423_v26  ;;  %v9108_v49 = vadd.f32 %v9948_v28, %v2509_v35  ;;  %v510_v51 = vrot.slane %v496_v33, %v9828_v44  ;;  %v511_v52 = vcombine.high %v503_v7, %v503_v7 }
  0xff   : > { %v9110_v53 = vadd.f32 %v9948_v28, %v2511_v46  ;;  %v868_v59 = vrot.slane %v503_v7, %v9832_v47  ;;  %v1118_v57 = vcombine.low %v860_v32, %v864_v34  ;;  %v1125_v62 = vrot.slane %v1117_v39, %v9834_v48 }
 0x100   : > { %v9236_v63 = vadd.f32 %v9172_v38, %v9108_v49  ;;  %v512_v0 = vcombine.high %v510_v51, %v510_v51  ;;  %v872_v1 = vrot.slane %v510_v51, %v9832_v47  ;;  %v876_v4 = vrot.slane %v511_v52, %v9832_v47 }
 0x101   : > { %v9238_v5 = vadd.f32 %v9174_v50, %v9110_v53  ;;  %v1132_v8 = vrot.slane %v1118_v57, %v9834_v48  ;;  %v1574_v9 = vrot.slane %v1560_v40, %v9828_v44  ;;  %v1575_v10 = vcombine.high %v1567_v41, %v1567_v41 }
 0x102   : > { %9301 = vst.msk [vmem:[%s9973_s25 + $0x80] sm:$0xff] %vm9284_vm4, %v9236_v63  ;;  %v880_v11 = vrot.slane %v512_v0, %v9832_v47  ;;  %v1134_v12 = vcombine.low %v868_v59, %v872_v1  ;;  %v1583_v13 = vrot.slane %v1545_v58, %v9828_v44  ;;  %v1940_v14 = vrot.slane %v1567_v41, %v9832_v47 }
 0x103   : > { %9303 = vst.msk [vmem:[%s9973_s25 + $0x90] sm:$0xff] %vm9284_vm4, %v9238_v5  ;;  %v1133_v17 = vcombine.low %v1125_v62, %v1132_v8  ;;  %v1576_v18 = vcombine.high %v1574_v9, %v1574_v9  ;;  %v1944_v19 = vrot.slane %v1574_v9, %v9832_v47  ;;  %v1948_v20 = vrot.slane %v1575_v10, %v9832_v47 }
 0x104   : > { %v1135_v21 = vcombine.low %v876_v4, %v880_v11  ;;  %v1142_v22 = vrot.slane %v1134_v12, %v9834_v48  ;;  %v1584_v23 = vcombine.high %v1583_v13, %v1583_v13  ;;  %v1591_v26 = vrot.slane %v1583_v13, %v9828_v44  ;;  %v9156_v12 = vld [vmem:[%s9933_s20] sm:$0xff] }
 0x105   : > { %v1405_v55 = vsel %vm1105_vm2, %v1133_v17, 0.0  ;;  %v1952_v58 = vrot.slane %v1576_v18, %v9832_v47  ;;  %v2205_v27 = vcombine.low %v1940_v14, %v1944_v19  ;;  %v460_v29 = vcombine.high %v9854_v60, %v9854_v60 }
 0x106   : > { %v1149_v32 = vrot.slane %v1135_v21, %v9834_v48  ;;  %v1598_v56 = vrot.slane %v1584_v23, %v9828_v44  ;;  %v1599_v33 = vcombine.high %v1591_v26, %v1591_v26  ;;  %v1956_v7 = vrot.slane %v1591_v26, %v9832_v47 }
 0x107   : > { %v2206_v34 = vcombine.low %v1948_v20, %v1952_v58  ;;  %v2213_v35 = vrot.slane %v2205_v27, %v9834_v48  ;;  %v615_v38 = vrot.slane %v9854_v60, %v9828_v44  ;;  %v639_v39 = vrot.slane %v460_v29, %v9828_v44 }
 0x108   : > { %v1150_v40 = vcombine.low %v1142_v22, %v1149_v32  ;;  %v1600_v41 = vcombine.high %v1598_v56, %v1598_v56  ;;  %v1960_v46 = vrot.slane %v1598_v56, %v9832_v47  ;;  %v1964_v49 = vrot.slane %v1599_v33, %v9832_v47  ;;  %v10030_v22 = vpop.f32.mrb[10].mxu0 }
 0x109   : > { %v2220_v50 = vrot.slane %v2206_v34, %v9834_v48  ;;  %v616_v51 = vcombine.high %v615_v38, %v615_v38  ;;  %v623_v52 = vrot.slane %v615_v38, %v9828_v44  ;;  %v640_v53 = vcombine.high %v639_v39, %v639_v39 }
 0x10a   : > { %v1407_v59 = vsel %vm1105_vm2, %v1150_v40, 0.0  ;;  %v1968_v60 = vrot.slane %v1600_v41, %v9832_v47  ;;  %v2222_v57 = vcombine.low %v1956_v7, %v1960_v46  ;;  %v647_v62 = vrot.slane %v639_v39, %v9828_v44  ;;  %v9158_v39 = vld [vmem:[%s9933_s20 + $0x10] sm:$0xff] }
 0x10b   : > { %v2221_v63 = vcombine.low %v2213_v35, %v2220_v50  ;;  %v630_v0 = vrot.slane %v616_v51, %v9828_v44  ;;  %v631_v1 = vcombine.high %v623_v52, %v623_v52  ;;  %v654_v4 = vrot.slane %v640_v53, %v9828_v44 }
 0x10c   : > { %v2223_v5 = vcombine.low %v1964_v49, %v1968_v60  ;;  %v2230_v8 = vrot.slane %v2222_v57, %v9834_v48  ;;  %v655_v9 = vcombine.high %v647_v62, %v647_v62  ;;  %v948_v10 = vrot.slane %v623_v52, %v9832_v47  ;;  %v10055_v57 = vpop.f32.mrb[10].mxu1 }
 0x10d   : > { %v2493_v11 = vsel %vm2193_vm3, %v2221_v63, %v1405_v55  ;;  %v632_v13 = vcombine.high %v630_v0, %v630_v0  ;;  %v656_v14 = vcombine.high %v654_v4, %v654_v4  ;;  %v952_v17 = vrot.slane %v630_v0, %v9832_v47 }
 0x10e   : > { %v2237_v18 = vrot.slane %v2223_v5, %v9834_v48  ;;  %v9092_v19 = vadd.f32 %v9948_v28, %v2493_v11  ;;  %v956_v20 = vrot.slane %v631_v1, %v9832_v47  ;;  %v964_v21 = vrot.slane %v647_v62, %v9832_v47 }
 0x10f   : > { %v960_v23 = vrot.slane %v632_v13, %v9832_v47  ;;  %v968_v26 = vrot.slane %v654_v4, %v9832_v47  ;;  %v972_v55 = vrot.slane %v655_v9, %v9832_v47  ;;  %v976_v58 = vrot.slane %v656_v14, %v9832_v47 }
 0x110   : > { %v2238_v27 = vcombine.low %v2230_v8, %v2237_v18  ;;  %v9220_v29 = vadd.f32 %v9156_v12, %v9092_v19  ;;  %v1219_v32 = vcombine.low %v948_v10, %v952_v17  ;;  %v1548_v56 = vcombine.high %v9856_v61, %v9856_v61 }
 0x111   : > { %v1220_v33 = vcombine.low %v956_v20, %v960_v23  ;;  %v1236_v7 = vcombine.low %v964_v21, %v968_v26  ;;  %v1237_v34 = vcombine.low %v972_v55, %v976_v58  ;;  %v1703_v35 = vrot.slane %v9856_v61, %v9828_v44 }
 0x112   : > { %v2495_v38 = vsel %vm2193_vm3, %v2238_v27, %v1407_v59  ;;  %9285 = vst.msk [vmem:[%s9973_s25] sm:$0xff] %vm9284_vm4, %v9220_v29  ;;  %v1227_v40 = vrot.slane %v1219_v32, %v9834_v48  ;;  %v1727_v41 = vrot.slane %v1548_v56, %v9828_v44  ;;  %v458_v46 = vcombine.high %v9860_v2, %v9860_v2 }
 0x113   : > { %v9094_v49 = vadd.f32 %v9948_v28, %v2495_v38  ;;  %v1234_v50 = vrot.slane %v1220_v33, %v9834_v48  ;;  %v1244_v61 = vrot.slane %v1236_v7, %v9834_v48  ;;  %v1251_v51 = vrot.slane %v1237_v34, %v9834_v48 }
 0x114   : > { %v1704_v52 = vcombine.high %v1703_v35, %v1703_v35  ;;  %v1711_v53 = vrot.slane %v1703_v35, %v9828_v44  ;;  %v1728_v59 = vcombine.high %v1727_v41, %v1727_v41  ;;  %v1735_v60 = vrot.slane %v1727_v41, %v9828_v44 }
 0x115   : > { %v9222_v62 = vadd.f32 %v9158_v39, %v9094_v49  ;;  %v1235_v63 = vcombine.low %v1227_v40, %v1234_v50  ;;  %v1252_v0 = vcombine.low %v1244_v61, %v1251_v51  ;;  %v519_v1 = vrot.slane %v9860_v2, %v9828_v44 }
 0x116   : > { %v1718_v4 = vrot.slane %v1704_v52, %v9828_v44  ;;  %v1719_v5 = vcombine.high %v1711_v53, %v1711_v53  ;;  %v1742_v8 = vrot.slane %v1728_v59, %v9828_v44  ;;  %v1743_v9 = vcombine.high %v1735_v60, %v1735_v60 }
 0x117   : > { %9287 = vst.msk [vmem:[%s9973_s25 + $0x10] sm:$0xff] %vm9284_vm4, %v9222_v62  ;;  %v1425_v10 = vsel %vm1105_vm2, %v1235_v63, 0.0  ;;  %v1427_v11 = vsel %vm1105_vm2, %v1252_v0, 0.0  ;;  %v2036_v12 = vrot.slane %v1711_v53, %v9832_v47  ;;  %v2052_v13 = vrot.slane %v1735_v60, %v9832_v47  ;;  %v10089_v62 = vpop.f32.mrb[11].mxu0 }
 0x118   : > { %v1720_v14 = vcombine.high %v1718_v4, %v1718_v4  ;;  %v1744_v2 = vcombine.high %v1742_v8, %v1742_v8  ;;  %v2040_v17 = vrot.slane %v1718_v4, %v9832_v47  ;;  %v2044_v18 = vrot.slane %v1719_v5, %v9832_v47 }
 0x119   : > { %v2056_v19 = vrot.slane %v1742_v8, %v9832_v47  ;;  %v2060_v20 = vrot.slane %v1743_v9, %v9832_v47  ;;  %v520_v21 = vcombine.high %v519_v1, %v519_v1  ;;  %v527_v23 = vrot.slane %v519_v1, %v9828_v44 }
 0x11a   : > { %v2048_v26 = vrot.slane %v1720_v14, %v9832_v47  ;;  %v2064_v55 = vrot.slane %v1744_v2, %v9832_v47  ;;  %v2307_v58 = vcombine.low %v2036_v12, %v2040_v17  ;;  %v543_v27 = vrot.slane %v458_v46, %v9828_v44  ;;  %v9176_v2 = vld [vmem:[%s9933_s20 + $0xa0] sm:$0xff]  ;;  %v9178_v17 = vld [vmem:[%s9933_s20 + $0xb0] sm:$0xff] }
 0x11b   : > { %v2324_v29 = vcombine.low %v2052_v13, %v2056_v19  ;;  %v534_v32 = vrot.slane %v520_v21, %v9828_v44  ;;  %v535_v56 = vcombine.high %v527_v23, %v527_v23  ;;  %v884_v33 = vrot.slane %v527_v23, %v9832_v47 }
 0x11c   : > { %v2308_v7 = vcombine.low %v2044_v18, %v2048_v26  ;;  %v2315_v34 = vrot.slane %v2307_v58, %v9834_v48  ;;  %v2325_v35 = vcombine.low %v2060_v20, %v2064_v55  ;;  %v544_v38 = vcombine.high %v543_v27, %v543_v27 }
 0x11d   : > { %v2332_v39 = vrot.slane %v2324_v29, %v9834_v48  ;;  %v536_v40 = vcombine.high %v534_v32, %v534_v32  ;;  %v551_v41 = vrot.slane %v543_v27, %v9828_v44  ;;  %v888_v49 = vrot.slane %v534_v32, %v9832_v47 }
 0x11e   : > { %v2322_v46 = vrot.slane %v2308_v7, %v9834_v48  ;;  %v2339_v50 = vrot.slane %v2325_v35, %v9834_v48  ;;  %v558_v61 = vrot.slane %v544_v38, %v9828_v44  ;;  %v892_v51 = vrot.slane %v535_v56, %v9832_v47 }
 0x11f   : > { %v559_v52 = vcombine.high %v551_v41, %v551_v41  ;;  %v896_v53 = vrot.slane %v536_v40, %v9832_v47  ;;  %v900_v59 = vrot.slane %v551_v41, %v9832_v47  ;;  %v1151_v60 = vcombine.low %v884_v33, %v888_v49  ;;  %v10112_v33 = vpop.f32.mrb[11].mxu1 }
 0x120   : > { %v2323_v63 = vcombine.low %v2315_v34, %v2322_v46  ;;  %v2340_v0 = vcombine.low %v2332_v39, %v2339_v50  ;;  %v560_v1 = vcombine.high %v558_v61, %v558_v61  ;;  %v904_v4 = vrot.slane %v558_v61, %v9832_v47 }
 0x121   : > { %v908_v5 = vrot.slane %v559_v52, %v9832_v47  ;;  %v1152_v8 = vcombine.low %v892_v51, %v896_v53  ;;  %v1159_v9 = vrot.slane %v1151_v60, %v9834_v48  ;;  %v1546_v12 = vcombine.high %v9862_v3, %v9862_v3 }
 0x122   : > { %v2513_v13 = vsel %vm2193_vm3, %v2323_v63, %v1425_v10  ;;  %v2515_v14 = vsel %vm2193_vm3, %v2340_v0, %v1427_v11  ;;  %v912_v18 = vrot.slane %v560_v1, %v9832_v47  ;;  %v1168_v19 = vcombine.low %v900_v59, %v904_v4 }
 0x123   : > { %v9112_v20 = vadd.f32 %v9948_v28, %v2513_v13  ;;  %v9114_v21 = vadd.f32 %v9948_v28, %v2515_v14  ;;  %v1166_v23 = vrot.slane %v1152_v8, %v9834_v48  ;;  %v1607_v26 = vrot.slane %v9862_v3, %v9828_v44 }
 0x124   : > { %v1169_v10 = vcombine.low %v908_v5, %v912_v18  ;;  %v1176_v55 = vrot.slane %v1168_v19, %v9834_v48  ;;  %v1631_v11 = vrot.slane %v1546_v12, %v9828_v44  ;;  %v463_v58 = vcombine.high %v9882_v24, %v9882_v24 }
 0x125   : > { %v9240_v27 = vadd.f32 %v9176_v2, %v9112_v20  ;;  %v9242_v29 = vadd.f32 %v9178_v17, %v9114_v21  ;;  %v1167_v32 = vcombine.low %v1159_v9, %v1166_v23  ;;  %v1608_v56 = vcombine.high %v1607_v26, %v1607_v26 }
 0x126   : > { %v1183_v7 = vrot.slane %v1169_v10, %v9834_v48  ;;  %v1615_v34 = vrot.slane %v1607_v26, %v9828_v44  ;;  %v1632_v35 = vcombine.high %v1631_v11, %v1631_v11  ;;  %v1639_v3 = vrot.slane %v1631_v11, %v9828_v44 }
 0x127   : > { %9305 = vst.msk [vmem:[%s9973_s25 + $0xa0] sm:$0xff] %vm9284_vm4, %v9240_v27  ;;  %9307 = vst.msk [vmem:[%s9973_s25 + $0xb0] sm:$0xff] %vm9284_vm4, %v9242_v29  ;;  %v1409_v38 = vsel %vm1105_vm2, %v1167_v32, 0.0  ;;  %v1622_v39 = vrot.slane %v1608_v56, %v9828_v44  ;;  %v759_v40 = vrot.slane %v9882_v24, %v9828_v44  ;;  %v783_v41 = vrot.slane %v463_v58, %v9828_v44 }
 0x128   : > { %v1184_v49 = vcombine.low %v1176_v55, %v1183_v7  ;;  %v1623_v46 = vcombine.high %v1615_v34, %v1615_v34  ;;  %v1646_v50 = vrot.slane %v1632_v35, %v9828_v44  ;;  %v1647_v61 = vcombine.high %v1639_v3, %v1639_v3 }
 0x129   : > { %v1624_v51 = vcombine.high %v1622_v39, %v1622_v39  ;;  %v1972_v52 = vrot.slane %v1615_v34, %v9832_v47  ;;  %v1976_v53 = vrot.slane %v1622_v39, %v9832_v47  ;;  %v1988_v59 = vrot.slane %v1639_v3, %v9832_v47 }
 0x12a   : > { %v1411_v60 = vsel %vm1105_vm2, %v1184_v49, 0.0  ;;  %v1648_v63 = vcombine.high %v1646_v50, %v1646_v50  ;;  %v1980_v24 = vrot.slane %v1623_v46, %v9832_v47  ;;  %v1992_v0 = vrot.slane %v1646_v50, %v9832_v47  ;;  %v9160_v50 = vld [vmem:[%s9933_s20 + $0x20] sm:$0xff] }
 0x12b   : > { %v1984_v1 = vrot.slane %v1624_v51, %v9832_v47  ;;  %v1996_v4 = vrot.slane %v1647_v61, %v9832_v47  ;;  %v2239_v5 = vcombine.low %v1972_v52, %v1976_v53  ;;  %v760_v8 = vcombine.high %v759_v40, %v759_v40 }
 0x12c   : > { %v2000_v9 = vrot.slane %v1648_v63, %v9832_v47  ;;  %v2256_v12 = vcombine.low %v1988_v59, %v1992_v0  ;;  %v767_v13 = vrot.slane %v759_v40, %v9828_v44  ;;  %v784_v14 = vcombine.high %v783_v41, %v783_v41  ;;  %v9162_v63 = vld [vmem:[%s9933_s20 + $0x30] sm:$0xff] }
 0x12d   : > { %v2240_v2 = vcombine.low %v1980_v24, %v1984_v1  ;;  %v2247_v17 = vrot.slane %v2239_v5, %v9834_v48  ;;  %v774_v18 = vrot.slane %v760_v8, %v9828_v44  ;;  %v791_v19 = vrot.slane %v783_v41, %v9828_v44  ;;  %v10164_v1 = vpop.f32.mrb[12].mxu0 }
 0x12e   : > { %v2257_v20 = vcombine.low %v1996_v4, %v2000_v9  ;;  %v2264_v21 = vrot.slane %v2256_v12, %v9834_v48  ;;  %v775_v23 = vcombine.high %v767_v13, %v767_v13  ;;  %v798_v26 = vrot.slane %v784_v14, %v9828_v44 }
 0x12f   : > { %v2254_v10 = vrot.slane %v2240_v2, %v9834_v48  ;;  %v776_v55 = vcombine.high %v774_v18, %v774_v18  ;;  %v799_v11 = vcombine.high %v791_v19, %v791_v19  ;;  %v1044_v58 = vrot.slane %v767_v13, %v9832_v47 }
 0x130   : > { %v2271_v27 = vrot.slane %v2257_v20, %v9834_v48  ;;  %v800_v29 = vcombine.high %v798_v26, %v798_v26  ;;  %v1048_v32 = vrot.slane %v774_v18, %v9832_v47  ;;  %v1052_v56 = vrot.slane %v775_v23, %v9832_v47 }
 0x131   : > { %v2255_v7 = vcombine.low %v2247_v17, %v2254_v10  ;;  %v1056_v34 = vrot.slane %v776_v55, %v9832_v47  ;;  %v1060_v35 = vrot.slane %v791_v19, %v9832_v47  ;;  %v1064_v3 = vrot.slane %v798_v26, %v9832_v47  ;;  %v10176_v19 = vpop.f32.mrb[12].mxu1 }
 0x132   : > { %v2272_v39 = vcombine.low %v2264_v21, %v2271_v27  ;;  %v1068_v40 = vrot.slane %v799_v11, %v9832_v47  ;;  %v1072_v41 = vrot.slane %v800_v29, %v9832_v47  ;;  %v1321_v49 = vcombine.low %v1044_v58, %v1048_v32 }
 0x133   : > { %v2497_v46 = vsel %vm2193_vm3, %v2255_v7, %v1409_v38  ;;  %v1322_v61 = vcombine.low %v1052_v56, %v1056_v34  ;;  %v1338_v51 = vcombine.low %v1060_v35, %v1064_v3  ;;  %v1551_v52 = vcombine.high %v9884_v25, %v9884_v25 }
 0x134   : > { %v2499_v53 = vsel %vm2193_vm3, %v2272_v39, %v1411_v60  ;;  %v9096_v59 = vadd.f32 %v9948_v28, %v2497_v46  ;;  %v1329_v24 = vrot.slane %v1321_v49, %v9834_v48  ;;  %v1339_v0 = vcombine.low %v1068_v40, %v1072_v41 }
 0x135   : > { %v9098_v38 = vadd.f32 %v9948_v28, %v2499_v53  ;;  %v1336_v4 = vrot.slane %v1322_v61, %v9834_v48  ;;  %v1346_v5 = vrot.slane %v1338_v51, %v9834_v48  ;;  %v1847_v8 = vrot.slane %v9884_v25, %v9828_v44 }
 0x136   : > { %v9224_v60 = vadd.f32 %v9160_v50, %v9096_v59  ;;  %v1353_v9 = vrot.slane %v1339_v0, %v9834_v48  ;;  %v1871_v12 = vrot.slane %v1551_v52, %v9828_v44  ;;  %v461_v13 = vcombine.high %v9889_v30, %v9889_v30 }
 0x137   : > { %v9226_v14 = vadd.f32 %v9162_v63, %v9098_v38  ;;  %v1337_v2 = vcombine.low %v1329_v24, %v1336_v4  ;;  %v1848_v17 = vcombine.high %v1847_v8, %v1847_v8  ;;  %v1855_v18 = vrot.slane %v1847_v8, %v9828_v44 }
 0x138   : > { %9289 = vst.msk [vmem:[%s9973_s25 + $0x20] sm:$0xff] %vm9284_vm4, %v9224_v60  ;;  %v1354_v20 = vcombine.low %v1346_v5, %v1353_v9  ;;  %v1872_v21 = vcombine.high %v1871_v12, %v1871_v12  ;;  %v1879_v25 = vrot.slane %v1871_v12, %v9828_v44  ;;  %v663_v23 = vrot.slane %v9889_v30, %v9828_v44 }
 0x139   : > { %9291 = vst.msk [vmem:[%s9973_s25 + $0x30] sm:$0xff] %vm9284_vm4, %v9226_v14  ;;  %v1453_v26 = vsel %vm1105_vm2, %v1337_v2, 0.0  ;;  %v1862_v10 = vrot.slane %v1848_v17, %v9828_v44  ;;  %v1863_v55 = vcombine.high %v1855_v18, %v1855_v18  ;;  %v2132_v11 = vrot.slane %v1855_v18, %v9832_v47  ;;  %v10211_v14 = vpop.f32.mrb[13].mxu0 }
 0x13a   : > { %v1455_v58 = vsel %vm1105_vm2, %v1354_v20, 0.0  ;;  %v1886_v27 = vrot.slane %v1872_v21, %v9828_v44  ;;  %v1887_v29 = vcombine.high %v1879_v25, %v1879_v25  ;;  %v2148_v32 = vrot.slane %v1879_v25, %v9832_v47 }
 0x13b   : > { %v1864_v56 = vcombine.high %v1862_v10, %v1862_v10  ;;  %v2136_v30 = vrot.slane %v1862_v10, %v9832_v47  ;;  %v2140_v7 = vrot.slane %v1863_v55, %v9832_v47  ;;  %v664_v34 = vcombine.high %v663_v23, %v663_v23 }
 0x13c   : > { %v1888_v35 = vcombine.high %v1886_v27, %v1886_v27  ;;  %v2152_v3 = vrot.slane %v1886_v27, %v9832_v47  ;;  %v2156_v39 = vrot.slane %v1887_v29, %v9832_v47  ;;  %v671_v40 = vrot.slane %v663_v23, %v9828_v44 }
 0x13d   : > { %v2144_v41 = vrot.slane %v1864_v56, %v9832_v47  ;;  %v2409_v49 = vcombine.low %v2132_v11, %v2136_v30  ;;  %v678_v46 = vrot.slane %v664_v34, %v9828_v44  ;;  %v687_v50 = vrot.slane %v461_v13, %v9828_v44  ;;  %v9204_v56 = vld [vmem:[%s9933_s20 + $0x180] sm:$0xff] }
 0x13e   : > { %v2160_v61 = vrot.slane %v1888_v35, %v9832_v47  ;;  %v2426_v51 = vcombine.low %v2148_v32, %v2152_v3  ;;  %v679_v52 = vcombine.high %v671_v40, %v671_v40  ;;  %v980_v53 = vrot.slane %v671_v40, %v9832_v47 }
 0x13f   : > { %v2410_v59 = vcombine.low %v2140_v7, %v2144_v41  ;;  %v2417_v63 = vrot.slane %v2409_v49, %v9834_v48  ;;  %v680_v24 = vcombine.high %v678_v46, %v678_v46  ;;  %v688_v0 = vcombine.high %v687_v50, %v687_v50 }
 0x140   : > { %v2427_v38 = vcombine.low %v2156_v39, %v2160_v61  ;;  %v2434_v4 = vrot.slane %v2426_v51, %v9834_v48  ;;  %v695_v5 = vrot.slane %v687_v50, %v9828_v44  ;;  %v984_v8 = vrot.slane %v678_v46, %v9832_v47  ;;  %v9206_v39 = vld [vmem:[%s9933_s20 + $0x190] sm:$0xff] }
 0x141   : > { %v2424_v60 = vrot.slane %v2410_v59, %v9834_v48  ;;  %v702_v9 = vrot.slane %v688_v0, %v9828_v44  ;;  %v988_v12 = vrot.slane %v679_v52, %v9832_v47  ;;  %v992_v13 = vrot.slane %v680_v24, %v9832_v47  ;;  %v10239_v24 = vpop.f32.mrb[13].mxu1 }
 0x142   : > { %v2441_v2 = vrot.slane %v2427_v38, %v9834_v48  ;;  %v703_v17 = vcombine.high %v695_v5, %v695_v5  ;;  %v996_v18 = vrot.slane %v695_v5, %v9832_v47  ;;  %v1253_v20 = vcombine.low %v980_v53, %v984_v8 }
 0x143   : > { %v2425_v21 = vcombine.low %v2417_v63, %v2424_v60  ;;  %v704_v25 = vcombine.high %v702_v9, %v702_v9  ;;  %v1000_v23 = vrot.slane %v702_v9, %v9832_v47  ;;  %v1254_v10 = vcombine.low %v988_v12, %v992_v13 }
 0x144   : > { %v2442_v55 = vcombine.low %v2434_v4, %v2441_v2  ;;  %v1004_v11 = vrot.slane %v703_v17, %v9832_v47  ;;  %v1261_v27 = vrot.slane %v1253_v20, %v9834_v48  ;;  %v1549_v29 = vcombine.high %v9891_v31, %v9891_v31 }
 0x145   : > { %v2541_v32 = vsel %vm2193_vm3, %v2425_v21, %v1453_v26  ;;  %v1008_v30 = vrot.slane %v704_v25, %v9832_v47  ;;  %v1268_v7 = vrot.slane %v1254_v10, %v9834_v48  ;;  %v1270_v34 = vcombine.low %v996_v18, %v1000_v23 }
 0x146   : > { %v2543_v35 = vsel %vm2193_vm3, %v2442_v55, %v1455_v58  ;;  %v9140_v3 = vadd.f32 %v9948_v28, %v2541_v32  ;;  %v1751_v40 = vrot.slane %v9891_v31, %v9828_v44  ;;  %v1775_v41 = vrot.slane %v1549_v29, %v9828_v44 }
 0x147   : > { %v9142_v26 = vadd.f32 %v9948_v28, %v2543_v35  ;;  %v1269_v49 = vcombine.low %v1261_v27, %v1268_v7  ;;  %v1271_v46 = vcombine.low %v1004_v11, %v1008_v30  ;;  %v1278_v50 = vrot.slane %v1270_v34, %v9834_v48 }
 0x148   : > { %v9268_v61 = vadd.f32 %v9204_v56, %v9140_v3  ;;  %v1752_v51 = vcombine.high %v1751_v40, %v1751_v40  ;;  %v1759_v58 = vrot.slane %v1751_v40, %v9828_v44  ;;  %v1776_v52 = vcombine.high %v1775_v41, %v1775_v41 }
 0x149   : > { %v9270_v53 = vadd.f32 %v9206_v39, %v9142_v26  ;;  %v1285_v59 = vrot.slane %v1271_v46, %v9834_v48  ;;  %v1437_v31 = vsel %vm1105_vm2, %v1269_v49, 0.0  ;;  %v1783_v63 = vrot.slane %v1775_v41, %v9828_v44 }
 0x14a   : > { %9333 = vst.msk [vmem:[%s9973_s25 + $0x180] sm:$0xff] %vm9284_vm4, %v9268_v61  ;;  %v1766_v0 = vrot.slane %v1752_v51, %v9828_v44  ;;  %v1767_v38 = vcombine.high %v1759_v58, %v1759_v58  ;;  %v1790_v4 = vrot.slane %v1776_v52, %v9828_v44  ;;  %v2068_v5 = vrot.slane %v1759_v58, %v9832_v47 }
 0x14b   : > { %9335 = vst.msk [vmem:[%s9973_s25 + $0x190] sm:$0xff] %vm9284_vm4, %v9270_v53  ;;  %v1286_v8 = vcombine.low %v1278_v50, %v1285_v59  ;;  %v1791_v60 = vcombine.high %v1783_v63, %v1783_v63  ;;  %v2084_v9 = vrot.slane %v1783_v63, %v9832_v47  ;;  %v464_v12 = vcombine.high %v9896_v36, %v9896_v36  ;;  %v10275_v53 = vpop.f32.mrb[14].mxu0 }
 0x14c   : > { %v1768_v13 = vcombine.high %v1766_v0, %v1766_v0  ;;  %v1792_v2 = vcombine.high %v1790_v4, %v1790_v4  ;;  %v2072_v17 = vrot.slane %v1766_v0, %v9832_v47  ;;  %v2076_v18 = vrot.slane %v1767_v38, %v9832_v47 }
 0x14d   : > { %v1439_v20 = vsel %vm1105_vm2, %v1286_v8, 0.0  ;;  %v2088_v21 = vrot.slane %v1790_v4, %v9832_v47  ;;  %v2092_v25 = vrot.slane %v1791_v60, %v9832_v47  ;;  %v807_v23 = vrot.slane %v9896_v36, %v9828_v44 }
 0x14e   : > { %v2080_v10 = vrot.slane %v1768_v13, %v9832_v47  ;;  %v2096_v55 = vrot.slane %v1792_v2, %v9832_v47  ;;  %v2341_v11 = vcombine.low %v2068_v5, %v2072_v17  ;;  %v831_v27 = vrot.slane %v464_v12, %v9828_v44  ;;  %v9188_v13 = vld [vmem:[%s9933_s20 + $0x100] sm:$0xff]  ;;  %v9190_v2 = vld [vmem:[%s9933_s20 + $0x110] sm:$0xff] }
 0x14f   : > { %v2358_v29 = vcombine.low %v2084_v9, %v2088_v21  ;;  %v808_v32 = vcombine.high %v807_v23, %v807_v23  ;;  %v815_v56 = vrot.slane %v807_v23, %v9828_v44  ;;  %v1552_v30 = vcombine.high %v9898_v37, %v9898_v37 }
 0x150   : > { %v2342_v7 = vcombine.low %v2076_v18, %v2080_v10  ;;  %v2349_v34 = vrot.slane %v2341_v11, %v9834_v48  ;;  %v2359_v35 = vcombine.low %v2092_v25, %v2096_v55  ;;  %v832_v3 = vcombine.high %v831_v27, %v831_v27 }
 0x151   : > { %v2366_v36 = vrot.slane %v2358_v29, %v9834_v48  ;;  %v822_v39 = vrot.slane %v808_v32, %v9828_v44  ;;  %v823_v40 = vcombine.high %v815_v56, %v815_v56  ;;  %v839_v41 = vrot.slane %v831_v27, %v9828_v44 }
 0x152   : > { %v2356_v26 = vrot.slane %v2342_v7, %v9834_v48  ;;  %v2373_v49 = vrot.slane %v2359_v35, %v9834_v48  ;;  %v846_v46 = vrot.slane %v832_v3, %v9828_v44  ;;  %v1076_v50 = vrot.slane %v815_v56, %v9832_v47  ;;  %v10299_v3 = vpop.f32.mrb[14].mxu1 }
 0x153   : > { %v824_v61 = vcombine.high %v822_v39, %v822_v39  ;;  %v847_v51 = vcombine.high %v839_v41, %v839_v41  ;;  %v1080_v58 = vrot.slane %v822_v39, %v9832_v47  ;;  %v1084_v52 = vrot.slane %v823_v40, %v9832_v47 }
 0x154   : > { %v2357_v59 = vcombine.low %v2349_v34, %v2356_v26  ;;  %v2374_v63 = vcombine.low %v2366_v36, %v2373_v49  ;;  %v848_v0 = vcombine.high %v846_v46, %v846_v46  ;;  %v1092_v38 = vrot.slane %v839_v41, %v9832_v47 }
 0x155   : > { %v1088_v4 = vrot.slane %v824_v61, %v9832_v47  ;;  %v1096_v5 = vrot.slane %v846_v46, %v9832_v47  ;;  %v1100_v8 = vrot.slane %v847_v51, %v9832_v47  ;;  %v1355_v60 = vcombine.low %v1076_v50, %v1080_v58 }
 0x156   : > { %v2525_v9 = vsel %vm2193_vm3, %v2357_v59, %v1437_v31  ;;  %v2527_v12 = vsel %vm2193_vm3, %v2374_v63, %v1439_v20  ;;  %v1104_v17 = vrot.slane %v848_v0, %v9832_v47  ;;  %v1895_v18 = vrot.slane %v9898_v37, %v9828_v44 }
 0x157   : > { %v9124_v21 = vadd.f32 %v9948_v28, %v2525_v9  ;;  %v9126_v25 = vadd.f32 %v9948_v28, %v2527_v12  ;;  %v1356_v23 = vcombine.low %v1084_v52, %v1088_v4  ;;  %v1363_v10 = vrot.slane %v1355_v60, %v9834_v48 }
 0x158   : > { %v1372_v31 = vcombine.low %v1092_v38, %v1096_v5  ;;  %v1373_v55 = vcombine.low %v1100_v8, %v1104_v17  ;;  %v1896_v11 = vcombine.high %v1895_v18, %v1895_v18  ;;  %v1903_v20 = vrot.slane %v1895_v18, %v9828_v44 }
 0x159   : > { %v9252_v27 = vadd.f32 %v9188_v13, %v9124_v21  ;;  %v9254_v29 = vadd.f32 %v9190_v2, %v9126_v25  ;;  %v1370_v32 = vrot.slane %v1356_v23, %v9834_v48  ;;  %v1919_v37 = vrot.slane %v1552_v30, %v9828_v44 }
 0x15a   : > { %v1380_v56 = vrot.slane %v1372_v31, %v9834_v48  ;;  %v1387_v7 = vrot.slane %v1373_v55, %v9834_v48  ;;  %v1910_v34 = vrot.slane %v1896_v11, %v9828_v44  ;;  %v1911_v35 = vcombine.high %v1903_v20, %v1903_v20 }
 0x15b   : > { %9317 = vst.msk [vmem:[%s9973_s25 + $0x100] sm:$0xff] %vm9284_vm4, %v9252_v27  ;;  %9319 = vst.msk [vmem:[%s9973_s25 + $0x110] sm:$0xff] %vm9284_vm4, %v9254_v29  ;;  %v1371_v36 = vcombine.low %v1363_v10, %v1370_v32  ;;  %v1920_v39 = vcombine.high %v1919_v37, %v1919_v37  ;;  %v1927_v40 = vrot.slane %v1919_v37, %v9828_v44 }
 0x15c   : > { %v2164_v41 = vrot.slane %v1903_v20, %v9832_v47  ;;  %v1388_v30 = vcombine.low %v1380_v56, %v1387_v7  ;;  %v1912_v26 = vcombine.high %v1910_v34, %v1910_v34  ;;  %v2168_v49 = vrot.slane %v1910_v34, %v9832_v47 }
 0x15d   : > { %v2172_v46 = vrot.slane %v1911_v35, %v9832_v47  ;;  %v1457_v50 = vsel %vm1105_vm2, %v1371_v36, 0.0  ;;  %v1934_v61 = vrot.slane %v1920_v39, %v9828_v44  ;;  %v1935_v51 = vcombine.high %v1927_v40, %v1927_v40  ;;  %v9208_v36 = vld [vmem:[%s9933_s20 + $0x1a0] sm:$0xff] }
 0x15e   : > { %v2180_v58 = vrot.slane %v1927_v40, %v9832_v47  ;;  %v1459_v52 = vsel %vm1105_vm2, %v1388_v30, 0.0  ;;  %v2176_v59 = vrot.slane %v1912_v26, %v9832_v47  ;;  %v2443_v63 = vcombine.low %v2164_v41, %v2168_v49  ;;  %v10344_v30 = vpop.f32.mrb[15].mxu0 }
 0x15f   : > { %v462_v0 = vcombine.high %v9902_v42, %v9902_v42  ;;  %v1936_v38 = vcombine.high %v1934_v61, %v1934_v61  ;;  %v2184_v4 = vrot.slane %v1934_v61, %v9832_v47  ;;  %v2188_v5 = vrot.slane %v1935_v51, %v9832_v47 }
 0x160   : > { %v711_v8 = vrot.slane %v9902_v42, %v9828_v44  ;;  %v2444_v60 = vcombine.low %v2172_v46, %v2176_v59  ;;  %v2451_v9 = vrot.slane %v2443_v63, %v9834_v48  ;;  %v1550_v13 = vcombine.high %v9904_v43, %v9904_v43 }
 0x161   : > { %v735_v12 = vrot.slane %v462_v0, %v9828_v44  ;;  %v2192_v2 = vrot.slane %v1936_v38, %v9832_v47  ;;  %v2460_v17 = vcombine.low %v2180_v58, %v2184_v4  ;;  %v1799_v10 = vrot.slane %v9904_v43, %v9828_v44  ;;  %v9210_v0 = vld [vmem:[%s9933_s20 + $0x1b0] sm:$0xff] }
 0x162   : > { %v712_v18 = vcombine.high %v711_v8, %v711_v8  ;;  %v719_v21 = vrot.slane %v711_v8, %v9828_v44  ;;  %v2458_v25 = vrot.slane %v2444_v60, %v9834_v48 }
 0x163   : > { %v736_v23 = vcombine.high %v735_v12, %v735_v12  ;;  %v743_v42 = vrot.slane %v735_v12, %v9828_v44  ;;  %v2461_v31 = vcombine.low %v2188_v5, %v2192_v2  ;;  %v2468_v55 = vrot.slane %v2460_v17, %v9834_v48 }
 0x164   : > { %v726_v11 = vrot.slane %v712_v18, %v9828_v44  ;;  %v727_v20 = vcombine.high %v719_v21, %v719_v21  ;;  %v2459_v27 = vcombine.low %v2451_v9, %v2458_v25  ;;  %v1012_v37 = vrot.slane %v719_v21, %v9832_v47  ;;  %v10361_v18 = vpop.f32.mrb[15].mxu1 }
 0x165   : > { %v750_v29 = vrot.slane %v736_v23, %v9828_v44  ;;  %v751_v32 = vcombine.high %v743_v42, %v743_v42  ;;  %v2475_v56 = vrot.slane %v2461_v31, %v9834_v48  ;;  %v1028_v40 = vrot.slane %v743_v42, %v9832_v47 }
 0x166   : > { %v728_v7 = vcombine.high %v726_v11, %v726_v11  ;;  %v1016_v34 = vrot.slane %v726_v11, %v9832_v47  ;;  %v1020_v35 = vrot.slane %v727_v20, %v9832_v47  ;;  %v2545_v43 = vsel %vm2193_vm3, %v2459_v27, %v1457_v50 }
 0x167   : > { %v752_v39 = vcombine.high %v750_v29, %v750_v29  ;;  %v1032_v41 = vrot.slane %v750_v29, %v9832_v47  ;;  %v2476_v26 = vcombine.low %v2468_v55, %v2475_v56  ;;  %v9144_v49 = vadd.f32 %v9948_v28, %v2545_v43 }
 0x168   : > { %v1024_v46 = vrot.slane %v728_v7, %v9832_v47  ;;  %v1036_v61 = vrot.slane %v751_v32, %v9832_v47  ;;  %v1287_v58 = vcombine.low %v1012_v37, %v1016_v34  ;;  %v1800_v59 = vcombine.high %v1799_v10, %v1799_v10 }
 0x169   : > { %v1040_v51 = vrot.slane %v752_v39, %v9832_v47  ;;  %v1304_v50 = vcombine.low %v1028_v40, %v1032_v41  ;;  %v2547_v63 = vsel %vm2193_vm3, %v2476_v26, %v1459_v52  ;;  %v9272_v38 = vadd.f32 %v9208_v36, %v9144_v49 }
 0x16a   : > { %v1288_v4 = vcombine.low %v1020_v35, %v1024_v46  ;;  %v1807_v5 = vrot.slane %v1799_v10, %v9828_v44  ;;  %v9146_v8 = vadd.f32 %v9948_v28, %v2547_v63  ;;  %v1295_v60 = vrot.slane %v1287_v58, %v9834_v48 }
 0x16b   : > { %v1305_v9 = vcombine.low %v1036_v61, %v1040_v51  ;;  %9337 = vst.msk [vmem:[%s9973_s25 + $0x1a0] sm:$0xff] %vm9284_vm4, %v9272_v38  ;;  %v1814_v2 = vrot.slane %v1800_v59, %v9828_v44  ;;  %v1823_v52 = vrot.slane %v1550_v13, %v9828_v44  ;;  %v1312_v25 = vrot.slane %v1304_v50, %v9834_v48 }
 0x16c   : > { %v1302_v12 = vrot.slane %v1288_v4, %v9834_v48  ;;  %v1815_v17 = vcombine.high %v1807_v5, %v1807_v5  ;;  %v9274_v21 = vadd.f32 %v9210_v0, %v9146_v8  ;;  %v2100_v23 = vrot.slane %v1807_v5, %v9832_v47 }
 0x16d   : > { %v1319_v28 = vrot.slane %v1305_v9, %v9834_v48  ;;  %v1816_v10 = vcombine.high %v1814_v2, %v1814_v2  ;;  %v1824_v31 = vcombine.high %v1823_v52, %v1823_v52  ;;  %v1831_v55 = vrot.slane %v1823_v52, %v9828_v44 }
 0x16e   : > { %v1303_v42 = vcombine.low %v1295_v60, %v1302_v12  ;;  %9339 = vst.msk [vmem:[%s9973_s25 + $0x1b0] sm:$0xff] %vm9284_vm4, %v9274_v21  ;;  %v2104_v20 = vrot.slane %v1814_v2, %v9832_v47  ;;  %v10371_v13 = vadd.s32 2, %v9830_v45  ;;  %v2635_v27 = vcombine.high %v9921_v15, %v9921_v15 }
 0x16f   : > { %v1320_v11 = vcombine.low %v1312_v25, %v1319_v28  ;;  %v1838_v29 = vrot.slane %v1824_v31, %v9828_v44  ;;  %v1839_v32 = vcombine.high %v1831_v55, %v1831_v55  ;;  %v2108_v37 = vrot.slane %v1815_v17, %v9832_v47  ;;  %v9192_v25 = vld [vmem:[%s9933_s20 + $0x120] sm:$0xff] }
 0x170   : > { %v2112_v56 = vrot.slane %v1816_v10, %v9832_v47  ;;  %v1441_v7 = vsel %vm1105_vm2, %v1303_v42, 0.0  ;;  %v2375_v35 = vcombine.low %v2100_v23, %v2104_v20  ;;  %v2743_v43 = vrot.slane %v9921_v15, %v9828_v44  ;;  %v10407_v42 = vld [vmem:[%s11900_s3] ss:$0 sm:$0xff] }
 0x171   : > { %v1443_v34 = vsel %vm1105_vm2, %v1320_v11, 0.0  ;;  %v1840_v36 = vcombine.high %v1838_v29, %v1838_v29  ;;  %v2116_v39 = vrot.slane %v1831_v55, %v9832_v47  ;;  %v2120_v40 = vrot.slane %v1838_v29, %v9832_v47 }
 0x172   : > { %v2376_v41 = vcombine.low %v2108_v37, %v2112_v56  ;;  %v2124_v26 = vrot.slane %v1839_v32, %v9832_v47  ;;  %v2744_v49 = vcombine.high %v2743_v43, %v2743_v43  ;;  %v2751_v46 = vrot.slane %v2743_v43, %v9828_v44  ;;  %v10416_v43 = vpop.f32.mrb[16].mxu0 }
 0x173   : > { %v2767_v61 = vrot.slane %v2635_v27, %v9828_v44  ;;  %v2128_v51 = vrot.slane %v1840_v36, %v9832_v47  ;;  %v2383_v58 = vrot.slane %v2375_v35, %v9834_v48  ;;  %v2392_v15 = vcombine.low %v2116_v39, %v2120_v40  ;;  %v9194_v39 = vld [vmem:[%s9933_s20 + $0x130] sm:$0xff] }
 0x174   : > { %v2390_v50 = vrot.slane %v2376_v41, %v9834_v48  ;;  %v2758_v59 = vrot.slane %v2744_v49, %v9828_v44  ;;  %v2759_v63 = vcombine.high %v2751_v46, %v2751_v46  ;;  %v3092_v60 = vrot.slane %v2751_v46, %v9832_v47 }
 0x175   : > { %v2768_v0 = vcombine.high %v2767_v61, %v2767_v61  ;;  %v2775_v38 = vrot.slane %v2767_v61, %v9828_v44  ;;  %v2393_v5 = vcombine.low %v2124_v26, %v2128_v51  ;;  %v2400_v8 = vrot.slane %v2392_v15, %v9834_v48  ;;  %v10432_v15 = vpop.f32.mrb[16].mxu1 }
 0x176   : > { %v2391_v4 = vcombine.low %v2383_v58, %v2390_v50  ;;  %v2760_v9 = vcombine.high %v2758_v59, %v2758_v59  ;;  %v3096_v17 = vrot.slane %v2758_v59, %v9832_v47  ;;  %v3100_v28 = vrot.slane %v2759_v63, %v9832_v47 }
 0x177   : > { %v2782_v12 = vrot.slane %v2768_v0, %v9828_v44  ;;  %v2783_v2 = vcombine.high %v2775_v38, %v2775_v38  ;;  %v2407_v52 = vrot.slane %v2393_v5, %v9834_v48  ;;  %v3108_v23 = vrot.slane %v2775_v38, %v9832_v47 }
 0x178   : > { %v2529_v21 = vsel %vm2193_vm3, %v2391_v4, %v1441_v7  ;;  %v3104_v55 = vrot.slane %v2760_v9, %v9832_v47  ;;  %v3361_v29 = vcombine.low %v3092_v60, %v3096_v17  ;;  %v3723_v32 = vcombine.high %v9923_v16, %v9923_v16 }
 0x179   : > { %v9128_v10 = vadd.f32 %v10407_v42, %v2529_v21  ;;  %v2784_v31 = vcombine.high %v2782_v12, %v2782_v12  ;;  %v3112_v11 = vrot.slane %v2782_v12, %v9832_v47  ;;  %v2408_v20 = vcombine.low %v2400_v8, %v2407_v52 }
 0x17a   : > { %v3116_v27 = vrot.slane %v2783_v2, %v9832_v47  ;;  %v3362_v7 = vcombine.low %v3100_v28, %v3104_v55  ;;  %vm3282_vm5 = vcmp.eq.s32.totalorder %v10371_v13, 2  ;;  %v3831_v40 = vrot.slane %v9923_v16, %v9828_v44 }
 0x17b   : > { %v9256_v37 = vadd.f32 %v9192_v25, %v9128_v10  ;;  %v3120_v56 = vrot.slane %v2784_v31, %v9832_v47  ;;  %v3378_v35 = vcombine.low %v3108_v23, %v3112_v11  ;;  %v2531_v36 = vsel %vm2193_vm3, %v2408_v20, %v1443_v34 }
 0x17c   : > { %v3855_v41 = vrot.slane %v3723_v32, %v9828_v44  ;;  %v9130_v26 = vadd.f32 %v10407_v42, %v2531_v36  ;;  %v3369_v49 = vrot.slane %v3361_v29, %v9834_v48  ;;  %v3376_v46 = vrot.slane %v3362_v7, %v9834_v48 }
 0x17d   : > { %9321 = vst.msk [vmem:[%s9973_s25 + $0x120] sm:$0xff] %vm9284_vm4, %v9256_v37  ;;  %v3379_v61 = vcombine.low %v3116_v27, %v3120_v56  ;;  %v3832_v51 = vcombine.high %v3831_v40, %v3831_v40  ;;  %v3839_v34 = vrot.slane %v3831_v40, %v9828_v44  ;;  %v3386_v63 = vrot.slane %v3378_v35, %v9834_v48 }
 0x17e   : > { %v3856_v58 = vcombine.high %v3855_v41, %v3855_v41  ;;  %v3863_v50 = vrot.slane %v3855_v41, %v9828_v44  ;;  %v9258_v16 = vadd.f32 %v9194_v39, %v9130_v26  ;;  %v3377_v59 = vcombine.low %v3369_v49, %v3376_v46 }
 0x17f   : > { %v3393_v0 = vrot.slane %v3379_v61, %v9834_v48  ;;  %v3846_v38 = vrot.slane %v3832_v51, %v9828_v44  ;;  %v3847_v4 = vcombine.high %v3839_v34, %v3839_v34  ;;  %v4180_v12 = vrot.slane %v3839_v34, %v9832_v47 }
 0x180   : > { %v3870_v5 = vrot.slane %v3856_v58, %v9828_v44  ;;  %v3871_v8 = vcombine.high %v3863_v50, %v3863_v50  ;;  %9323 = vst.msk [vmem:[%s9973_s25 + $0x130] sm:$0xff] %vm9284_vm4, %v9258_v16  ;;  %v3598_v9 = vsel %vm3282_vm5, %v3377_v59, 0.0  ;;  %v4196_v2 = vrot.slane %v3863_v50, %v9832_v47  ;;  %v10471_v16 = vpop.f32.mrb[17].mxu0 }
 0x181   : > { %v3394_v60 = vcombine.low %v3386_v63, %v3393_v0  ;;  %vm4370_vm6 = vcmp.eq.s32.totalorder %v10371_v13, 3  ;;  %v3848_v17 = vcombine.high %v3846_v38, %v3846_v38  ;;  %v4184_v21 = vrot.slane %v3846_v38, %v9832_v47 }
 0x182   : > { %v3872_v52 = vcombine.high %v3870_v5, %v3870_v5  ;;  %v4188_v25 = vrot.slane %v3847_v4, %v9832_v47  ;;  %v4200_v23 = vrot.slane %v3870_v5, %v9832_v47  ;;  %v4204_v10 = vrot.slane %v3871_v8, %v9832_v47 }
 0x183   : > { %v3600_v28 = vsel %vm3282_vm5, %v3394_v60, 0.0  ;;  %v2633_v31 = vcombine.high %v9952_v54, %v9952_v54  ;;  %v4192_v55 = vrot.slane %v3848_v17, %v9832_v47  ;;  %v4449_v20 = vcombine.low %v4180_v12, %v4184_v21  ;;  %v9173_v17 = vld [vmem:[%s9933_s20 + $0x88] sm:$0xff] }
 0x184   : > { %v4208_v11 = vrot.slane %v3872_v52, %v9832_v47  ;;  %v2647_v27 = vrot.slane %v9952_v54, %v9828_v44  ;;  %v4466_v29 = vcombine.low %v4196_v2, %v4200_v23  ;;  %v3721_v37 = vcombine.high %v9994_v6, %v9994_v6  ;;  %v9175_v52 = vld [vmem:[%s9933_s20 + $0x98] sm:$0xff] }
 0x185   : > { %v2671_v32 = vrot.slane %v2633_v31, %v9828_v44  ;;  %v3735_v56 = vrot.slane %v9994_v6, %v9828_v44  ;;  %v4450_v7 = vcombine.low %v4188_v25, %v4192_v55  ;;  %v4457_v35 = vrot.slane %v4449_v20, %v9834_v48 }
 0x186   : > { %v4467_v36 = vcombine.low %v4204_v10, %v4208_v11  ;;  %v2648_v39 = vcombine.high %v2647_v27, %v2647_v27  ;;  %v4474_v40 = vrot.slane %v4466_v29, %v9834_v48  ;;  %v2655_v41 = vrot.slane %v2647_v27, %v9828_v44 }
 0x187   : > { %v2672_v26 = vcombine.high %v2671_v32, %v2671_v32  ;;  %v2679_v54 = vrot.slane %v2671_v32, %v9828_v44  ;;  %v4464_v49 = vrot.slane %v4450_v7, %v9834_v48  ;;  %v3736_v51 = vcombine.high %v3735_v56, %v3735_v56 }
 0x188   : > { %v4481_v46 = vrot.slane %v4467_v36, %v9834_v48  ;;  %v2662_v61 = vrot.slane %v2648_v39, %v9828_v44  ;;  %v2663_v6 = vcombine.high %v2655_v41, %v2655_v41  ;;  %v3028_v50 = vrot.slane %v2655_v41, %v9832_v47  ;;  %v10493_v41 = vpop.f32.mrb[17].mxu1 }
 0x189   : > { %v2686_v34 = vrot.slane %v2672_v26, %v9828_v44  ;;  %v2687_v58 = vcombine.high %v2679_v54, %v2679_v54  ;;  %v4465_v59 = vcombine.low %v4457_v35, %v4464_v49  ;;  %v3044_v8 = vrot.slane %v2679_v54, %v9832_v47 }
 0x18a   : > { %v4482_v63 = vcombine.low %v4474_v40, %v4481_v46  ;;  %v2664_v0 = vcombine.high %v2662_v61, %v2662_v61  ;;  %v3032_v38 = vrot.slane %v2662_v61, %v9832_v47  ;;  %v3036_v5 = vrot.slane %v2663_v6, %v9832_v47 }
 0x18b   : > { %v2688_v4 = vcombine.high %v2686_v34, %v2686_v34  ;;  %v3048_v60 = vrot.slane %v2686_v34, %v9832_v47  ;;  %v4686_v12 = vsel %vm4370_vm6, %v4465_v59, %v3598_v9  ;;  %v3052_v25 = vrot.slane %v2687_v58, %v9832_v47 }
 0x18c   : > { %v4688_v2 = vsel %vm4370_vm6, %v4482_v63, %v3600_v28  ;;  %v3040_v21 = vrot.slane %v2664_v0, %v9832_v47  ;;  %v9109_v23 = vadd.f32 %v10407_v42, %v4686_v12  ;;  %v3293_v55 = vcombine.low %v3028_v50, %v3032_v38 }
 0x18d   : > { %v9111_v10 = vadd.f32 %v10407_v42, %v4688_v2  ;;  %v3056_v31 = vrot.slane %v2688_v4, %v9832_v47  ;;  %v3310_v9 = vcombine.low %v3044_v8, %v3048_v60  ;;  %v3743_v20 = vrot.slane %v3735_v56, %v9828_v44 }
 0x18e   : > { %v3294_v11 = vcombine.low %v3036_v5, %v3040_v21  ;;  %v3750_v28 = vrot.slane %v3736_v51, %v9828_v44  ;;  %v9237_v27 = vadd.f32 %v9173_v17, %v9109_v23  ;;  %v3301_v32 = vrot.slane %v3293_v55, %v9834_v48 }
 0x18f   : > { %v9239_v29 = vadd.f32 %v9175_v52, %v9111_v10  ;;  %v3311_v7 = vcombine.low %v3052_v25, %v3056_v31  ;;  %v3318_v36 = vrot.slane %v3310_v9, %v9834_v48  ;;  %v3751_v39 = vcombine.high %v3743_v20, %v3743_v20 }
 0x190   : > { %v3308_v35 = vrot.slane %v3294_v11, %v9834_v48  ;;  %v3752_v40 = vcombine.high %v3750_v28, %v3750_v28  ;;  %9302 = vst.msk [vmem:[%s9973_s25 + $0x88] sm:$0xff] %vm9284_vm4, %v9237_v27  ;;  %v3759_v26 = vrot.slane %v3721_v37, %v9828_v44  ;;  %v4116_v54 = vrot.slane %v3743_v20, %v9832_v47 }
 0x191   : > { %9304 = vst.msk [vmem:[%s9973_s25 + $0x98] sm:$0xff] %vm9284_vm4, %v9239_v29  ;;  %v3325_v56 = vrot.slane %v3311_v7, %v9834_v48  ;;  %v4120_v49 = vrot.slane %v3750_v28, %v9832_v47  ;;  %v4124_v61 = vrot.slane %v3751_v39, %v9832_v47  ;;  %v2636_v6 = vcombine.high %v10030_v22, %v10030_v22 }
 0x192   : > { %v3309_v46 = vcombine.low %v3301_v32, %v3308_v35  ;;  %v4128_v51 = vrot.slane %v3752_v40, %v9832_v47  ;;  %v3760_v58 = vcombine.high %v3759_v26, %v3759_v26  ;;  %v3767_v50 = vrot.slane %v3759_v26, %v9828_v44  ;;  %v9157_v32 = vld [vmem:[%s9933_s20 + $0x8] sm:$0xff] }
 0x193   : > { %v3326_v34 = vcombine.low %v3318_v36, %v3325_v56  ;;  %v4381_v59 = vcombine.low %v4116_v54, %v4120_v49  ;;  %v2791_v0 = vrot.slane %v10030_v22, %v9828_v44  ;;  %v2815_v38 = vrot.slane %v2636_v6, %v9828_v44  ;;  %v10533_v54 = vpop.f32.mrb[18].mxu0 }
 0x194   : > { %v3582_v37 = vsel %vm3282_vm5, %v3309_v46, 0.0  ;;  %v4382_v63 = vcombine.low %v4124_v61, %v4128_v51  ;;  %v3774_v5 = vrot.slane %v3760_v58, %v9828_v44  ;;  %v3775_v8 = vcombine.high %v3767_v50, %v3767_v50 }
 0x195   : > { %v3584_v4 = vsel %vm3282_vm5, %v3326_v34, 0.0  ;;  %v4132_v60 = vrot.slane %v3767_v50, %v9832_v47  ;;  %v4389_v12 = vrot.slane %v4381_v59, %v9834_v48  ;;  %v2792_v17 = vcombine.high %v2791_v0, %v2791_v0 }
 0x196   : > { %v4396_v2 = vrot.slane %v4382_v63, %v9834_v48  ;;  %v2799_v52 = vrot.slane %v2791_v0, %v9828_v44  ;;  %v3776_v21 = vcombine.high %v3774_v5, %v3774_v5  ;;  %v4136_v22 = vrot.slane %v3774_v5, %v9832_v47 }
 0x197   : > { %v4140_v25 = vrot.slane %v3775_v8, %v9832_v47  ;;  %v2816_v23 = vcombine.high %v2815_v38, %v2815_v38  ;;  %v2806_v31 = vrot.slane %v2792_v17, %v9828_v44  ;;  %v2823_v11 = vrot.slane %v2815_v38, %v9828_v44 }
 0x198   : > { %v4397_v10 = vcombine.low %v4389_v12, %v4396_v2  ;;  %v2807_v55 = vcombine.high %v2799_v52, %v2799_v52  ;;  %v4144_v9 = vrot.slane %v3776_v21, %v9832_v47  ;;  %v4398_v20 = vcombine.low %v4132_v60, %v4136_v22  ;;  %v9159_v22 = vld [vmem:[%s9933_s20 + $0x18] sm:$0xff] }
 0x199   : > { %v2830_v28 = vrot.slane %v2816_v23, %v9828_v44  ;;  %v3124_v27 = vrot.slane %v2799_v52, %v9832_v47  ;;  %v2808_v7 = vcombine.high %v2806_v31, %v2806_v31  ;;  %v2831_v35 = vcombine.high %v2823_v11, %v2823_v11 }
 0x19a   : > { %v4670_v29 = vsel %vm4370_vm6, %v4397_v10, %v3582_v37  ;;  %v3128_v36 = vrot.slane %v2806_v31, %v9832_v47  ;;  %v4399_v39 = vcombine.low %v4140_v25, %v4144_v9  ;;  %v4406_v40 = vrot.slane %v4398_v20, %v9834_v48  ;;  %v10561_v9 = vpop.f32.mrb[18].mxu1 }
 0x19b   : > { %v9093_v56 = vadd.f32 %v10407_v42, %v4670_v29  ;;  %v2832_v26 = vcombine.high %v2830_v28, %v2830_v28  ;;  %v3132_v49 = vrot.slane %v2807_v55, %v9832_v47  ;;  %v3136_v46 = vrot.slane %v2808_v7, %v9832_v47 }
 0x19c   : > { %v3140_v61 = vrot.slane %v2823_v11, %v9832_v47  ;;  %v3144_v51 = vrot.slane %v2830_v28, %v9832_v47  ;;  %v4413_v6 = vrot.slane %v4399_v39, %v9834_v48  ;;  %v3148_v58 = vrot.slane %v2831_v35, %v9832_v47 }
 0x19d   : > { %v9221_v34 = vadd.f32 %v9157_v32, %v9093_v56  ;;  %v3152_v50 = vrot.slane %v2832_v26, %v9832_v47  ;;  %v3395_v59 = vcombine.low %v3124_v27, %v3128_v36  ;;  %v3396_v37 = vcombine.low %v3132_v49, %v3136_v46 }
 0x19e   : > { %v3412_v63 = vcombine.low %v3140_v61, %v3144_v51  ;;  %v3724_v0 = vcombine.high %v10055_v57, %v10055_v57  ;;  %v4414_v38 = vcombine.low %v4406_v40, %v4413_v6  ;;  %v3879_v8 = vrot.slane %v10055_v57, %v9828_v44 }
 0x19f   : > { %9286 = vst.msk [vmem:[%s9973_s25 + $0x8] sm:$0xff] %vm9284_vm4, %v9221_v34  ;;  %v3413_v5 = vcombine.low %v3148_v58, %v3152_v50  ;;  %v2634_v60 = vcombine.high %v10089_v62, %v10089_v62  ;;  %v3403_v12 = vrot.slane %v3395_v59, %v9834_v48  ;;  %v3410_v2 = vrot.slane %v3396_v37, %v9834_v48 }
 0x1a0   : > { %v3420_v17 = vrot.slane %v3412_v63, %v9834_v48  ;;  %v3903_v52 = vrot.slane %v3724_v0, %v9828_v44  ;;  %v4672_v21 = vsel %vm4370_vm6, %v4414_v38, %v3584_v4  ;;  %v3880_v23 = vcombine.high %v3879_v8, %v3879_v8 }
 0x1a1   : > { %v3427_v25 = vrot.slane %v3413_v5, %v9834_v48  ;;  %v3887_v57 = vrot.slane %v3879_v8, %v9828_v44  ;;  %v9095_v10 = vadd.f32 %v10407_v42, %v4672_v21  ;;  %v3411_v31 = vcombine.low %v3403_v12, %v3410_v2 }
 0x1a2   : > { %v3904_v55 = vcombine.high %v3903_v52, %v3903_v52  ;;  %v3911_v11 = vrot.slane %v3903_v52, %v9828_v44  ;;  %v3894_v28 = vrot.slane %v3880_v23, %v9828_v44  ;;  %v2695_v34 = vrot.slane %v10089_v62, %v9828_v44 }
 0x1a3   : > { %v3428_v20 = vcombine.low %v3420_v17, %v3427_v25  ;;  %v3895_v27 = vcombine.high %v3887_v57, %v3887_v57  ;;  %v4212_v4 = vrot.slane %v3887_v57, %v9832_v47  ;;  %v9223_v29 = vadd.f32 %v9159_v22, %v9095_v10  ;;  %v10596_v10 = vpop.f32.mrb[19].mxu0 }
 0x1a4   : > { %v3602_v32 = vsel %vm3282_vm5, %v3411_v31, 0.0  ;;  %v3918_v7 = vrot.slane %v3904_v55, %v9828_v44  ;;  %v3919_v35 = vcombine.high %v3911_v11, %v3911_v11  ;;  %v3896_v39 = vcombine.high %v3894_v28, %v3894_v28 }
 0x1a5   : > { %v3604_v36 = vsel %vm3282_vm5, %v3428_v20, 0.0  ;;  %v4216_v40 = vrot.slane %v3894_v28, %v9832_v47  ;;  %v4220_v56 = vrot.slane %v3895_v27, %v9832_v47  ;;  %9288 = vst.msk [vmem:[%s9973_s25 + $0x18] sm:$0xff] %vm9284_vm4, %v9223_v29  ;;  %v4228_v49 = vrot.slane %v3911_v11, %v9832_v47 }
 0x1a6   : > { %v3920_v26 = vcombine.high %v3918_v7, %v3918_v7  ;;  %v4232_v46 = vrot.slane %v3918_v7, %v9832_v47  ;;  %v4236_v61 = vrot.slane %v3919_v35, %v9832_v47  ;;  %v4224_v51 = vrot.slane %v3896_v39, %v9832_v47  ;;  %v9177_v35 = vld [vmem:[%s9933_s20 + $0xa8] sm:$0xff] }
 0x1a7   : > { %v4483_v6 = vcombine.low %v4212_v4, %v4216_v40  ;;  %v2719_v58 = vrot.slane %v2634_v60, %v9828_v44  ;;  %v3722_v37 = vcombine.high %v10112_v33, %v10112_v33  ;;  %v3783_v63 = vrot.slane %v10112_v33, %v9828_v44 }
 0x1a8   : > { %v4240_v50 = vrot.slane %v3920_v26, %v9832_v47  ;;  %v4500_v59 = vcombine.low %v4228_v49, %v4232_v46  ;;  %v4484_v0 = vcombine.low %v4220_v56, %v4224_v51  ;;  %v2696_v5 = vcombine.high %v2695_v34, %v2695_v34  ;;  %v9179_v46 = vld [vmem:[%s9933_s20 + $0xb8] sm:$0xff] }
 0x1a9   : > { %v4491_v38 = vrot.slane %v4483_v6, %v9834_v48  ;;  %v2703_v8 = vrot.slane %v2695_v34, %v9828_v44  ;;  %v2720_v2 = vcombine.high %v2719_v58, %v2719_v58  ;;  %v2727_v60 = vrot.slane %v2719_v58, %v9828_v44 }
 0x1aa   : > { %v4501_v12 = vcombine.low %v4236_v61, %v4240_v50  ;;  %v4508_v62 = vrot.slane %v4500_v59, %v9834_v48  ;;  %v4498_v17 = vrot.slane %v4484_v0, %v9834_v48  ;;  %v2710_v52 = vrot.slane %v2696_v5, %v9828_v44 }
 0x1ab   : > { %v2711_v21 = vcombine.high %v2703_v8, %v2703_v8  ;;  %v3060_v33 = vrot.slane %v2703_v8, %v9832_v47  ;;  %v2734_v25 = vrot.slane %v2720_v2, %v9828_v44  ;;  %v2735_v23 = vcombine.high %v2727_v60, %v2727_v60 }
 0x1ac   : > { %v4515_v22 = vrot.slane %v4501_v12, %v9834_v48  ;;  %v3076_v57 = vrot.slane %v2727_v60, %v9832_v47  ;;  %v4499_v31 = vcombine.low %v4491_v38, %v4498_v17  ;;  %v2712_v55 = vcombine.high %v2710_v52, %v2710_v52 }
 0x1ad   : > { %v3064_v11 = vrot.slane %v2710_v52, %v9832_v47  ;;  %v3068_v20 = vrot.slane %v2711_v21, %v9832_v47  ;;  %v2736_v27 = vcombine.high %v2734_v25, %v2734_v25  ;;  %v3080_v4 = vrot.slane %v2734_v25, %v9832_v47 }
 0x1ae   : > { %v4516_v28 = vcombine.low %v4508_v62, %v4515_v22  ;;  %v3084_v29 = vrot.slane %v2735_v23, %v9832_v47  ;;  %v4690_v7 = vsel %vm4370_vm6, %v4499_v31, %v3602_v32  ;;  %v3072_v39 = vrot.slane %v2712_v55, %v9832_v47  ;;  %v10618_v62 = vpop.f32.mrb[19].mxu1 }
 0x1af   : > { %v3327_v40 = vcombine.low %v3060_v33, %v3064_v11  ;;  %v3784_v56 = vcombine.high %v3783_v63, %v3783_v63  ;;  %v9113_v49 = vadd.f32 %v10407_v42, %v4690_v7  ;;  %v3088_v61 = vrot.slane %v2736_v27, %v9832_v47 }
 0x1b0   : > { %v4692_v26 = vsel %vm4370_vm6, %v4516_v28, %v3604_v36  ;;  %v3344_v51 = vcombine.low %v3076_v57, %v3080_v4  ;;  %v3328_v34 = vcombine.low %v3068_v20, %v3072_v39  ;;  %v3791_v58 = vrot.slane %v3783_v63, %v9828_v44 }
 0x1b1   : > { %v9115_v6 = vadd.f32 %v10407_v42, %v4692_v26  ;;  %v3335_v32 = vrot.slane %v3327_v40, %v9834_v48  ;;  %v9241_v50 = vadd.f32 %v9177_v35, %v9113_v49  ;;  %v3345_v59 = vcombine.low %v3084_v29, %v3088_v61 }
 0x1b2   : > { %v3352_v0 = vrot.slane %v3344_v51, %v9834_v48  ;;  %v3798_v36 = vrot.slane %v3784_v56, %v9828_v44  ;;  %v3342_v5 = vrot.slane %v3328_v34, %v9834_v48  ;;  %v3799_v8 = vcombine.high %v3791_v58, %v3791_v58 }
 0x1b3   : > { %v9243_v38 = vadd.f32 %v9179_v46, %v9115_v6  ;;  %v3807_v12 = vrot.slane %v3722_v37, %v9828_v44  ;;  %9306 = vst.msk [vmem:[%s9973_s25 + $0xa8] sm:$0xff] %vm9284_vm4, %v9241_v50  ;;  %v3359_v2 = vrot.slane %v3345_v59, %v9834_v48  ;;  %v4148_v63 = vrot.slane %v3791_v58, %v9832_v47 }
 0x1b4   : > { %v3800_v60 = vcombine.high %v3798_v36, %v3798_v36  ;;  %v4152_v17 = vrot.slane %v3798_v36, %v9832_v47  ;;  %v3343_v52 = vcombine.low %v3335_v32, %v3342_v5  ;;  %v4156_v22 = vrot.slane %v3799_v8, %v9832_v47  ;;  %v9161_v8 = vld [vmem:[%s9933_s20 + $0x28] sm:$0xff] }
 0x1b5   : > { %9308 = vst.msk [vmem:[%s9973_s25 + $0xb8] sm:$0xff] %vm9284_vm4, %v9243_v38  ;;  %v3808_v21 = vcombine.high %v3807_v12, %v3807_v12  ;;  %v3815_v33 = vrot.slane %v3807_v12, %v9828_v44  ;;  %v3360_v37 = vcombine.low %v3352_v0, %v3359_v2  ;;  %v2639_v57 = vcombine.high %v10164_v1, %v10164_v1 }
 0x1b6   : > { %v4160_v25 = vrot.slane %v3800_v60, %v9832_v47  ;;  %v4415_v23 = vcombine.low %v4148_v63, %v4152_v17  ;;  %v3586_v31 = vsel %vm3282_vm5, %v3343_v52, 0.0  ;;  %v2935_v29 = vrot.slane %v10164_v1, %v9828_v44 }
 0x1b7   : > { %v3822_v55 = vrot.slane %v3808_v21, %v9828_v44  ;;  %v3823_v11 = vcombine.high %v3815_v33, %v3815_v33  ;;  %v4164_v20 = vrot.slane %v3815_v33, %v9832_v47  ;;  %v3588_v28 = vsel %vm3282_vm5, %v3360_v37, 0.0 }
 0x1b8   : > { %v4416_v27 = vcombine.low %v4156_v22, %v4160_v25  ;;  %v4423_v4 = vrot.slane %v4415_v23, %v9834_v48  ;;  %v2959_v40 = vrot.slane %v2639_v57, %v9828_v44  ;;  %v2936_v26 = vcombine.high %v2935_v29, %v2935_v29 }
 0x1b9   : > { %v3824_v7 = vcombine.high %v3822_v55, %v3822_v55  ;;  %v4168_v35 = vrot.slane %v3822_v55, %v9832_v47  ;;  %v4172_v39 = vrot.slane %v3823_v11, %v9832_v47  ;;  %v2943_v49 = vrot.slane %v2935_v29, %v9828_v44  ;;  %v10668_v11 = vpop.f32.mrb[20].mxu0 }
 0x1ba   : > { %v4430_v56 = vrot.slane %v4416_v27, %v9834_v48  ;;  %v3727_v46 = vcombine.high %v10176_v19, %v10176_v19  ;;  %v2960_v1 = vcombine.high %v2959_v40, %v2959_v40  ;;  %v2967_v6 = vrot.slane %v2959_v40, %v9828_v44 }
 0x1bb   : > { %v4176_v61 = vrot.slane %v3824_v7, %v9832_v47  ;;  %v4432_v51 = vcombine.low %v4164_v20, %v4168_v35  ;;  %v2950_v32 = vrot.slane %v2936_v26, %v9828_v44  ;;  %v2951_v58 = vcombine.high %v2943_v49, %v2943_v49  ;;  %v9163_v35 = vld [vmem:[%s9933_s20 + $0x38] sm:$0xff] }
 0x1bc   : > { %v4431_v34 = vcombine.low %v4423_v4, %v4430_v56  ;;  %v3220_v50 = vrot.slane %v2943_v49, %v9832_v47  ;;  %v2974_v36 = vrot.slane %v2960_v1, %v9828_v44  ;;  %v2975_v38 = vcombine.high %v2967_v6, %v2967_v6 }
 0x1bd   : > { %v4433_v59 = vcombine.low %v4172_v39, %v4176_v61  ;;  %v4440_v0 = vrot.slane %v4432_v51, %v9834_v48  ;;  %v2952_v12 = vcombine.high %v2950_v32, %v2950_v32  ;;  %v3224_v2 = vrot.slane %v2950_v32, %v9832_v47  ;;  %v10681_v51 = vpop.f32.mrb[20].mxu1 }
 0x1be   : > { %v4674_v5 = vsel %vm4370_vm6, %v4431_v34, %v3586_v31  ;;  %v3228_v60 = vrot.slane %v2951_v58, %v9832_v47  ;;  %v2976_v52 = vcombine.high %v2974_v36, %v2974_v36  ;;  %v3236_v21 = vrot.slane %v2967_v6, %v9832_v47 }
 0x1bf   : > { %v4447_v63 = vrot.slane %v4433_v59, %v9834_v48  ;;  %v9097_v17 = vadd.f32 %v10407_v42, %v4674_v5  ;;  %v3232_v33 = vrot.slane %v2952_v12, %v9832_v47  ;;  %v3240_v22 = vrot.slane %v2974_v36, %v9832_v47 }
 0x1c0   : > { %v3244_v37 = vrot.slane %v2975_v38, %v9832_v47  ;;  %v3497_v25 = vcombine.low %v3220_v50, %v3224_v2  ;;  %v3248_v31 = vrot.slane %v2976_v52, %v9832_v47  ;;  %v4023_v55 = vrot.slane %v10176_v19, %v9828_v44 }
 0x1c1   : > { %v4448_v23 = vcombine.low %v4440_v0, %v4447_v63  ;;  %v9225_v57 = vadd.f32 %v9161_v8, %v9097_v17  ;;  %v3498_v20 = vcombine.low %v3228_v60, %v3232_v33  ;;  %v3514_v4 = vcombine.low %v3236_v21, %v3240_v22 }
 0x1c2   : > { %v3505_v27 = vrot.slane %v3497_v25, %v9834_v48  ;;  %v4047_v29 = vrot.slane %v3727_v46, %v9828_v44  ;;  %v3515_v39 = vcombine.low %v3244_v37, %v3248_v31  ;;  %v4024_v40 = vcombine.high %v4023_v55, %v4023_v55 }
 0x1c3   : > { %v4676_v7 = vsel %vm4370_vm6, %v4448_v23, %v3588_v28  ;;  %9290 = vst.msk [vmem:[%s9973_s25 + $0x28] sm:$0xff] %vm9284_vm4, %v9225_v57  ;;  %v4031_v56 = vrot.slane %v4023_v55, %v9828_v44  ;;  %v3512_v26 = vrot.slane %v3498_v20, %v9834_v48  ;;  %v3522_v49 = vrot.slane %v3514_v4, %v9834_v48 }
 0x1c4   : > { %v9099_v19 = vadd.f32 %v10407_v42, %v4676_v7  ;;  %v4048_v61 = vcombine.high %v4047_v29, %v4047_v29  ;;  %v3529_v46 = vrot.slane %v3515_v39, %v9834_v48  ;;  %v4038_v28 = vrot.slane %v4024_v40, %v9828_v44 }
 0x1c5   : > { %v4039_v1 = vcombine.high %v4031_v56, %v4031_v56  ;;  %v4055_v6 = vrot.slane %v4047_v29, %v9828_v44  ;;  %v3513_v32 = vcombine.low %v3505_v27, %v3512_v26  ;;  %v4308_v50 = vrot.slane %v4031_v56, %v9832_v47 }
 0x1c6   : > { %v9227_v34 = vadd.f32 %v9163_v35, %v9099_v19  ;;  %v4062_v58 = vrot.slane %v4048_v61, %v9828_v44  ;;  %v3530_v59 = vcombine.low %v3522_v49, %v3529_v46  ;;  %v4040_v0 = vcombine.high %v4038_v28, %v4038_v28  ;;  %v10719_v46 = vpop.f32.mrb[21].mxu0 }
 0x1c7   : > { %v4063_v36 = vcombine.high %v4055_v6, %v4055_v6  ;;  %v4312_v38 = vrot.slane %v4038_v28, %v9832_v47  ;;  %v3630_v5 = vsel %vm3282_vm5, %v3513_v32, 0.0  ;;  %v4316_v12 = vrot.slane %v4039_v1, %v9832_v47 }
 0x1c8   : > { %9292 = vst.msk [vmem:[%s9973_s25 + $0x38] sm:$0xff] %vm9284_vm4, %v9227_v34  ;;  %v4064_v8 = vcombine.high %v4062_v58, %v4062_v58  ;;  %v4324_v2 = vrot.slane %v4055_v6, %v9832_v47  ;;  %v3632_v60 = vsel %vm3282_vm5, %v3530_v59, 0.0  ;;  %v4320_v63 = vrot.slane %v4040_v0, %v9832_v47 }
 0x1c9   : > { %v4328_v17 = vrot.slane %v4062_v58, %v9832_v47  ;;  %v4332_v52 = vrot.slane %v4063_v36, %v9832_v47  ;;  %v4585_v33 = vcombine.low %v4308_v50, %v4312_v38  ;;  %v2637_v22 = vcombine.high %v10211_v14, %v10211_v14  ;;  %v9205_v58 = vld [vmem:[%s9933_s20 + $0x188] sm:$0xff] }
 0x1ca   : > { %v4336_v21 = vrot.slane %v4064_v8, %v9832_v47  ;;  %v2839_v37 = vrot.slane %v10211_v14, %v9828_v44  ;;  %v4586_v25 = vcombine.low %v4316_v12, %v4320_v63  ;;  %v3725_v57 = vcombine.high %v10239_v24, %v10239_v24  ;;  %v9207_v8 = vld [vmem:[%s9933_s20 + $0x198] sm:$0xff] }
 0x1cb   : > { %v4602_v23 = vcombine.low %v4324_v2, %v4328_v17  ;;  %v3927_v31 = vrot.slane %v10239_v24, %v9828_v44  ;;  %v4593_v55 = vrot.slane %v4585_v33, %v9834_v48  ;;  %v2863_v14 = vrot.slane %v2637_v22, %v9828_v44 }
 0x1cc   : > { %v4603_v20 = vcombine.low %v4332_v52, %v4336_v21  ;;  %v2840_v27 = vcombine.high %v2839_v37, %v2839_v37  ;;  %v2847_v4 = vrot.slane %v2839_v37, %v9828_v44  ;;  %v4600_v29 = vrot.slane %v4586_v25, %v9834_v48 }
 0x1cd   : > { %v4610_v7 = vrot.slane %v4602_v23, %v9834_v48  ;;  %v3928_v35 = vcombine.high %v3927_v31, %v3927_v31  ;;  %v2864_v26 = vcombine.high %v2863_v14, %v2863_v14  ;;  %v2871_v49 = vrot.slane %v2863_v14, %v9828_v44 }
 0x1ce   : > { %v4617_v39 = vrot.slane %v4603_v20, %v9834_v48  ;;  %v2854_v40 = vrot.slane %v2840_v27, %v9828_v44  ;;  %v2855_v56 = vcombine.high %v2847_v4, %v2847_v4  ;;  %v3156_v24 = vrot.slane %v2847_v4, %v9832_v47 }
 0x1cf   : > { %v4601_v19 = vcombine.low %v4593_v55, %v4600_v29  ;;  %v3935_v61 = vrot.slane %v3927_v31, %v9828_v44  ;;  %v2878_v50 = vrot.slane %v2864_v26, %v9828_v44  ;;  %v2879_v59 = vcombine.high %v2871_v49, %v2871_v49  ;;  %v10744_v29 = vpop.f32.mrb[21].mxu1 }
 0x1d0   : > { %v4618_v28 = vcombine.low %v4610_v7, %v4617_v39  ;;  %v2856_v1 = vcombine.high %v2854_v40, %v2854_v40  ;;  %v3160_v6 = vrot.slane %v2854_v40, %v9832_v47  ;;  %v3164_v34 = vrot.slane %v2855_v56, %v9832_v47 }
 0x1d1   : > { %v4718_v32 = vsel %vm4370_vm6, %v4601_v19, %v3630_v5  ;;  %v3172_v0 = vrot.slane %v2871_v49, %v9832_v47  ;;  %v2880_v17 = vcombine.high %v2878_v50, %v2878_v50  ;;  %v3176_v5 = vrot.slane %v2878_v50, %v9832_v47 }
 0x1d2   : > { %v4720_v36 = vsel %vm4370_vm6, %v4618_v28, %v3632_v60  ;;  %v9141_v38 = vadd.f32 %v10407_v42, %v4718_v32  ;;  %v3168_v12 = vrot.slane %v2856_v1, %v9832_v47  ;;  %v3429_v2 = vcombine.low %v3156_v24, %v3160_v6 }
 0x1d3   : > { %v9143_v63 = vadd.f32 %v10407_v42, %v4720_v36  ;;  %v3180_v52 = vrot.slane %v2879_v59, %v9832_v47  ;;  %v3942_v60 = vrot.slane %v3928_v35, %v9828_v44  ;;  %v3184_v25 = vrot.slane %v2880_v17, %v9832_v47 }
 0x1d4   : > { %v9269_v21 = vadd.f32 %v9205_v58, %v9141_v38  ;;  %v3430_v33 = vcombine.low %v3164_v34, %v3168_v12  ;;  %v3437_v22 = vrot.slane %v3429_v2, %v9834_v48  ;;  %v3446_v23 = vcombine.low %v3172_v0, %v3176_v5 }
 0x1d5   : > { %v9271_v37 = vadd.f32 %v9207_v8, %v9143_v63  ;;  %v3943_v31 = vcombine.high %v3935_v61, %v3935_v61  ;;  %v3944_v20 = vcombine.high %v3942_v60, %v3942_v60  ;;  %v3951_v27 = vrot.slane %v3725_v57, %v9828_v44 }
 0x1d6   : > { %9334 = vst.msk [vmem:[%s9973_s25 + $0x188] sm:$0xff] %vm9284_vm4, %v9269_v21  ;;  %v3444_v55 = vrot.slane %v3430_v33, %v9834_v48  ;;  %v4244_v4 = vrot.slane %v3935_v61, %v9832_v47  ;;  %v3447_v7 = vcombine.low %v3180_v52, %v3184_v25  ;;  %v3454_v14 = vrot.slane %v3446_v23, %v9834_v48 }
 0x1d7   : > { %9336 = vst.msk [vmem:[%s9973_s25 + $0x198] sm:$0xff] %vm9284_vm4, %v9271_v37  ;;  %v4248_v35 = vrot.slane %v3942_v60, %v9832_v47  ;;  %v4252_v39 = vrot.slane %v3943_v31, %v9832_v47  ;;  %v3952_v56 = vcombine.high %v3951_v27, %v3951_v27  ;;  %v3959_v24 = vrot.slane %v3951_v27, %v9828_v44 }
 0x1d8   : > { %v3445_v40 = vcombine.low %v3437_v22, %v3444_v55  ;;  %v4256_v19 = vrot.slane %v3944_v20, %v9832_v47  ;;  %v3461_v57 = vrot.slane %v3447_v7, %v9834_v48  ;;  %v2640_v49 = vcombine.high %v10275_v53, %v10275_v53  ;;  %v10777_v20 = vpop.f32.mrb[22].mxu0 }
 0x1d9   : > { %v4517_v26 = vcombine.low %v4244_v4, %v4248_v35  ;;  %v2983_v61 = vrot.slane %v10275_v53, %v9828_v44  ;;  %v3966_v1 = vrot.slane %v3952_v56, %v9828_v44  ;;  %v3967_v6 = vcombine.high %v3959_v24, %v3959_v24  ;;  %v9189_v4 = vld [vmem:[%s9933_s20 + $0x108] sm:$0xff] }
 0x1da   : > { %v3614_v28 = vsel %vm3282_vm5, %v3445_v40, 0.0  ;;  %v4260_v34 = vrot.slane %v3959_v24, %v9832_v47  ;;  %v3462_v32 = vcombine.low %v3454_v14, %v3461_v57  ;;  %v4518_v58 = vcombine.low %v4252_v39, %v4256_v19 }
 0x1db   : > { %v4525_v50 = vrot.slane %v4517_v26, %v9834_v48  ;;  %v2984_v59 = vcombine.high %v2983_v61, %v2983_v61  ;;  %v3968_v0 = vcombine.high %v3966_v1, %v3966_v1  ;;  %v4264_v36 = vrot.slane %v3966_v1, %v9832_v47 }
 0x1dc   : > { %v4268_v38 = vrot.slane %v3967_v6, %v9832_v47  ;;  %v2991_v53 = vrot.slane %v2983_v61, %v9828_v44  ;;  %v3616_v8 = vsel %vm3282_vm5, %v3462_v32, 0.0  ;;  %v4532_v12 = vrot.slane %v4518_v58, %v9834_v48 }
 0x1dd   : > { %v2998_v2 = vrot.slane %v2984_v59, %v9828_v44  ;;  %v3007_v63 = vrot.slane %v2640_v49, %v9828_v44  ;;  %v4272_v17 = vrot.slane %v3968_v0, %v9832_v47  ;;  %v4534_v5 = vcombine.low %v4260_v34, %v4264_v36  ;;  %v9191_v0 = vld [vmem:[%s9933_s20 + $0x118] sm:$0xff] }
 0x1de   : > { %v2999_v52 = vcombine.high %v2991_v53, %v2991_v53  ;;  %v3252_v21 = vrot.slane %v2991_v53, %v9832_v47  ;;  %v4533_v33 = vcombine.low %v4525_v50, %v4532_v12  ;;  %v3728_v6 = vcombine.high %v10299_v3, %v10299_v3 }
 0x1df   : > { %v3000_v22 = vcombine.high %v2998_v2, %v2998_v2  ;;  %v3008_v60 = vcombine.high %v3007_v63, %v3007_v63  ;;  %v3015_v37 = vrot.slane %v3007_v63, %v9828_v44  ;;  %v4535_v25 = vcombine.low %v4268_v38, %v4272_v17 }
 0x1e0   : > { %v4542_v23 = vrot.slane %v4534_v5, %v9834_v48  ;;  %v3256_v31 = vrot.slane %v2998_v2, %v9832_v47  ;;  %v3260_v55 = vrot.slane %v2999_v52, %v9832_v47  ;;  %v4702_v27 = vsel %vm4370_vm6, %v4533_v33, %v3614_v28 }
 0x1e1   : > { %v3022_v7 = vrot.slane %v3008_v60, %v9828_v44  ;;  %v3023_v14 = vcombine.high %v3015_v37, %v3015_v37  ;;  %v3264_v35 = vrot.slane %v3000_v22, %v9832_v47  ;;  %v4549_v39 = vrot.slane %v4535_v25, %v9834_v48 }
 0x1e2   : > { %v9125_v40 = vadd.f32 %v10407_v42, %v4702_v27  ;;  %v3268_v56 = vrot.slane %v3015_v37, %v9832_v47  ;;  %v3531_v24 = vcombine.low %v3252_v21, %v3256_v31  ;;  %v4071_v50 = vrot.slane %v10299_v3, %v9828_v44  ;;  %v10810_v21 = vpop.f32.mrb[22].mxu1 }
 0x1e3   : > { %v3024_v19 = vcombine.high %v3022_v7, %v3022_v7  ;;  %v3272_v57 = vrot.slane %v3022_v7, %v9832_v47  ;;  %v3276_v26 = vrot.slane %v3023_v14, %v9832_v47  ;;  %v3532_v49 = vcombine.low %v3260_v55, %v3264_v35 }
 0x1e4   : > { %v4550_v61 = vcombine.low %v4542_v23, %v4549_v39  ;;  %v9253_v28 = vadd.f32 %v9189_v4, %v9125_v40  ;;  %v3539_v1 = vrot.slane %v3531_v24, %v9834_v48  ;;  %v4095_v36 = vrot.slane %v3728_v6, %v9828_v44 }
 0x1e5   : > { %v3280_v34 = vrot.slane %v3024_v19, %v9832_v47  ;;  %v3546_v32 = vrot.slane %v3532_v49, %v9834_v48  ;;  %v3548_v58 = vcombine.low %v3268_v56, %v3272_v57  ;;  %v2638_v38 = vcombine.high %v10344_v30, %v10344_v30 }
 0x1e6   : > { %v4704_v59 = vsel %vm4370_vm6, %v4550_v61, %v3616_v8  ;;  %9318 = vst.msk [vmem:[%s9973_s25 + $0x108] sm:$0xff] %vm9284_vm4, %v9253_v28  ;;  %v2887_v53 = vrot.slane %v10344_v30, %v9828_v44  ;;  %v4072_v17 = vcombine.high %v4071_v50, %v4071_v50  ;;  %v4079_v8 = vrot.slane %v4071_v50, %v9828_v44 }
 0x1e7   : > { %v9127_v12 = vadd.f32 %v10407_v42, %v4704_v59  ;;  %v3547_v2 = vcombine.low %v3539_v1, %v3546_v32  ;;  %v3549_v63 = vcombine.low %v3276_v26, %v3280_v34  ;;  %v3556_v3 = vrot.slane %v3548_v58, %v9834_v48 }
 0x1e8   : > { %v4096_v5 = vcombine.high %v4095_v36, %v4095_v36  ;;  %v4103_v52 = vrot.slane %v4095_v36, %v9828_v44  ;;  %v2888_v42 = vcombine.high %v2887_v53, %v2887_v53  ;;  %v4086_v60 = vrot.slane %v4072_v17, %v9828_v44 }
 0x1e9   : > { %v9255_v33 = vadd.f32 %v9191_v0, %v9127_v12  ;;  %v3563_v22 = vrot.slane %v3549_v63, %v9834_v48  ;;  %v3634_v30 = vsel %vm3282_vm5, %v3547_v2, 0.0  ;;  %v4087_v37 = vcombine.high %v4079_v8, %v4079_v8 }
 0x1ea   : > { %v4110_v25 = vrot.slane %v4096_v5, %v9828_v44  ;;  %v4111_v23 = vcombine.high %v4103_v52, %v4103_v52  ;;  %v4340_v55 = vrot.slane %v4079_v8, %v9832_v47  ;;  %v4356_v27 = vrot.slane %v4103_v52, %v9832_v47 }
 0x1eb   : > { %9320 = vst.msk [vmem:[%s9973_s25 + $0x118] sm:$0xff] %vm9284_vm4, %v9255_v33  ;;  %v3564_v31 = vcombine.low %v3556_v3, %v3563_v22  ;;  %v2895_v4 = vrot.slane %v2887_v53, %v9828_v44  ;;  %v4088_v7 = vcombine.high %v4086_v60, %v4086_v60  ;;  %v4344_v35 = vrot.slane %v4086_v60, %v9832_v47  ;;  %v10845_v33 = vpop.f32.mrb[23].mxu0 }
 0x1ec   : > { %v4112_v14 = vcombine.high %v4110_v25, %v4110_v25  ;;  %v4348_v39 = vrot.slane %v4087_v37, %v9832_v47  ;;  %v4360_v56 = vrot.slane %v4110_v25, %v9832_v47  ;;  %v4364_v24 = vrot.slane %v4111_v23, %v9832_v47 }
 0x1ed   : > { %v3636_v40 = vsel %vm3282_vm5, %v3564_v31, 0.0  ;;  %v2902_v19 = vrot.slane %v2888_v42, %v9828_v44  ;;  %v4352_v57 = vrot.slane %v4088_v7, %v9832_v47  ;;  %v4619_v49 = vcombine.low %v4340_v55, %v4344_v35  ;;  %v9209_v7 = vld [vmem:[%s9933_s20 + $0x1a8] sm:$0xff] }
 0x1ee   : > { %v4368_v26 = vrot.slane %v4112_v14, %v9832_v47  ;;  %v2903_v61 = vcombine.high %v2895_v4, %v2895_v4  ;;  %v4636_v28 = vcombine.low %v4356_v27, %v4360_v56  ;;  %v2911_v6 = vrot.slane %v2638_v38, %v9828_v44  ;;  %v9211_v14 = vld [vmem:[%s9933_s20 + $0x1b8] sm:$0xff]  ;;  %v10863_v56 = vld [vmem:[%s11900_s3] ss:$0 sm:$0xff] }
 0x1ef   : > { %v2904_v1 = vcombine.high %v2902_v19, %v2902_v19  ;;  %v3188_v34 = vrot.slane %v2895_v4, %v9832_v47  ;;  %v4620_v32 = vcombine.low %v4348_v39, %v4352_v57  ;;  %v4627_v58 = vrot.slane %v4619_v49, %v9834_v48 }
 0x1f0   : > { %v4637_v50 = vcombine.low %v4364_v24, %v4368_v26  ;;  %v3192_v59 = vrot.slane %v2902_v19, %v9832_v47  ;;  %v4644_v0 = vrot.slane %v4636_v28, %v9834_v48  ;;  %v2912_v36 = vcombine.high %v2911_v6, %v2911_v6 }
 0x1f1   : > { %v2919_v53 = vrot.slane %v2911_v6, %v9828_v44  ;;  %v3196_v12 = vrot.slane %v2903_v61, %v9832_v47  ;;  %v4634_v2 = vrot.slane %v4620_v32, %v9834_v48  ;;  %v3200_v38 = vrot.slane %v2904_v1, %v9832_v47 }
 0x1f2   : > { %v4651_v63 = vrot.slane %v4637_v50, %v9834_v48  ;;  %v3463_v3 = vcombine.low %v3188_v34, %v3192_v59  ;;  %v2926_v17 = vrot.slane %v2912_v36, %v9828_v44  ;;  %v3726_v52 = vcombine.high %v10361_v18, %v10361_v18  ;;  %v10872_v50 = vpop.f32.mrb[23].mxu1 }
 0x1f3   : > { %v2927_v8 = vcombine.high %v2919_v53, %v2919_v53  ;;  %v3204_v5 = vrot.slane %v2919_v53, %v9832_v47  ;;  %v4635_v22 = vcombine.low %v4627_v58, %v4634_v2  ;;  %v3464_v60 = vcombine.low %v3196_v12, %v3200_v38 }
 0x1f4   : > { %v4652_v42 = vcombine.low %v4644_v0, %v4651_v63  ;;  %v3471_v37 = vrot.slane %v3463_v3, %v9834_v48  ;;  %v2928_v25 = vcombine.high %v2926_v17, %v2926_v17  ;;  %v3208_v23 = vrot.slane %v2926_v17, %v9832_v47 }
 0x1f5   : > { %v3212_v31 = vrot.slane %v2927_v8, %v9832_v47  ;;  %v3975_v55 = vrot.slane %v10361_v18, %v9828_v44  ;;  %v4722_v27 = vsel %vm4370_vm6, %v4635_v22, %v3634_v30  ;;  %v3478_v35 = vrot.slane %v3464_v60, %v9834_v48 }
 0x1f6   : > { %v4724_v4 = vsel %vm4370_vm6, %v4652_v42, %v3636_v40  ;;  %v3999_v39 = vrot.slane %v3726_v52, %v9828_v44  ;;  %v9145_v24 = vadd.f32 %v10863_v56, %v4722_v27  ;;  %v3216_v30 = vrot.slane %v2928_v25, %v9832_v47 }
 0x1f7   : > { %v9147_v18 = vadd.f32 %v10863_v56, %v4724_v4  ;;  %v3480_v40 = vcombine.low %v3204_v5, %v3208_v23  ;;  %v3479_v19 = vcombine.low %v3471_v37, %v3478_v35  ;;  %v3976_v57 = vcombine.high %v3975_v55, %v3975_v55 }
 0x1f8   : > { %v3983_v26 = vrot.slane %v3975_v55, %v9828_v44  ;;  %v4000_v49 = vcombine.high %v3999_v39, %v3999_v39  ;;  %v9273_v61 = vadd.f32 %v9209_v7, %v9145_v24  ;;  %v3481_v1 = vcombine.low %v3212_v31, %v3216_v30 }
 0x1f9   : > { %v9275_v28 = vadd.f32 %v9211_v14, %v9147_v18  ;;  %v3488_v6 = vrot.slane %v3480_v40, %v9834_v48  ;;  %v3990_v34 = vrot.slane %v3976_v57, %v9828_v44  ;;  %v4007_v58 = vrot.slane %v3999_v39, %v9828_v44 }
 0x1fa   : > { %v3991_v32 = vcombine.high %v3983_v26, %v3983_v26  ;;  %9338 = vst.msk [vmem:[%s9973_s25 + $0x1a8] sm:$0xff] %vm9284_vm4, %v9273_v61  ;;  %v3495_v59 = vrot.slane %v3481_v1, %v9834_v48  ;;  %v3618_v0 = vsel %vm3282_vm5, %v3479_v19, 0.0  ;;  %v4014_v36 = vrot.slane %v4000_v49, %v9828_v44 }
 0x1fb   : > { %9340 = vst.msk [vmem:[%s9973_s25 + $0x1b8] sm:$0xff] %vm9284_vm4, %v9275_v28  ;;  %v4276_v53 = vrot.slane %v3983_v26, %v9832_v47  ;;  %v3992_v12 = vcombine.high %v3990_v34, %v3990_v34  ;;  %v4015_v2 = vcombine.high %v4007_v58, %v4007_v58  ;;  %v4280_v63 = vrot.slane %v3990_v34, %v9832_v47 }
 0x1fc   : > { %v10885_v38 = vadd.s32 4, %v9830_v45  ;;  %v3496_v3 = vcombine.low %v3488_v6, %v3495_v59  ;;  %v4016_v17 = vcombine.high %v4014_v36, %v4014_v36  ;;  %v4292_v8 = vrot.slane %v4007_v58, %v9832_v47 }
 0x1fd   : > { %v4296_v5 = vrot.slane %v4014_v36, %v9832_v47  ;;  %v4284_v52 = vrot.slane %v3991_v32, %v9832_v47  ;;  %v4288_v22 = vrot.slane %v3992_v12, %v9832_v47  ;;  %v4551_v42 = vcombine.low %v4276_v53, %v4280_v63  ;;  %v9193_v53 = vld [vmem:[%s9933_s20 + $0x128] sm:$0xff] }
 0x1fe   : > { %v4811_v60 = vcombine.high %v10416_v43, %v10416_v43  ;;  %v4300_v37 = vrot.slane %v4015_v2, %v9832_v47  ;;  %v4304_v25 = vrot.slane %v4016_v17, %v9832_v47  ;;  %v4919_v31 = vrot.slane %v10416_v43, %v9828_v44 }
 0x1ff   : > { %v4568_v23 = vcombine.low %v4292_v8, %v4296_v5  ;;  %v3620_v55 = vsel %vm3282_vm5, %v3496_v3, 0.0  ;;  %v4552_v27 = vcombine.low %v4284_v52, %v4288_v22  ;;  %v4559_v4 = vrot.slane %v4551_v42, %v9834_v48  ;;  %v9195_v8 = vld [vmem:[%s9933_s20 + $0x138] sm:$0xff]  ;;  %v10924_v22 = vpop.f32.mrb[24].mxu0 }
 0x200   : > { %v4943_v7 = vrot.slane %v4811_v60, %v9828_v44  ;;  %v4569_v14 = vcombine.low %v4300_v37, %v4304_v25  ;;  %v4920_v39 = vcombine.high %v4919_v31, %v4919_v31  ;;  %v4927_v24 = vrot.slane %v4919_v31, %v9828_v44 }
 0x201   : > { %v4576_v35 = vrot.slane %v4568_v23, %v9834_v48  ;;  %v4566_v18 = vrot.slane %v4552_v27, %v9834_v48  ;;  %v5899_v40 = vcombine.high %v10432_v15, %v10432_v15  ;;  %v6007_v37 = vrot.slane %v10432_v15, %v9828_v44 }
 0x202   : > { %v4944_v30 = vcombine.high %v4943_v7, %v4943_v7  ;;  %v4951_v43 = vrot.slane %v4943_v7, %v9828_v44  ;;  %v4583_v19 = vrot.slane %v4569_v14, %v9834_v48  ;;  %v4934_v57 = vrot.slane %v4920_v39, %v9828_v44 }
 0x203   : > { %v4935_v26 = vcombine.high %v4927_v24, %v4927_v24  ;;  %v5268_v49 = vrot.slane %v4927_v24, %v9832_v47  ;;  %v4567_v61 = vcombine.low %v4559_v4, %v4566_v18  ;;  %vm5459_vm7 = vcmp.eq.s32.totalorder %v10885_v38, 4 }
 0x204   : > { %v4958_v28 = vrot.slane %v4944_v30, %v9828_v44  ;;  %v4959_v1 = vcombine.high %v4951_v43, %v4951_v43  ;;  %v5284_v6 = vrot.slane %v4951_v43, %v9832_v47  ;;  %v4584_v34 = vcombine.low %v4576_v35, %v4583_v19  ;;  %v10945_v43 = vpop.f32.mrb[24].mxu1 }
 0x205   : > { %v4936_v32 = vcombine.high %v4934_v57, %v4934_v57  ;;  %v5272_v58 = vrot.slane %v4934_v57, %v9832_v47  ;;  %v5276_v59 = vrot.slane %v4935_v26, %v9832_v47  ;;  %v4706_v36 = vsel %vm4370_vm6, %v4567_v61, %v3618_v0 }
 0x206   : > { %v4960_v12 = vcombine.high %v4958_v28, %v4958_v28  ;;  %v5288_v2 = vrot.slane %v4958_v28, %v9832_v47  ;;  %v5292_v63 = vrot.slane %v4959_v1, %v9832_v47  ;;  %v4708_v3 = vsel %vm4370_vm6, %v4584_v34, %v3620_v55 }
 0x207   : > { %v9129_v17 = vadd.f32 %v10863_v56, %v4706_v36  ;;  %v5280_v5 = vrot.slane %v4936_v32, %v9832_v47  ;;  %v5537_v52 = vcombine.low %v5268_v49, %v5272_v58  ;;  %v9131_v0 = vadd.f32 %v10863_v56, %v4708_v3 }
 0x208   : > { %v5296_v42 = vrot.slane %v4960_v12, %v9832_v47  ;;  %v5554_v60 = vcombine.low %v5284_v6, %v5288_v2  ;;  %v6031_v23 = vrot.slane %v5899_v40, %v9828_v44  ;;  %v6008_v4 = vcombine.high %v6007_v37, %v6007_v37 }
 0x209   : > { %v9257_v13 = vadd.f32 %v9193_v53, %v9129_v17  ;;  %v5538_v25 = vcombine.low %v5276_v59, %v5280_v5  ;;  %v9259_v31 = vadd.f32 %v9195_v8, %v9131_v0  ;;  %v5545_v55 = vrot.slane %v5537_v52, %v9834_v48 }
 0x20a   : > { %v5555_v27 = vcombine.low %v5292_v63, %v5296_v42  ;;  %v6015_v14 = vrot.slane %v6007_v37, %v9828_v44  ;;  %v6032_v35 = vcombine.high %v6031_v23, %v6031_v23  ;;  %v6039_v15 = vrot.slane %v6031_v23, %v9828_v44 }
 0x20b   : > { %9322 = vst.msk [vmem:[%s9973_s25 + $0x128] sm:$0xff] %vm9284_vm4, %v9257_v13  ;;  %v5552_v7 = vrot.slane %v5538_v25, %v9834_v48  ;;  %9324 = vst.msk [vmem:[%s9973_s25 + $0x138] sm:$0xff] %vm9284_vm4, %v9259_v31  ;;  %v5562_v39 = vrot.slane %v5554_v60, %v9834_v48  ;;  %v6022_v18 = vrot.slane %v6008_v4, %v9828_v44  ;;  %vm6547_vm8 = vcmp.eq.s32.totalorder %v10885_v38, 5 }
 0x20c   : > { %v5569_v24 = vrot.slane %v5555_v27, %v9834_v48  ;;  %v4809_v30 = vcombine.high %v10471_v16, %v10471_v16  ;;  %v6023_v19 = vcombine.high %v6015_v14, %v6015_v14  ;;  %v6046_v57 = vrot.slane %v6032_v35, %v9828_v44 }
 0x20d   : > { %v5553_v40 = vcombine.low %v5545_v55, %v5552_v7  ;;  %v6047_v26 = vcombine.high %v6039_v15, %v6039_v15  ;;  %v6024_v61 = vcombine.high %v6022_v18, %v6022_v18  ;;  %v6356_v28 = vrot.slane %v6015_v14, %v9832_v47  ;;  %v10976_v7 = vpop.f32.mrb[25].mxu0 }
 0x20e   : > { %v5570_v49 = vcombine.low %v5562_v39, %v5569_v24  ;;  %v6360_v1 = vrot.slane %v6022_v18, %v9832_v47  ;;  %v6048_v34 = vcombine.high %v6046_v57, %v6046_v57  ;;  %v6364_v32 = vrot.slane %v6023_v19, %v9832_v47 }
 0x20f   : > { %v5781_v6 = vsel %vm5459_vm7, %v5553_v40, 0.0  ;;  %v6372_v58 = vrot.slane %v6039_v15, %v9832_v47  ;;  %v6368_v36 = vrot.slane %v6024_v61, %v9832_v47  ;;  %v6376_v53 = vrot.slane %v6046_v57, %v9832_v47  ;;  %v9180_v57 = vld [vmem:[%s9933_s20 + $0xc0] sm:$0xff] }
 0x210   : > { %v5783_v59 = vsel %vm5459_vm7, %v5570_v49, 0.0  ;;  %v6380_v12 = vrot.slane %v6047_v26, %v9832_v47  ;;  %v6384_v2 = vrot.slane %v6048_v34, %v9832_v47  ;;  %v6625_v63 = vcombine.low %v6356_v28, %v6360_v1  ;;  %v9182_v34 = vld [vmem:[%s9933_s20 + $0xd0] sm:$0xff] }
 0x211   : > { %v4823_v3 = vrot.slane %v10471_v16, %v9828_v44  ;;  %v4847_v17 = vrot.slane %v4809_v30, %v9828_v44  ;;  %v6626_v8 = vcombine.low %v6364_v32, %v6368_v36  ;;  %v6642_v5 = vcombine.low %v6372_v58, %v6376_v53 }
 0x212   : > { %v5897_v52 = vcombine.high %v10493_v41, %v10493_v41  ;;  %v5911_v0 = vrot.slane %v10493_v41, %v9828_v44  ;;  %v6633_v42 = vrot.slane %v6625_v63, %v9834_v48  ;;  %v6643_v60 = vcombine.low %v6380_v12, %v6384_v2 }
 0x213   : > { %v4824_v37 = vcombine.high %v4823_v3, %v4823_v3  ;;  %v4831_v13 = vrot.slane %v4823_v3, %v9828_v44  ;;  %v6640_v25 = vrot.slane %v6626_v8, %v9834_v48  ;;  %v6650_v16 = vrot.slane %v6642_v5, %v9834_v48 }
 0x214   : > { %v4848_v23 = vcombine.high %v4847_v17, %v4847_v17  ;;  %v4855_v31 = vrot.slane %v4847_v17, %v9828_v44  ;;  %v6657_v55 = vrot.slane %v6643_v60, %v9834_v48  ;;  %v5912_v12 = vcombine.high %v5911_v0, %v5911_v0 }
 0x215   : > { %v4838_v27 = vrot.slane %v4824_v37, %v9828_v44  ;;  %v4839_v4 = vcombine.high %v4831_v13, %v4831_v13  ;;  %v5204_v41 = vrot.slane %v4831_v13, %v9832_v47  ;;  %v6641_v14 = vcombine.low %v6633_v42, %v6640_v25 }
 0x216   : > { %v4862_v35 = vrot.slane %v4848_v23, %v9828_v44  ;;  %v4863_v15 = vcombine.high %v4855_v31, %v4855_v31  ;;  %v5220_v39 = vrot.slane %v4855_v31, %v9832_v47  ;;  %v6658_v24 = vcombine.low %v6650_v16, %v6657_v55 }
 0x217   : > { %v4840_v18 = vcombine.high %v4838_v27, %v4838_v27  ;;  %v5208_v30 = vrot.slane %v4838_v27, %v9832_v47  ;;  %v5212_v40 = vrot.slane %v4839_v4, %v9832_v47  ;;  %v6869_v19 = vsel %vm6547_vm8, %v6641_v14, %v5781_v6  ;;  %v11011_v14 = vpop.f32.mrb[25].mxu1 }
 0x218   : > { %v4864_v26 = vcombine.high %v4862_v35, %v4862_v35  ;;  %v5224_v49 = vrot.slane %v4862_v35, %v9832_v47  ;;  %v5228_v61 = vrot.slane %v4863_v15, %v9832_v47  ;;  %v6871_v28 = vsel %vm6547_vm8, %v6658_v24, %v5783_v59 }
 0x219   : > { %v9116_v1 = vadd.f32 %v10863_v56, %v6869_v19  ;;  %v5216_v32 = vrot.slane %v4840_v18, %v9832_v47  ;;  %v5469_v58 = vcombine.low %v5204_v41, %v5208_v30  ;;  %v9118_v36 = vadd.f32 %v10863_v56, %v6871_v28 }
 0x21a   : > { %v5232_v6 = vrot.slane %v4864_v26, %v9832_v47  ;;  %v5486_v53 = vcombine.low %v5220_v39, %v5224_v49  ;;  %v5919_v59 = vrot.slane %v5911_v0, %v9828_v44  ;;  %v5926_v42 = vrot.slane %v5912_v12, %v9828_v44 }
 0x21b   : > { %v9244_v2 = vadd.f32 %v9180_v57, %v9116_v1  ;;  %v5470_v63 = vcombine.low %v5212_v40, %v5216_v32  ;;  %v5477_v3 = vrot.slane %v5469_v58, %v9834_v48  ;;  %v9246_v17 = vadd.f32 %v9182_v34, %v9118_v36 }
 0x21c   : > { %v5487_v8 = vcombine.low %v5228_v61, %v5232_v6  ;;  %v5494_v5 = vrot.slane %v5486_v53, %v9834_v48  ;;  %v5927_v37 = vcombine.high %v5919_v59, %v5919_v59  ;;  %v5935_v13 = vrot.slane %v5897_v52, %v9828_v44 }
 0x21d   : > { %9309 = vst.msk [vmem:[%s9973_s25 + $0xc0] sm:$0xff] %vm9284_vm4, %v9244_v2  ;;  %v5484_v60 = vrot.slane %v5470_v63, %v9834_v48  ;;  %v6292_v25 = vrot.slane %v5919_v59, %v9832_v47  ;;  %9311 = vst.msk [vmem:[%s9973_s25 + $0xd0] sm:$0xff] %vm9284_vm4, %v9246_v17  ;;  %v5928_v0 = vcombine.high %v5926_v42, %v5926_v42 }
 0x21e   : > { %v5501_v16 = vrot.slane %v5487_v8, %v9834_v48  ;;  %v6296_v23 = vrot.slane %v5926_v42, %v9832_v47  ;;  %v4812_v31 = vcombine.high %v10533_v54, %v10533_v54  ;;  %v5936_v27 = vcombine.high %v5935_v13, %v5935_v13 }
 0x21f   : > { %v5485_v55 = vcombine.low %v5477_v3, %v5484_v60  ;;  %v5943_v4 = vrot.slane %v5935_v13, %v9828_v44  ;;  %v6300_v41 = vrot.slane %v5927_v37, %v9832_v47  ;;  %v6304_v35 = vrot.slane %v5928_v0, %v9832_v47  ;;  %v11037_v37 = vpop.f32.mrb[26].mxu0 }
 0x220   : > { %v5502_v52 = vcombine.low %v5494_v5, %v5501_v16  ;;  %v6557_v15 = vcombine.low %v6292_v25, %v6296_v23  ;;  %v4967_v39 = vrot.slane %v10533_v54, %v9828_v44  ;;  %v5950_v18 = vrot.slane %v5936_v27, %v9828_v44  ;;  %v9164_v25 = vld [vmem:[%s9933_s20 + $0x40] sm:$0xff] }
 0x221   : > { %v5765_v24 = vsel %vm5459_vm7, %v5485_v55, 0.0  ;;  %v5951_v30 = vcombine.high %v5943_v4, %v5943_v4  ;;  %v6308_v40 = vrot.slane %v5943_v4, %v9832_v47  ;;  %v6558_v57 = vcombine.low %v6300_v41, %v6304_v35 }
 0x222   : > { %v5767_v19 = vsel %vm5459_vm7, %v5502_v52, 0.0  ;;  %v6565_v26 = vrot.slane %v6557_v15, %v9834_v48  ;;  %v4968_v49 = vcombine.high %v4967_v39, %v4967_v39  ;;  %v5952_v61 = vcombine.high %v5950_v18, %v5950_v18 }
 0x223   : > { %v6312_v28 = vrot.slane %v5950_v18, %v9832_v47  ;;  %v6316_v54 = vrot.slane %v5951_v30, %v9832_v47  ;;  %v4975_v1 = vrot.slane %v4967_v39, %v9828_v44  ;;  %v6572_v34 = vrot.slane %v6558_v57, %v9834_v48 }
 0x224   : > { %v4982_v32 = vrot.slane %v4968_v49, %v9828_v44  ;;  %v4991_v58 = vrot.slane %v4812_v31, %v9828_v44  ;;  %v5900_v36 = vcombine.high %v10561_v9, %v10561_v9  ;;  %v6320_v6 = vrot.slane %v5952_v61, %v9832_v47 }
 0x225   : > { %v6574_v53 = vcombine.low %v6308_v40, %v6312_v28  ;;  %v4983_v12 = vcombine.high %v4975_v1, %v4975_v1  ;;  %v5300_v2 = vrot.slane %v4975_v1, %v9832_v47  ;;  %v6573_v63 = vcombine.low %v6565_v26, %v6572_v34  ;;  %v9166_v28 = vld [vmem:[%s9933_s20 + $0x50] sm:$0xff] }
 0x226   : > { %v4984_v3 = vcombine.high %v4982_v32, %v4982_v32  ;;  %v4992_v59 = vcombine.high %v4991_v58, %v4991_v58  ;;  %v4999_v17 = vrot.slane %v4991_v58, %v9828_v44  ;;  %v6575_v8 = vcombine.low %v6316_v54, %v6320_v6 }
 0x227   : > { %v6582_v5 = vrot.slane %v6574_v53, %v9834_v48  ;;  %v5304_v42 = vrot.slane %v4982_v32, %v9832_v47  ;;  %v5308_v60 = vrot.slane %v4983_v12, %v9832_v47  ;;  %v6853_v13 = vsel %vm6547_vm8, %v6573_v63, %v5765_v24 }
 0x228   : > { %v5006_v16 = vrot.slane %v4992_v59, %v9828_v44  ;;  %v5007_v0 = vcombine.high %v4999_v17, %v4999_v17  ;;  %v5312_v23 = vrot.slane %v4984_v3, %v9832_v47  ;;  %v6589_v31 = vrot.slane %v6575_v8, %v9834_v48 }
 0x229   : > { %v9100_v55 = vadd.f32 %v10863_v56, %v6853_v13  ;;  %v5316_v27 = vrot.slane %v4999_v17, %v9832_v47  ;;  %v5571_v4 = vcombine.low %v5300_v2, %v5304_v42  ;;  %v6055_v30 = vrot.slane %v10561_v9, %v9828_v44  ;;  %v11067_v2 = vpop.f32.mrb[26].mxu1 }
 0x22a   : > { %v5008_v41 = vcombine.high %v5006_v16, %v5006_v16  ;;  %v5320_v52 = vrot.slane %v5006_v16, %v9832_v47  ;;  %v5324_v35 = vrot.slane %v5007_v0, %v9832_v47  ;;  %v5572_v15 = vcombine.low %v5308_v60, %v5312_v23 }
 0x22b   : > { %v6590_v39 = vcombine.low %v6582_v5, %v6589_v31  ;;  %v9228_v24 = vadd.f32 %v9164_v25, %v9100_v55  ;;  %v5579_v18 = vrot.slane %v5571_v4, %v9834_v48  ;;  %v6079_v49 = vrot.slane %v5900_v36, %v9828_v44 }
 0x22c   : > { %v5328_v40 = vrot.slane %v5008_v41, %v9832_v47  ;;  %v5586_v57 = vrot.slane %v5572_v15, %v9834_v48  ;;  %v5588_v26 = vcombine.low %v5316_v27, %v5320_v52  ;;  %v6056_v54 = vcombine.high %v6055_v30, %v6055_v30 }
 0x22d   : > { %v6855_v61 = vsel %vm6547_vm8, %v6590_v39, %v5767_v19  ;;  %9293 = vst.msk [vmem:[%s9973_s25 + $0x40] sm:$0xff] %vm9284_vm4, %v9228_v24  ;;  %v6063_v1 = vrot.slane %v6055_v30, %v9828_v44  ;;  %v4810_v34 = vcombine.high %v10596_v10, %v10596_v10  ;;  %v6080_v19 = vcombine.high %v6079_v49, %v6079_v49 }
 0x22e   : > { %v9102_v9 = vadd.f32 %v10863_v56, %v6855_v61  ;;  %v5587_v32 = vcombine.low %v5579_v18, %v5586_v57  ;;  %v5589_v58 = vcombine.low %v5324_v35, %v5328_v40  ;;  %v5596_v6 = vrot.slane %v5588_v26, %v9834_v48 }
 0x22f   : > { %v6070_v36 = vrot.slane %v6056_v54, %v9828_v44  ;;  %v6071_v53 = vcombine.high %v6063_v1, %v6063_v1  ;;  %v6087_v12 = vrot.slane %v6079_v49, %v9828_v44  ;;  %v6388_v17 = vrot.slane %v6063_v1, %v9832_v47 }
 0x230   : > { %v9230_v63 = vadd.f32 %v9166_v28, %v9102_v9  ;;  %v5603_v3 = vrot.slane %v5589_v58, %v9834_v48  ;;  %v5785_v59 = vsel %vm5459_vm7, %v5587_v32, 0.0  ;;  %v6094_v5 = vrot.slane %v6080_v19, %v9828_v44 }
 0x231   : > { %v6072_v8 = vcombine.high %v6070_v36, %v6070_v36  ;;  %v6095_v42 = vcombine.high %v6087_v12, %v6087_v12  ;;  %v6392_v60 = vrot.slane %v6070_v36, %v9832_v47  ;;  %v6396_v25 = vrot.slane %v6071_v53, %v9832_v47 }
 0x232   : > { %9295 = vst.msk [vmem:[%s9973_s25 + $0x50] sm:$0xff] %vm9284_vm4, %v9230_v63  ;;  %v5604_v13 = vcombine.low %v5596_v6, %v5603_v3  ;;  %v6404_v16 = vrot.slane %v6087_v12, %v9832_v47  ;;  %v4871_v0 = vrot.slane %v10596_v10, %v9828_v44  ;;  %v6096_v23 = vcombine.high %v6094_v5, %v6094_v5  ;;  %v11103_v3 = vpop.f32.mrb[27].mxu0 }
 0x233   : > { %v6400_v31 = vrot.slane %v6072_v8, %v9832_v47  ;;  %v6408_v55 = vrot.slane %v6094_v5, %v9832_v47  ;;  %v6412_v27 = vrot.slane %v6095_v42, %v9832_v47  ;;  %v6659_v41 = vcombine.low %v6388_v17, %v6392_v60  ;;  %v9184_v5 = vld [vmem:[%s9933_s20 + $0xe0] sm:$0xff] }
 0x234   : > { %v5787_v4 = vsel %vm5459_vm7, %v5604_v13, 0.0  ;;  %v4872_v52 = vcombine.high %v4871_v0, %v4871_v0  ;;  %v4879_v35 = vrot.slane %v4871_v0, %v9828_v44  ;;  %v6416_v15 = vrot.slane %v6096_v23, %v9832_v47 }
 0x235   : > { %v6660_v39 = vcombine.low %v6396_v25, %v6400_v31  ;;  %v6676_v24 = vcombine.low %v6404_v16, %v6408_v55  ;;  %v4895_v10 = vrot.slane %v4810_v34, %v9828_v44  ;;  %v6667_v18 = vrot.slane %v6659_v41, %v9834_v48  ;;  %v9186_v31 = vld [vmem:[%s9933_s20 + $0xf0] sm:$0xff] }
 0x236   : > { %v4886_v30 = vrot.slane %v4872_v52, %v9828_v44  ;;  %v4887_v40 = vcombine.high %v4879_v35, %v4879_v35  ;;  %v5236_v57 = vrot.slane %v4879_v35, %v9832_v47  ;;  %v6677_v49 = vcombine.low %v6412_v27, %v6416_v15 }
 0x237   : > { %v6674_v26 = vrot.slane %v6660_v39, %v9834_v48  ;;  %v6684_v61 = vrot.slane %v6676_v24, %v9834_v48  ;;  %v4896_v28 = vcombine.high %v4895_v10, %v4895_v10  ;;  %v4903_v1 = vrot.slane %v4895_v10, %v9828_v44 }
 0x238   : > { %v4888_v54 = vcombine.high %v4886_v30, %v4886_v30  ;;  %v5240_v9 = vrot.slane %v4886_v30, %v9832_v47  ;;  %v5244_v34 = vrot.slane %v4887_v40, %v9832_v47  ;;  %v6691_v58 = vrot.slane %v6677_v49, %v9834_v48 }
 0x239   : > { %v6675_v32 = vcombine.low %v6667_v18, %v6674_v26  ;;  %v4910_v6 = vrot.slane %v4896_v28, %v9828_v44  ;;  %v5898_v36 = vcombine.high %v10618_v62, %v10618_v62  ;;  %v4911_v53 = vcombine.high %v4903_v1, %v4903_v1 }
 0x23a   : > { %v5248_v19 = vrot.slane %v4888_v54, %v9832_v47  ;;  %v5252_v12 = vrot.slane %v4903_v1, %v9832_v47  ;;  %v5503_v63 = vcombine.low %v5236_v57, %v5240_v9  ;;  %v6692_v17 = vcombine.low %v6684_v61, %v6691_v58  ;;  %v11126_v57 = vpop.f32.mrb[27].mxu1 }
 0x23b   : > { %v6873_v8 = vsel %vm6547_vm8, %v6675_v32, %v5785_v59  ;;  %v4912_v42 = vcombine.high %v4910_v6, %v4910_v6  ;;  %v5256_v60 = vrot.slane %v4910_v6, %v9832_v47  ;;  %v5260_v25 = vrot.slane %v4911_v53, %v9832_v47 }
 0x23c   : > { %v9120_v13 = vadd.f32 %v10863_v56, %v6873_v8  ;;  %v5504_v16 = vcombine.low %v5244_v34, %v5248_v19  ;;  %v5511_v0 = vrot.slane %v5503_v63, %v9834_v48  ;;  %v6875_v23 = vsel %vm6547_vm8, %v6692_v17, %v5787_v4 }
 0x23d   : > { %v5264_v55 = vrot.slane %v4912_v42, %v9832_v47  ;;  %v5520_v27 = vcombine.low %v5252_v12, %v5256_v60  ;;  %v5959_v59 = vrot.slane %v10618_v62, %v9828_v44  ;;  %v9122_v41 = vadd.f32 %v10863_v56, %v6875_v23 }
 0x23e   : > { %v9248_v52 = vadd.f32 %v9184_v5, %v9120_v13  ;;  %v5518_v35 = vrot.slane %v5504_v16, %v9834_v48  ;;  %v5983_v15 = vrot.slane %v5898_v36, %v9828_v44  ;;  %v4815_v63 = vcombine.high %v10668_v11, %v10668_v11 }
 0x23f   : > { %v5521_v39 = vcombine.low %v5260_v25, %v5264_v55  ;;  %v5528_v24 = vrot.slane %v5520_v27, %v9834_v48  ;;  %v5960_v10 = vcombine.high %v5959_v59, %v5959_v59  ;;  %v5967_v4 = vrot.slane %v5959_v59, %v9828_v44 }
 0x240   : > { %v9250_v18 = vadd.f32 %v9186_v31, %v9122_v41  ;;  %9313 = vst.msk [vmem:[%s9973_s25 + $0xe0] sm:$0xff] %vm9284_vm4, %v9248_v52  ;;  %v5519_v30 = vcombine.low %v5511_v0, %v5518_v35  ;;  %v5984_v40 = vcombine.high %v5983_v15, %v5983_v15  ;;  %v5991_v62 = vrot.slane %v5983_v15, %v9828_v44 }
 0x241   : > { %v5535_v26 = vrot.slane %v5521_v39, %v9834_v48  ;;  %v5974_v49 = vrot.slane %v5960_v10, %v9828_v44  ;;  %v5975_v61 = vcombine.high %v5967_v4, %v5967_v4  ;;  %v6324_v28 = vrot.slane %v5967_v4, %v9832_v47 }
 0x242   : > { %9315 = vst.msk [vmem:[%s9973_s25 + $0xf0] sm:$0xff] %vm9284_vm4, %v9250_v18  ;;  %v5769_v54 = vsel %vm5459_vm7, %v5519_v30, 0.0  ;;  %v5998_v1 = vrot.slane %v5984_v40, %v9828_v44  ;;  %v5999_v9 = vcombine.high %v5991_v62, %v5991_v62  ;;  %v6340_v34 = vrot.slane %v5991_v62, %v9832_v47 }
 0x243   : > { %v5536_v32 = vcombine.low %v5528_v24, %v5535_v26  ;;  %v5976_v58 = vcombine.high %v5974_v49, %v5974_v49  ;;  %v6328_v6 = vrot.slane %v5974_v49, %v9832_v47  ;;  %v6332_v36 = vrot.slane %v5975_v61, %v9832_v47 }
 0x244   : > { %v6000_v53 = vcombine.high %v5998_v1, %v5998_v1  ;;  %v6344_v19 = vrot.slane %v5998_v1, %v9832_v47  ;;  %v6348_v12 = vrot.slane %v5999_v9, %v9832_v47  ;;  %v5111_v42 = vrot.slane %v10668_v11, %v9828_v44 }
 0x245   : > { %v5771_v17 = vsel %vm5459_vm7, %v5536_v32, 0.0  ;;  %v6336_v8 = vrot.slane %v5976_v58, %v9832_v47  ;;  %v6591_v5 = vcombine.low %v6324_v28, %v6328_v6  ;;  %v5135_v25 = vrot.slane %v4815_v63, %v9828_v44 }
 0x246   : > { %v6352_v60 = vrot.slane %v6000_v53, %v9832_v47  ;;  %v6608_v13 = vcombine.low %v6340_v34, %v6344_v19  ;;  %v5903_v16 = vcombine.high %v10681_v51, %v10681_v51  ;;  %v5112_v31 = vcombine.high %v5111_v42, %v5111_v42  ;;  %v9168_v34 = vld [vmem:[%s9933_s20 + $0x60] sm:$0xff]  ;;  %v9170_v19 = vld [vmem:[%s9933_s20 + $0x70] sm:$0xff] }
 0x247   : > { %v6592_v0 = vcombine.low %v6332_v36, %v6336_v8  ;;  %v6599_v23 = vrot.slane %v6591_v5, %v9834_v48  ;;  %v5119_v55 = vrot.slane %v5111_v42, %v9828_v44  ;;  %v5136_v41 = vcombine.high %v5135_v25, %v5135_v25  ;;  %v11177_v8 = vpop.f32.mrb[28].mxu0 }
 0x248   : > { %v6609_v27 = vcombine.low %v6348_v12, %v6352_v60  ;;  %v6616_v59 = vrot.slane %v6608_v13, %v9834_v48  ;;  %v5143_v11 = vrot.slane %v5135_v25, %v9828_v44  ;;  %v5126_v35 = vrot.slane %v5112_v31, %v9828_v44 }
 0x249   : > { %v6606_v52 = vrot.slane %v6592_v0, %v9834_v48  ;;  %v5127_v15 = vcombine.high %v5119_v55, %v5119_v55  ;;  %v5396_v39 = vrot.slane %v5119_v55, %v9832_v47  ;;  %v5150_v10 = vrot.slane %v5136_v41, %v9828_v44 }
 0x24a   : > { %v6623_v24 = vrot.slane %v6609_v27, %v9834_v48  ;;  %v5151_v4 = vcombine.high %v5143_v11, %v5143_v11  ;;  %v5412_v18 = vrot.slane %v5143_v11, %v9832_v47  ;;  %v5128_v40 = vcombine.high %v5126_v35, %v5126_v35 }
 0x24b   : > { %v6607_v30 = vcombine.low %v6599_v23, %v6606_v52  ;;  %v5400_v62 = vrot.slane %v5126_v35, %v9832_v47  ;;  %v5404_v26 = vrot.slane %v5127_v15, %v9832_v47  ;;  %v5152_v61 = vcombine.high %v5150_v10, %v5150_v10  ;;  %v11192_v52 = vpop.f32.mrb[28].mxu1 }
 0x24c   : > { %v6624_v49 = vcombine.low %v6616_v59, %v6623_v24  ;;  %v5416_v28 = vrot.slane %v5150_v10, %v9832_v47  ;;  %v5420_v1 = vrot.slane %v5151_v4, %v9832_v47  ;;  %v5408_v32 = vrot.slane %v5128_v40, %v9832_v47 }
 0x24d   : > { %v6857_v9 = vsel %vm6547_vm8, %v6607_v30, %v5769_v54  ;;  %v5673_v58 = vcombine.low %v5396_v39, %v5400_v62  ;;  %v6199_v6 = vrot.slane %v10681_v51, %v9828_v44  ;;  %v5424_v12 = vrot.slane %v5152_v61, %v9832_v47 }
 0x24e   : > { %v6859_v36 = vsel %vm6547_vm8, %v6624_v49, %v5771_v17  ;;  %v9104_v53 = vadd.f32 %v10863_v56, %v6857_v9  ;;  %v5690_v63 = vcombine.low %v5412_v18, %v5416_v28  ;;  %v5674_v5 = vcombine.low %v5404_v26, %v5408_v32 }
 0x24f   : > { %v9106_v54 = vadd.f32 %v10863_v56, %v6859_v36  ;;  %v5681_v42 = vrot.slane %v5673_v58, %v9834_v48  ;;  %v6200_v60 = vcombine.high %v6199_v6, %v6199_v6  ;;  %v5691_v13 = vcombine.low %v5420_v1, %v5424_v12 }
 0x250   : > { %v9232_v51 = vadd.f32 %v9168_v34, %v9104_v53  ;;  %v5698_v17 = vrot.slane %v5690_v63, %v9834_v48  ;;  %v6207_v25 = vrot.slane %v6199_v6, %v9828_v44  ;;  %v5688_v23 = vrot.slane %v5674_v5, %v9834_v48 }
 0x251   : > { %v9234_v0 = vadd.f32 %v9170_v19, %v9106_v54  ;;  %v6214_v31 = vrot.slane %v6200_v60, %v9828_v44  ;;  %v6223_v55 = vrot.slane %v5903_v16, %v9828_v44  ;;  %v5705_v27 = vrot.slane %v5691_v13, %v9834_v48 }
 0x252   : > { %9297 = vst.msk [vmem:[%s9973_s25 + $0x60] sm:$0xff] %vm9284_vm4, %v9232_v51  ;;  %v6215_v59 = vcombine.high %v6207_v25, %v6207_v25  ;;  %v6484_v41 = vrot.slane %v6207_v25, %v9832_v47  ;;  %v4813_v11 = vcombine.high %v10719_v46, %v10719_v46  ;;  %v5689_v35 = vcombine.low %v5681_v42, %v5688_v23  ;;  %v11221_v23 = vpop.f32.mrb[29].mxu0 }
 0x253   : > { %9299 = vst.msk [vmem:[%s9973_s25 + $0x70] sm:$0xff] %vm9284_vm4, %v9234_v0  ;;  %v6216_v15 = vcombine.high %v6214_v31, %v6214_v31  ;;  %v6224_v39 = vcombine.high %v6223_v55, %v6223_v55  ;;  %v6231_v24 = vrot.slane %v6223_v55, %v9828_v44  ;;  %v5706_v16 = vcombine.low %v5698_v17, %v5705_v27 }
 0x254   : > { %v6488_v10 = vrot.slane %v6214_v31, %v9832_v47  ;;  %v6492_v4 = vrot.slane %v6215_v59, %v9832_v47  ;;  %v5015_v18 = vrot.slane %v10719_v46, %v9828_v44  ;;  %v5813_v30 = vsel %vm5459_vm7, %v5689_v35, 0.0  ;;  %v9212_v35 = vld [vmem:[%s9933_s20 + $0x1c0] sm:$0xff] }
 0x255   : > { %v6238_v40 = vrot.slane %v6224_v39, %v9828_v44  ;;  %v6239_v62 = vcombine.high %v6231_v24, %v6231_v24  ;;  %v6496_v26 = vrot.slane %v6216_v15, %v9832_v47  ;;  %v5815_v49 = vsel %vm5459_vm7, %v5706_v16, 0.0 }
 0x256   : > { %v6500_v61 = vrot.slane %v6231_v24, %v9832_v47  ;;  %v6761_v28 = vcombine.low %v6484_v41, %v6488_v10  ;;  %v5016_v1 = vcombine.high %v5015_v18, %v5015_v18  ;;  %v5023_v6 = vrot.slane %v5015_v18, %v9828_v44 }
 0x257   : > { %v6240_v9 = vcombine.high %v6238_v40, %v6238_v40  ;;  %v6504_v34 = vrot.slane %v6238_v40, %v9832_v47  ;;  %v6508_v46 = vrot.slane %v6239_v62, %v9832_v47  ;;  %v6762_v32 = vcombine.low %v6492_v4, %v6496_v26 }
 0x258   : > { %v6769_v58 = vrot.slane %v6761_v28, %v9834_v48  ;;  %v5030_v36 = vrot.slane %v5016_v1, %v9828_v44  ;;  %v5039_v53 = vrot.slane %v4813_v11, %v9828_v44  ;;  %v5901_v54 = vcombine.high %v10744_v29, %v10744_v29 }
 0x259   : > { %v6512_v19 = vrot.slane %v6240_v9, %v9832_v47  ;;  %v6776_v12 = vrot.slane %v6762_v32, %v9834_v48  ;;  %v6778_v63 = vcombine.low %v6500_v61, %v6504_v34  ;;  %v5031_v5 = vcombine.high %v5023_v6, %v5023_v6  ;;  %v9214_v34 = vld [vmem:[%s9933_s20 + $0x1d0] sm:$0xff] }
 0x25a   : > { %v5032_v42 = vcombine.high %v5030_v36, %v5030_v36  ;;  %v5040_v60 = vcombine.high %v5039_v53, %v5039_v53  ;;  %v5047_v51 = vrot.slane %v5039_v53, %v9828_v44  ;;  %v5332_v0 = vrot.slane %v5023_v6, %v9832_v47 }
 0x25b   : > { %v6777_v13 = vcombine.low %v6769_v58, %v6776_v12  ;;  %v6779_v17 = vcombine.low %v6508_v46, %v6512_v19  ;;  %v6786_v25 = vrot.slane %v6778_v63, %v9834_v48  ;;  %v5336_v27 = vrot.slane %v5030_v36, %v9832_v47 }
 0x25c   : > { %v5054_v31 = vrot.slane %v5040_v60, %v9828_v44  ;;  %v5055_v55 = vcombine.high %v5047_v51, %v5047_v51  ;;  %v5340_v59 = vrot.slane %v5031_v5, %v9832_v47  ;;  %v5344_v15 = vrot.slane %v5032_v42, %v9832_v47 }
 0x25d   : > { %v6793_v41 = vrot.slane %v6779_v17, %v9834_v48  ;;  %v6901_v11 = vsel %vm6547_vm8, %v6777_v13, %v5813_v30  ;;  %v5348_v39 = vrot.slane %v5047_v51, %v9832_v47  ;;  %v5605_v40 = vcombine.low %v5332_v0, %v5336_v27 }
 0x25e   : > { %v9148_v24 = vadd.f32 %v10863_v56, %v6901_v11  ;;  %v5056_v16 = vcombine.high %v5054_v31, %v5054_v31  ;;  %v5352_v10 = vrot.slane %v5054_v31, %v9832_v47  ;;  %v5356_v4 = vrot.slane %v5055_v55, %v9832_v47 }
 0x25f   : > { %v6794_v18 = vcombine.low %v6786_v25, %v6793_v41  ;;  %v5606_v62 = vcombine.low %v5340_v59, %v5344_v15  ;;  %v6103_v30 = vrot.slane %v10744_v29, %v9828_v44  ;;  %v6127_v1 = vrot.slane %v5901_v54, %v9828_v44  ;;  %v11251_v54 = vpop.f32.mrb[29].mxu1 }
 0x260   : > { %v9276_v26 = vadd.f32 %v9212_v35, %v9148_v24  ;;  %v5360_v61 = vrot.slane %v5056_v16, %v9832_v47  ;;  %v5622_v28 = vcombine.low %v5348_v39, %v5352_v10  ;;  %v5613_v46 = vrot.slane %v5605_v40, %v9834_v48 }
 0x261   : > { %v6903_v9 = vsel %vm6547_vm8, %v6794_v18, %v5815_v49  ;;  %v5620_v32 = vrot.slane %v5606_v62, %v9834_v48  ;;  %v6104_v58 = vcombine.high %v6103_v30, %v6103_v30  ;;  %v6111_v53 = vrot.slane %v6103_v30, %v9828_v44 }
 0x262   : > { %v9150_v6 = vadd.f32 %v10863_v56, %v6903_v9  ;;  %9341 = vst.msk [vmem:[%s9973_s25 + $0x1c0] sm:$0xff] %vm9284_vm4, %v9276_v26  ;;  %v5623_v29 = vcombine.low %v5356_v4, %v5360_v61  ;;  %v5630_v36 = vrot.slane %v5622_v28, %v9834_v48  ;;  %v6128_v49 = vcombine.high %v6127_v1, %v6127_v1 }
 0x263   : > { %v5621_v19 = vcombine.low %v5613_v46, %v5620_v32  ;;  %v6118_v12 = vrot.slane %v6104_v58, %v9828_v44  ;;  %v6135_v63 = vrot.slane %v6127_v1, %v9828_v44  ;;  %v6119_v56 = vcombine.high %v6111_v53, %v6111_v53 }
 0x264   : > { %v9278_v5 = vadd.f32 %v9214_v34, %v9150_v6  ;;  %v5637_v42 = vrot.slane %v5623_v29, %v9834_v48  ;;  %v6420_v60 = vrot.slane %v6111_v53, %v9832_v47  ;;  %v6142_v17 = vrot.slane %v6128_v49, %v9828_v44 }
 0x265   : > { %v5797_v51 = vsel %vm5459_vm7, %v5621_v19, 0.0  ;;  %v6120_v13 = vcombine.high %v6118_v12, %v6118_v12  ;;  %v6143_v25 = vcombine.high %v6135_v63, %v6135_v63  ;;  %v6424_v31 = vrot.slane %v6118_v12, %v9832_v47 }
 0x266   : > { %9343 = vst.msk [vmem:[%s9973_s25 + $0x1d0] sm:$0xff] %vm9284_vm4, %v9278_v5  ;;  %v5638_v0 = vcombine.low %v5630_v36, %v5637_v42  ;;  %v6428_v55 = vrot.slane %v6119_v56, %v9832_v47  ;;  %v6436_v27 = vrot.slane %v6135_v63, %v9832_v47  ;;  %v6144_v59 = vcombine.high %v6142_v17, %v6142_v17  ;;  %v11288_v63 = vpop.f32.mrb[30].mxu0  ;;  %v9196_v56 = vld [vmem:[%s9933_s20 + $0x140] sm:$0xff] }
 0x267   : > { %v6432_v41 = vrot.slane %v6120_v13, %v9832_v47  ;;  %v6440_v11 = vrot.slane %v6142_v17, %v9832_v47  ;;  %v6444_v35 = vrot.slane %v6143_v25, %v9832_v47  ;;  %v6693_v39 = vcombine.low %v6420_v60, %v6424_v31  ;;  %v11298_v17 = vld [vmem:[%s11900_s3] ss:$0 sm:$0xff] }
 0x268   : > { %v5799_v15 = vsel %vm5459_vm7, %v5638_v0, 0.0  ;;  %v4816_v24 = vcombine.high %v10777_v20, %v10777_v20  ;;  %v5159_v16 = vrot.slane %v10777_v20, %v9828_v44  ;;  %v6448_v10 = vrot.slane %v6144_v59, %v9832_v47 }
 0x269   : > { %v6694_v4 = vcombine.low %v6428_v55, %v6432_v41  ;;  %v6710_v18 = vcombine.low %v6436_v27, %v6440_v11  ;;  %v5904_v40 = vcombine.high %v10810_v21, %v10810_v21  ;;  %v6701_v62 = vrot.slane %v6693_v39, %v9834_v48  ;;  %v9198_v27 = vld [vmem:[%s9933_s20 + $0x150] sm:$0xff] }
 0x26a   : > { %v5160_v30 = vcombine.high %v5159_v16, %v5159_v16  ;;  %v5167_v26 = vrot.slane %v5159_v16, %v9828_v44  ;;  %v5183_v61 = vrot.slane %v4816_v24, %v9828_v44  ;;  %v6711_v1 = vcombine.low %v6444_v35, %v6448_v10 }
 0x26b   : > { %v6708_v28 = vrot.slane %v6694_v4, %v9834_v48  ;;  %v6718_v9 = vrot.slane %v6710_v18, %v9834_v48  ;;  %v6247_v20 = vrot.slane %v10810_v21, %v9828_v44 }
 0x26c   : > { %v5174_v34 = vrot.slane %v5160_v30, %v9828_v44  ;;  %v5175_v46 = vcombine.high %v5167_v26, %v5167_v26  ;;  %v5184_v32 = vcombine.high %v5183_v61, %v5183_v61  ;;  %v5191_v58 = vrot.slane %v5183_v61, %v9828_v44 }
 0x26d   : > { %v6709_v6 = vcombine.low %v6701_v62, %v6708_v28  ;;  %v6725_v29 = vrot.slane %v6711_v1, %v9834_v48  ;;  %v5428_v36 = vrot.slane %v5167_v26, %v9832_v47  ;;  %v6248_v53 = vcombine.high %v6247_v20, %v6247_v20  ;;  %v11316_v28 = vpop.f32.mrb[30].mxu1 }
 0x26e   : > { %v5176_v19 = vcombine.high %v5174_v34, %v5174_v34  ;;  %v5198_v12 = vrot.slane %v5184_v32, %v9828_v44  ;;  %v5199_v49 = vcombine.high %v5191_v58, %v5191_v58  ;;  %v5432_v21 = vrot.slane %v5174_v34, %v9832_v47 }
 0x26f   : > { %v6726_v5 = vcombine.low %v6718_v9, %v6725_v29  ;;  %v6885_v42 = vsel %vm6547_vm8, %v6709_v6, %v5797_v51  ;;  %v5436_v60 = vrot.slane %v5175_v46, %v9832_v47  ;;  %v5444_v13 = vrot.slane %v5191_v58, %v9832_v47 }
 0x270   : > { %v9132_v25 = vadd.f32 %v11298_v17, %v6885_v42  ;;  %v5200_v0 = vcombine.high %v5198_v12, %v5198_v12  ;;  %v5440_v31 = vrot.slane %v5176_v19, %v9832_v47  ;;  %v5448_v55 = vrot.slane %v5198_v12, %v9832_v47 }
 0x271   : > { %v6887_v51 = vsel %vm6547_vm8, %v6726_v5, %v5799_v15  ;;  %v5452_v59 = vrot.slane %v5199_v49, %v9832_v47  ;;  %v5707_v41 = vcombine.low %v5428_v36, %v5432_v21  ;;  %v6255_v11 = vrot.slane %v6247_v20, %v9828_v44 }
 0x272   : > { %v9134_v35 = vadd.f32 %v11298_v17, %v6887_v51  ;;  %v9260_v39 = vadd.f32 %v9196_v56, %v9132_v25  ;;  %v5456_v24 = vrot.slane %v5200_v0, %v9832_v47  ;;  %v5708_v16 = vcombine.low %v5436_v60, %v5440_v31 }
 0x273   : > { %v5715_v10 = vrot.slane %v5707_v41, %v9834_v48  ;;  %v5724_v4 = vcombine.low %v5444_v13, %v5448_v55  ;;  %v6262_v18 = vrot.slane %v6248_v53, %v9828_v44  ;;  %v6263_v62 = vcombine.high %v6255_v11, %v6255_v11 }
 0x274   : > { %v9262_v15 = vadd.f32 %v9198_v27, %v9134_v35  ;;  %9325 = vst.msk [vmem:[%s9973_s25 + $0x140] sm:$0xff] %vm9284_vm4, %v9260_v39  ;;  %v5722_v30 = vrot.slane %v5708_v16, %v9834_v48  ;;  %v5725_v26 = vcombine.low %v5452_v59, %v5456_v24  ;;  %v6271_v61 = vrot.slane %v5904_v40, %v9828_v44 }
 0x275   : > { %v5732_v1 = vrot.slane %v5724_v4, %v9834_v48  ;;  %v6264_v9 = vcombine.high %v6262_v18, %v6262_v18  ;;  %v6516_v20 = vrot.slane %v6255_v11, %v9832_v47  ;;  %v6520_v34 = vrot.slane %v6262_v18, %v9832_v47 }
 0x276   : > { %9327 = vst.msk [vmem:[%s9973_s25 + $0x150] sm:$0xff] %vm9284_vm4, %v9262_v15  ;;  %v5723_v46 = vcombine.low %v5715_v10, %v5722_v30  ;;  %v5739_v32 = vrot.slane %v5725_v26, %v9834_v48  ;;  %v6272_v58 = vcombine.high %v6271_v61, %v6271_v61  ;;  %v6279_v6 = vrot.slane %v6271_v61, %v9828_v44  ;;  %v9216_v26 = vld [vmem:[%s9933_s20 + $0x1e0] sm:$0xff] }
 0x277   : > { %v6524_v29 = vrot.slane %v6263_v62, %v9832_v47  ;;  %v6528_v40 = vrot.slane %v6264_v9, %v9832_v47  ;;  %v6795_v36 = vcombine.low %v6516_v20, %v6520_v34  ;;  %v4814_v53 = vcombine.high %v10845_v33, %v10845_v33  ;;  %v11357_v9 = vpop.f32.mrb[31].mxu0 }
 0x278   : > { %v5740_v19 = vcombine.low %v5732_v1, %v5739_v32  ;;  %v5817_v12 = vsel %vm5459_vm7, %v5723_v46, 0.0  ;;  %v6286_v49 = vrot.slane %v6272_v58, %v9828_v44  ;;  %v6287_v21 = vcombine.high %v6279_v6, %v6279_v6 }
 0x279   : > { %v6532_v5 = vrot.slane %v6279_v6, %v9832_v47  ;;  %v6796_v42 = vcombine.low %v6524_v29, %v6528_v40  ;;  %v6803_v56 = vrot.slane %v6795_v36, %v9834_v48  ;;  %v5063_v60 = vrot.slane %v10845_v33, %v9828_v44 }
 0x27a   : > { %v5819_v13 = vsel %vm5459_vm7, %v5740_v19, 0.0  ;;  %v6288_v25 = vcombine.high %v6286_v49, %v6286_v49  ;;  %v6536_v0 = vrot.slane %v6286_v49, %v9832_v47  ;;  %v6540_v31 = vrot.slane %v6287_v21, %v9832_v47 }
 0x27b   : > { %v6810_v55 = vrot.slane %v6796_v42, %v9834_v48  ;;  %v5064_v51 = vcombine.high %v5063_v60, %v5063_v60  ;;  %v5071_v27 = vrot.slane %v5063_v60, %v9828_v44  ;;  %v5087_v59 = vrot.slane %v4814_v53, %v9828_v44  ;;  %v9218_v60 = vld [vmem:[%s9933_s20 + $0x1f0] sm:$0xff] }
 0x27c   : > { %v6544_v41 = vrot.slane %v6288_v25, %v9832_v47  ;;  %v6812_v11 = vcombine.low %v6532_v5, %v6536_v0  ;;  %v5902_v33 = vcombine.high %v10872_v50, %v10872_v50  ;;  %v6151_v35 = vrot.slane %v10872_v50, %v9828_v44 }
 0x27d   : > { %v6811_v39 = vcombine.low %v6803_v56, %v6810_v55  ;;  %v5078_v24 = vrot.slane %v5064_v51, %v9828_v44  ;;  %v5079_v16 = vcombine.high %v5071_v27, %v5071_v27  ;;  %v5088_v10 = vcombine.high %v5087_v59, %v5087_v59 }
 0x27e   : > { %v6813_v4 = vcombine.low %v6540_v31, %v6544_v41  ;;  %v6820_v18 = vrot.slane %v6812_v11, %v9834_v48  ;;  %v5095_v62 = vrot.slane %v5087_v59, %v9828_v44  ;;  %v5364_v15 = vrot.slane %v5071_v27, %v9832_v47 }
 0x27f   : > { %v6905_v30 = vsel %vm6547_vm8, %v6811_v39, %v5817_v12  ;;  %v5080_v61 = vcombine.high %v5078_v24, %v5078_v24  ;;  %v5102_v1 = vrot.slane %v5088_v10, %v9828_v44  ;;  %v5368_v50 = vrot.slane %v5078_v24, %v9832_v47  ;;  %v11379_v39 = vpop.f32.mrb[31].mxu1 }
 0x280   : > { %v6827_v20 = vrot.slane %v6813_v4, %v9834_v48  ;;  %v9152_v34 = vadd.f32 %v11298_v17, %v6905_v30  ;;  %v5103_v46 = vcombine.high %v5095_v62, %v5095_v62  ;;  %v5372_v32 = vrot.slane %v5079_v16, %v9832_v47 }
 0x281   : > { %v5104_v58 = vcombine.high %v5102_v1, %v5102_v1  ;;  %v5376_v6 = vrot.slane %v5080_v61, %v9832_v47  ;;  %v5380_v29 = vrot.slane %v5095_v62, %v9832_v47  ;;  %v5384_v40 = vrot.slane %v5102_v1, %v9832_v47 }
 0x282   : > { %v6828_v36 = vcombine.low %v6820_v18, %v6827_v20  ;;  %v9280_v53 = vadd.f32 %v9216_v26, %v9152_v34  ;;  %v5388_v19 = vrot.slane %v5103_v46, %v9832_v47  ;;  %v5639_v12 = vcombine.low %v5364_v15, %v5368_v50 }
 0x283   : > { %v5392_v49 = vrot.slane %v5104_v58, %v9832_v47  ;;  %v5640_v21 = vcombine.low %v5372_v32, %v5376_v6  ;;  %v5656_v5 = vcombine.low %v5380_v29, %v5384_v40  ;;  %v6152_v42 = vcombine.high %v6151_v35, %v6151_v35 }
 0x284   : > { %v6907_v56 = vsel %vm6547_vm8, %v6828_v36, %v5819_v13  ;;  %9345 = vst.msk [vmem:[%s9973_s25 + $0x1e0] sm:$0xff] %vm9284_vm4, %v9280_v53  ;;  %v6159_v25 = vrot.slane %v6151_v35, %v9828_v44  ;;  %v6175_v0 = vrot.slane %v5902_v33, %v9828_v44  ;;  %v5647_v55 = vrot.slane %v5639_v12, %v9834_v48 }
 0x285   : > { %v9154_v31 = vadd.f32 %v11298_v17, %v6907_v56  ;;  %v5654_v51 = vrot.slane %v5640_v21, %v9834_v48  ;;  %v5657_v27 = vcombine.low %v5388_v19, %v5392_v49  ;;  %v6166_v59 = vrot.slane %v6152_v42, %v9828_v44 }
 0x286   : > { %v6167_v41 = vcombine.high %v6159_v25, %v6159_v25  ;;  %v6176_v11 = vcombine.high %v6175_v0, %v6175_v0  ;;  %v6183_v13 = vrot.slane %v6175_v0, %v9828_v44  ;;  %v5664_v33 = vrot.slane %v5656_v5, %v9834_v48 }
 0x287   : > { %v9282_v24 = vadd.f32 %v9218_v60, %v9154_v31  ;;  %v5655_v35 = vcombine.low %v5647_v55, %v5654_v51  ;;  %v5671_v16 = vrot.slane %v5657_v27, %v9834_v48  ;;  %v6168_v10 = vcombine.high %v6166_v59, %v6166_v59 }
 0x288   : > { %v6190_v4 = vrot.slane %v6176_v11, %v9828_v44  ;;  %v6191_v18 = vcombine.high %v6183_v13, %v6183_v13  ;;  %v6456_v62 = vrot.slane %v6166_v59, %v9832_v47  ;;  %v6452_v26 = vrot.slane %v6159_v25, %v9832_v47 }
 0x289   : > { %9347 = vst.msk [vmem:[%s9973_s25 + $0x1f0] sm:$0xff] %vm9284_vm4, %v9282_v24  ;;  %v5672_v15 = vcombine.low %v5664_v33, %v5671_v16  ;;  %v5801_v30 = vsel %vm5459_vm7, %v5655_v35, 0.0  ;;  %v6460_v61 = vrot.slane %v6167_v41, %v9832_v47  ;;  %v6464_v50 = vrot.slane %v6168_v10, %v9832_v47  ;;  %v9200_v35 = vld [vmem:[%s9933_s20 + $0x160] sm:$0xff] }
 0x28a   : > { %v6192_v1 = vcombine.high %v6190_v4, %v6190_v4  ;;  %v6468_v20 = vrot.slane %v6183_v13, %v9832_v47  ;;  %v6472_v34 = vrot.slane %v6190_v4, %v9832_v47  ;;  %v6476_v32 = vrot.slane %v6191_v18, %v9832_v47 }
 0x28b   : > { %v5803_v46 = vsel %vm5459_vm7, %v5672_v15, 0.0  ;;  %v6727_v58 = vcombine.low %v6452_v26, %v6456_v62  ;;  %v6987_v6 = vcombine.high %v10924_v22, %v10924_v22  ;;  %v6728_v40 = vcombine.low %v6460_v61, %v6464_v50  ;;  %v9202_v26 = vld [vmem:[%s9933_s20 + $0x170] sm:$0xff] }
 0x28c   : > { %v6480_v29 = vrot.slane %v6192_v1, %v9832_v47  ;;  %v6744_v36 = vcombine.low %v6468_v20, %v6472_v34  ;;  %v7095_v53 = vrot.slane %v10924_v22, %v9828_v44  ;;  %v11404_v12 = vadd.s32 6, %v9830_v45 }
 0x28d   : > { %v6735_v19 = vrot.slane %v6727_v58, %v9834_v48  ;;  %v7119_v49 = vrot.slane %v6987_v6, %v9828_v44  ;;  %v8075_v21 = vcombine.high %v10945_v43, %v10945_v43  ;;  %v6742_v5 = vrot.slane %v6728_v40, %v9834_v48 }
 0x28e   : > { %v6745_v42 = vcombine.low %v6476_v32, %v6480_v29  ;;  %v6752_v56 = vrot.slane %v6744_v36, %v9834_v48  ;;  %v7096_v60 = vcombine.high %v7095_v53, %v7095_v53  ;;  %v7103_v25 = vrot.slane %v7095_v53, %v9828_v44 }
 0x28f   : > { %v7120_v22 = vcombine.high %v7119_v49, %v7119_v49  ;;  %v7127_v0 = vrot.slane %v7119_v49, %v9828_v44  ;;  %v8183_v45 = vrot.slane %v10945_v43, %v9828_v44  ;;  %v6743_v31 = vcombine.low %v6735_v19, %v6742_v5 }
 0x290   : > { %v6759_v55 = vrot.slane %v6745_v42, %v9834_v48  ;;  %v7110_v51 = vrot.slane %v7096_v60, %v9828_v44  ;;  %v8207_v27 = vrot.slane %v8075_v21, %v9828_v44  ;;  %v7111_v59 = vcombine.high %v7103_v25, %v7103_v25 }
 0x291   : > { %v7134_v41 = vrot.slane %v7120_v22, %v9828_v44  ;;  %v7135_v11 = vcombine.high %v7127_v0, %v7127_v0  ;;  %v7444_v13 = vrot.slane %v7103_v25, %v9832_v47  ;;  %vm7636_vm9 = vcmp.eq.s32.totalorder %v11404_v12, 6 }
 0x292   : > { %v6760_v24 = vcombine.low %v6752_v56, %v6759_v55  ;;  %v6889_v43 = vsel %vm6547_vm8, %v6743_v31, %v5801_v30  ;;  %v7112_v33 = vcombine.high %v7110_v51, %v7110_v51  ;;  %v7448_v16 = vrot.slane %v7110_v51, %v9832_v47 }
 0x293   : > { %v9136_v10 = vadd.f32 %v11298_v17, %v6889_v43  ;;  %v7136_v4 = vcombine.high %v7134_v41, %v7134_v41  ;;  %v7452_v18 = vrot.slane %v7111_v59, %v9832_v47  ;;  %v7460_v62 = vrot.slane %v7127_v0, %v9832_v47 }
 0x294   : > { %v6891_v15 = vsel %vm6547_vm8, %v6760_v24, %v5803_v46  ;;  %v7456_v61 = vrot.slane %v7112_v33, %v9832_v47  ;;  %v7464_v30 = vrot.slane %v7134_v41, %v9832_v47  ;;  %v7468_v1 = vrot.slane %v7135_v11, %v9832_v47 }
 0x295   : > { %v9138_v50 = vadd.f32 %v11298_v17, %v6891_v15  ;;  %v9264_v20 = vadd.f32 %v9200_v35, %v9136_v10  ;;  %v7472_v34 = vrot.slane %v7136_v4, %v9832_v47  ;;  %v7713_v32 = vcombine.low %v7444_v13, %v7448_v16 }
 0x296   : > { %v7714_v58 = vcombine.low %v7452_v18, %v7456_v61  ;;  %v7730_v6 = vcombine.low %v7460_v62, %v7464_v30  ;;  %v8184_v29 = vcombine.high %v8183_v45, %v8183_v45  ;;  %v8191_v38 = vrot.slane %v8183_v45, %v9828_v44 }
 0x297   : > { %v9266_v46 = vadd.f32 %v9202_v26, %v9138_v50  ;;  %9329 = vst.msk [vmem:[%s9973_s25 + $0x160] sm:$0xff] %vm9284_vm4, %v9264_v20  ;;  %v7721_v40 = vrot.slane %v7713_v32, %v9834_v48  ;;  %v7731_v36 = vcombine.low %v7468_v1, %v7472_v34  ;;  %v8208_v53 = vcombine.high %v8207_v27, %v8207_v27 }
 0x298   : > { %v7728_v19 = vrot.slane %v7714_v58, %v9834_v48  ;;  %v7738_v49 = vrot.slane %v7730_v6, %v9834_v48  ;;  %v8198_v21 = vrot.slane %v8184_v29, %v9828_v44  ;;  %v8199_v5 = vcombine.high %v8191_v38, %v8191_v38 }
 0x299   : > { %9331 = vst.msk [vmem:[%s9973_s25 + $0x170] sm:$0xff] %vm9284_vm4, %v9266_v46  ;;  %v7745_v42 = vrot.slane %v7731_v36, %v9834_v48  ;;  %v8215_v56 = vrot.slane %v8207_v27, %v9828_v44  ;;  %v8222_v60 = vrot.slane %v8208_v53, %v9828_v44  ;;  %v8532_v25 = vrot.slane %v8191_v38, %v9832_v47 }
 0x29a   : > { %v7729_v22 = vcombine.low %v7721_v40, %v7728_v19  ;;  %v8200_v0 = vcombine.high %v8198_v21, %v8198_v21  ;;  %v8536_v45 = vrot.slane %v8198_v21, %v9832_v47  ;;  %v8540_v31 = vrot.slane %v8199_v5, %v9832_v47 }
 0x29b   : > { %v7746_v55 = vcombine.low %v7738_v49, %v7745_v42  ;;  %v8223_v51 = vcombine.high %v8215_v56, %v8215_v56  ;;  %v8224_v59 = vcombine.high %v8222_v60, %v8222_v60  ;;  %v8548_v41 = vrot.slane %v8215_v56, %v9832_v47  ;;  %v9181_v49 = vld [vmem:[%s9933_s20 + $0xc8] sm:$0xff] }
 0x29c   : > { %v7958_v11 = vsel %vm7636_vm9, %v7729_v22, 0.0  ;;  %v8544_v27 = vrot.slane %v8200_v0, %v9832_v47  ;;  %v8552_v13 = vrot.slane %v8222_v60, %v9832_v47  ;;  %vm8724_vm10 = vcmp.eq.s32.totalorder %v11404_v12, 7 }
 0x29d   : > { %v7960_v24 = vsel %vm7636_vm9, %v7746_v55, 0.0  ;;  %v8556_v43 = vrot.slane %v8223_v51, %v9832_v47  ;;  %v8560_v35 = vrot.slane %v8224_v59, %v9832_v47  ;;  %v8801_v33 = vcombine.low %v8532_v25, %v8536_v45  ;;  %v9183_v25 = vld [vmem:[%s9933_s20 + $0xd8] sm:$0xff] }
 0x29e   : > { %v8802_v16 = vcombine.low %v8540_v31, %v8544_v27  ;;  %v8818_v10 = vcombine.low %v8548_v41, %v8552_v13  ;;  %v6985_v4 = vcombine.high %v10976_v7, %v10976_v7  ;;  %v6999_v18 = vrot.slane %v10976_v7, %v9828_v44 }
 0x29f   : > { %v8809_v62 = vrot.slane %v8801_v33, %v9834_v48  ;;  %v8819_v15 = vcombine.low %v8556_v43, %v8560_v35  ;;  %v8073_v26 = vcombine.high %v11011_v14, %v11011_v14  ;;  %v8087_v61 = vrot.slane %v11011_v14, %v9828_v44 }
 0x2a0   : > { %v8816_v30 = vrot.slane %v8802_v16, %v9834_v48  ;;  %v8826_v1 = vrot.slane %v8818_v10, %v9834_v48  ;;  %v7000_v50 = vcombine.high %v6999_v18, %v6999_v18  ;;  %v7007_v20 = vrot.slane %v6999_v18, %v9828_v44 }
 0x2a1   : > { %v8833_v34 = vrot.slane %v8819_v15, %v9834_v48  ;;  %v7023_v7 = vrot.slane %v6985_v4, %v9828_v44  ;;  %v8088_v32 = vcombine.high %v8087_v61, %v8087_v61  ;;  %v8095_v58 = vrot.slane %v8087_v61, %v9828_v44 }
 0x2a2   : > { %v8817_v6 = vcombine.low %v8809_v62, %v8816_v30  ;;  %v7014_v29 = vrot.slane %v7000_v50, %v9828_v44  ;;  %v7015_v14 = vcombine.high %v7007_v20, %v7007_v20  ;;  %v7380_v38 = vrot.slane %v7007_v20, %v9832_v47 }
 0x2a3   : > { %v8834_v46 = vcombine.low %v8826_v1, %v8833_v34  ;;  %v7024_v40 = vcombine.high %v7023_v7, %v7023_v7  ;;  %v7031_v36 = vrot.slane %v7023_v7, %v9828_v44  ;;  %v8102_v53 = vrot.slane %v8088_v32, %v9828_v44 }
 0x2a4   : > { %v9046_v19 = vsel %vm8724_vm10, %v8817_v6, %v7958_v11  ;;  %v7016_v21 = vcombine.high %v7014_v29, %v7014_v29  ;;  %v7384_v5 = vrot.slane %v7014_v29, %v9832_v47  ;;  %v7388_v42 = vrot.slane %v7015_v14, %v9832_v47 }
 0x2a5   : > { %v9048_v56 = vsel %vm8724_vm10, %v8834_v46, %v7960_v24  ;;  %v9117_v60 = vadd.f32 %v11298_v17, %v9046_v19  ;;  %v7038_v22 = vrot.slane %v7024_v40, %v9828_v44  ;;  %v7039_v0 = vcombine.high %v7031_v36, %v7031_v36 }
 0x2a6   : > { %v9119_v45 = vadd.f32 %v11298_v17, %v9048_v56  ;;  %v7392_v31 = vrot.slane %v7016_v21, %v9832_v47  ;;  %v7396_v55 = vrot.slane %v7031_v36, %v9832_v47  ;;  %v7645_v51 = vcombine.low %v7380_v38, %v7384_v5 }
 0x2a7   : > { %v9245_v59 = vadd.f32 %v9181_v49, %v9117_v60  ;;  %v7040_v41 = vcombine.high %v7038_v22, %v7038_v22  ;;  %v7400_v11 = vrot.slane %v7038_v22, %v9832_v47  ;;  %v7404_v27 = vrot.slane %v7039_v0, %v9832_v47 }
 0x2a8   : > { %v9247_v13 = vadd.f32 %v9183_v25, %v9119_v45  ;;  %v7646_v24 = vcombine.low %v7388_v42, %v7392_v31  ;;  %v7653_v43 = vrot.slane %v7645_v51, %v9834_v48  ;;  %v8103_v35 = vcombine.high %v8095_v58, %v8095_v58 }
 0x2a9   : > { %9310 = vst.msk [vmem:[%s9973_s25 + $0xc8] sm:$0xff] %vm9284_vm4, %v9245_v59  ;;  %v7408_v33 = vrot.slane %v7040_v41, %v9832_v47  ;;  %v7662_v16 = vcombine.low %v7396_v55, %v7400_v11  ;;  %v8104_v10 = vcombine.high %v8102_v53, %v8102_v53  ;;  %v8111_v4 = vrot.slane %v8073_v26, %v9828_v44 }
 0x2aa   : > { %9312 = vst.msk [vmem:[%s9973_s25 + $0xd8] sm:$0xff] %vm9284_vm4, %v9247_v13  ;;  %v7660_v18 = vrot.slane %v7646_v24, %v9834_v48  ;;  %v8468_v62 = vrot.slane %v8095_v58, %v9832_v47  ;;  %v8472_v15 = vrot.slane %v8102_v53, %v9832_v47  ;;  %v8476_v61 = vrot.slane %v8103_v35, %v9832_v47  ;;  %v9165_v24 = vld [vmem:[%s9933_s20 + $0x48] sm:$0xff] }
 0x2ab   : > { %v7663_v30 = vcombine.low %v7404_v27, %v7408_v33  ;;  %v7670_v1 = vrot.slane %v7662_v16, %v9834_v48  ;;  %v8112_v50 = vcombine.high %v8111_v4, %v8111_v4  ;;  %v8119_v20 = vrot.slane %v8111_v4, %v9828_v44 }
 0x2ac   : > { %v7661_v34 = vcombine.low %v7653_v43, %v7660_v18  ;;  %v8480_v7 = vrot.slane %v8104_v10, %v9832_v47  ;;  %v8733_v26 = vcombine.low %v8468_v62, %v8472_v15  ;;  %v6988_v32 = vcombine.high %v11037_v37, %v11037_v37 }
 0x2ad   : > { %v7677_v6 = vrot.slane %v7663_v30, %v9834_v48  ;;  %v8126_v58 = vrot.slane %v8112_v50, %v9828_v44  ;;  %v8127_v29 = vcombine.high %v8119_v20, %v8119_v20  ;;  %v8484_v14 = vrot.slane %v8119_v20, %v9832_v47 }
 0x2ae   : > { %v7942_v38 = vsel %vm7636_vm9, %v7661_v34, 0.0  ;;  %v8734_v46 = vcombine.low %v8476_v61, %v8480_v7  ;;  %v8741_v40 = vrot.slane %v8733_v26, %v9834_v48  ;;  %v7143_v36 = vrot.slane %v11037_v37, %v9828_v44 }
 0x2af   : > { %v7678_v53 = vcombine.low %v7670_v1, %v7677_v6  ;;  %v8128_v19 = vcombine.high %v8126_v58, %v8126_v58  ;;  %v8488_v49 = vrot.slane %v8126_v58, %v9832_v47  ;;  %v8492_v21 = vrot.slane %v8127_v29, %v9832_v47  ;;  %v9167_v29 = vld [vmem:[%s9933_s20 + $0x58] sm:$0xff] }
 0x2b0   : > { %v8748_v5 = vrot.slane %v8734_v46, %v9834_v48  ;;  %v7144_v42 = vcombine.high %v7143_v36, %v7143_v36  ;;  %v7151_v56 = vrot.slane %v7143_v36, %v9828_v44  ;;  %v7167_v60 = vrot.slane %v6988_v32, %v9828_v44 }
 0x2b1   : > { %v7944_v25 = vsel %vm7636_vm9, %v7678_v53, 0.0  ;;  %v8496_v22 = vrot.slane %v8128_v19, %v9832_v47  ;;  %v8750_v37 = vcombine.low %v8484_v14, %v8488_v49  ;;  %v8076_v0 = vcombine.high %v11067_v2, %v11067_v2 }
 0x2b2   : > { %v8749_v45 = vcombine.low %v8741_v40, %v8748_v5  ;;  %v7158_v31 = vrot.slane %v7144_v42, %v9828_v44  ;;  %v7159_v55 = vcombine.high %v7151_v56, %v7151_v56  ;;  %v7168_v51 = vcombine.high %v7167_v60, %v7167_v60 }
 0x2b3   : > { %v8751_v59 = vcombine.low %v8492_v21, %v8496_v22  ;;  %v8758_v41 = vrot.slane %v8750_v37, %v9834_v48  ;;  %v7175_v11 = vrot.slane %v7167_v60, %v9828_v44  ;;  %v7476_v27 = vrot.slane %v7151_v56, %v9832_v47 }
 0x2b4   : > { %v9030_v13 = vsel %vm8724_vm10, %v8749_v45, %v7942_v38  ;;  %v7160_v43 = vcombine.high %v7158_v31, %v7158_v31  ;;  %v7182_v35 = vrot.slane %v7168_v51, %v9828_v44  ;;  %v7480_v33 = vrot.slane %v7158_v31, %v9832_v47 }
 0x2b5   : > { %v8765_v16 = vrot.slane %v8751_v59, %v9834_v48  ;;  %v9101_v10 = vadd.f32 %v11298_v17, %v9030_v13  ;;  %v7183_v4 = vcombine.high %v7175_v11, %v7175_v11  ;;  %v7484_v18 = vrot.slane %v7159_v55, %v9832_v47 }
 0x2b6   : > { %v7184_v62 = vcombine.high %v7182_v35, %v7182_v35  ;;  %v7488_v15 = vrot.slane %v7160_v43, %v9832_v47  ;;  %v7492_v61 = vrot.slane %v7175_v11, %v9832_v47  ;;  %v7496_v30 = vrot.slane %v7182_v35, %v9832_v47 }
 0x2b7   : > { %v8766_v1 = vcombine.low %v8758_v41, %v8765_v16  ;;  %v9229_v50 = vadd.f32 %v9165_v24, %v9101_v10  ;;  %v7500_v20 = vrot.slane %v7183_v4, %v9832_v47  ;;  %v7747_v34 = vcombine.low %v7476_v27, %v7480_v33 }
 0x2b8   : > { %v7504_v7 = vrot.slane %v7184_v62, %v9832_v47  ;;  %v7748_v26 = vcombine.low %v7484_v18, %v7488_v15  ;;  %v7764_v32 = vcombine.low %v7492_v61, %v7496_v30  ;;  %v8231_v6 = vrot.slane %v11067_v2, %v9828_v44 }
 0x2b9   : > { %v9032_v58 = vsel %vm8724_vm10, %v8766_v1, %v7944_v25  ;;  %9294 = vst.msk [vmem:[%s9973_s25 + $0x48] sm:$0xff] %vm9284_vm4, %v9229_v50  ;;  %v7755_v14 = vrot.slane %v7747_v34, %v9834_v48  ;;  %v8255_v38 = vrot.slane %v8076_v0, %v9828_v44  ;;  %v6986_v46 = vcombine.high %v11103_v3, %v11103_v3 }
 0x2ba   : > { %v9103_v40 = vadd.f32 %v11298_v17, %v9032_v58  ;;  %v7762_v36 = vrot.slane %v7748_v26, %v9834_v48  ;;  %v7765_v53 = vcombine.low %v7500_v20, %v7504_v7  ;;  %v7772_v2 = vrot.slane %v7764_v32, %v9834_v48 }
 0x2bb   : > { %v8232_v19 = vcombine.high %v8231_v6, %v8231_v6  ;;  %v8239_v49 = vrot.slane %v8231_v6, %v9828_v44  ;;  %v8256_v21 = vcombine.high %v8255_v38, %v8255_v38  ;;  %v8263_v5 = vrot.slane %v8255_v38, %v9828_v44 }
 0x2bc   : > { %v9231_v42 = vadd.f32 %v9167_v29, %v9103_v40  ;;  %v7763_v56 = vcombine.low %v7755_v14, %v7762_v36  ;;  %v7779_v60 = vrot.slane %v7765_v53, %v9834_v48  ;;  %v7047_v25 = vrot.slane %v11103_v3, %v9828_v44 }
 0x2bd   : > { %v8246_v22 = vrot.slane %v8232_v19, %v9828_v44  ;;  %v8247_v37 = vcombine.high %v8239_v49, %v8239_v49  ;;  %v8270_v0 = vrot.slane %v8256_v21, %v9828_v44  ;;  %v8271_v45 = vcombine.high %v8263_v5, %v8263_v5 }
 0x2be   : > { %9296 = vst.msk [vmem:[%s9973_s25 + $0x58] sm:$0xff] %vm9284_vm4, %v9231_v42  ;;  %v7780_v31 = vcombine.low %v7772_v2, %v7779_v60  ;;  %v7962_v55 = vsel %vm7636_vm9, %v7763_v56, 0.0  ;;  %v8564_v51 = vrot.slane %v8239_v49, %v9832_v47  ;;  %v8580_v59 = vrot.slane %v8263_v5, %v9832_v47 }
 0x2bf   : > { %v8248_v41 = vcombine.high %v8246_v22, %v8246_v22  ;;  %v8272_v11 = vcombine.high %v8270_v0, %v8270_v0  ;;  %v8568_v3 = vrot.slane %v8246_v22, %v9832_v47  ;;  %v8572_v27 = vrot.slane %v8247_v37, %v9832_v47  ;;  %v9185_v22 = vld [vmem:[%s9933_s20 + $0xe8] sm:$0xff]  ;;  %v9187_v37 = vld [vmem:[%s9933_s20 + $0xf8] sm:$0xff] }
 0x2c0   : > { %v7964_v13 = vsel %vm7636_vm9, %v7780_v31, 0.0  ;;  %v8584_v24 = vrot.slane %v8270_v0, %v9832_v47  ;;  %v8588_v43 = vrot.slane %v8271_v45, %v9832_v47  ;;  %v7048_v35 = vcombine.high %v7047_v25, %v7047_v25 }
 0x2c1   : > { %v8576_v33 = vrot.slane %v8248_v41, %v9832_v47  ;;  %v8592_v16 = vrot.slane %v8272_v11, %v9832_v47  ;;  %v8835_v10 = vcombine.low %v8564_v51, %v8568_v3  ;;  %v7055_v4 = vrot.slane %v7047_v25, %v9828_v44 }
 0x2c2   : > { %v8852_v18 = vcombine.low %v8580_v59, %v8584_v24  ;;  %v7062_v62 = vrot.slane %v7048_v35, %v9828_v44  ;;  %v7071_v15 = vrot.slane %v6986_v46, %v9828_v44  ;;  %v8074_v61 = vcombine.high %v11126_v57, %v11126_v57 }
 0x2c3   : > { %v8836_v30 = vcombine.low %v8572_v27, %v8576_v33  ;;  %v8843_v1 = vrot.slane %v8835_v10, %v9834_v48  ;;  %v8853_v50 = vcombine.low %v8588_v43, %v8592_v16  ;;  %v7063_v20 = vcombine.high %v7055_v4, %v7055_v4 }
 0x2c4   : > { %v8860_v34 = vrot.slane %v8852_v18, %v9834_v48  ;;  %v7064_v7 = vcombine.high %v7062_v62, %v7062_v62  ;;  %v7072_v26 = vcombine.high %v7071_v15, %v7071_v15  ;;  %v7079_v32 = vrot.slane %v7071_v15, %v9828_v44 }
 0x2c5   : > { %v8850_v6 = vrot.slane %v8836_v30, %v9834_v48  ;;  %v8867_v58 = vrot.slane %v8853_v50, %v9834_v48  ;;  %v7412_v29 = vrot.slane %v7055_v4, %v9832_v47  ;;  %v7416_v14 = vrot.slane %v7062_v62, %v9832_v47 }
 0x2c6   : > { %v7086_v38 = vrot.slane %v7072_v26, %v9828_v44  ;;  %v7087_v46 = vcombine.high %v7079_v32, %v7079_v32  ;;  %v7420_v40 = vrot.slane %v7063_v20, %v9832_v47  ;;  %v7424_v36 = vrot.slane %v7064_v7, %v9832_v47 }
 0x2c7   : > { %v8851_v53 = vcombine.low %v8843_v1, %v8850_v6  ;;  %v8868_v2 = vcombine.low %v8860_v34, %v8867_v58  ;;  %v7428_v19 = vrot.slane %v7079_v32, %v9832_v47  ;;  %v7679_v49 = vcombine.low %v7412_v29, %v7416_v14 }
 0x2c8   : > { %v7088_v21 = vcombine.high %v7086_v38, %v7086_v38  ;;  %v7432_v5 = vrot.slane %v7086_v38, %v9832_v47  ;;  %v7436_v42 = vrot.slane %v7087_v46, %v9832_v47  ;;  %v7680_v56 = vcombine.low %v7420_v40, %v7424_v36 }
 0x2c9   : > { %v9050_v60 = vsel %vm8724_vm10, %v8851_v53, %v7962_v55  ;;  %v9052_v25 = vsel %vm8724_vm10, %v8868_v2, %v7964_v13  ;;  %v7687_v0 = vrot.slane %v7679_v49, %v9834_v48  ;;  %v8135_v45 = vrot.slane %v11126_v57, %v9828_v44 }
 0x2ca   : > { %v9121_v31 = vadd.f32 %v11298_v17, %v9050_v60  ;;  %v9123_v51 = vadd.f32 %v11298_v17, %v9052_v25  ;;  %v7440_v59 = vrot.slane %v7088_v21, %v9832_v47  ;;  %v7694_v55 = vrot.slane %v7680_v56, %v9834_v48 }
 0x2cb   : > { %v7696_v41 = vcombine.low %v7428_v19, %v7432_v5  ;;  %v8136_v11 = vcombine.high %v8135_v45, %v8135_v45  ;;  %v8143_v3 = vrot.slane %v8135_v45, %v9828_v44  ;;  %v8159_v27 = vrot.slane %v8074_v61, %v9828_v44 }
 0x2cc   : > { %v9249_v13 = vadd.f32 %v9185_v22, %v9121_v31  ;;  %v9251_v24 = vadd.f32 %v9187_v37, %v9123_v51  ;;  %v7695_v43 = vcombine.low %v7687_v0, %v7694_v55  ;;  %v7697_v57 = vcombine.low %v7436_v42, %v7440_v59 }
 0x2cd   : > { %v7704_v35 = vrot.slane %v7696_v41, %v9834_v48  ;;  %v8150_v33 = vrot.slane %v8136_v11, %v9828_v44  ;;  %v8151_v16 = vcombine.high %v8143_v3, %v8143_v3  ;;  %v8160_v10 = vcombine.high %v8159_v27, %v8159_v27 }
 0x2ce   : > { %9314 = vst.msk [vmem:[%s9973_s25 + $0xe8] sm:$0xff] %vm9284_vm4, %v9249_v13  ;;  %9316 = vst.msk [vmem:[%s9973_s25 + $0xf8] sm:$0xff] %vm9284_vm4, %v9251_v24  ;;  %v7711_v4 = vrot.slane %v7697_v57, %v9834_v48  ;;  %v7946_v18 = vsel %vm7636_vm9, %v7695_v43, 0.0  ;;  %v8167_v62 = vrot.slane %v8159_v27, %v9828_v44  ;;  %v8500_v15 = vrot.slane %v8143_v3, %v9832_v47  ;;  %v9169_v43 = vld [vmem:[%s9933_s20 + $0x68] sm:$0xff] }
 0x2cf   : > { %v8152_v61 = vcombine.high %v8150_v33, %v8150_v33  ;;  %v8174_v30 = vrot.slane %v8160_v10, %v9828_v44  ;;  %v8504_v1 = vrot.slane %v8150_v33, %v9832_v47  ;;  %v8508_v50 = vrot.slane %v8151_v16, %v9832_v47 }
 0x2d0   : > { %v7712_v20 = vcombine.low %v7704_v35, %v7711_v4  ;;  %v8175_v34 = vcombine.high %v8167_v62, %v8167_v62  ;;  %v8516_v7 = vrot.slane %v8167_v62, %v9832_v47  ;;  %v6991_v26 = vcombine.high %v11177_v8, %v11177_v8 }
 0x2d1   : > { %v8176_v32 = vcombine.high %v8174_v30, %v8174_v30  ;;  %v8512_v6 = vrot.slane %v8152_v61, %v9832_v47  ;;  %v8520_v58 = vrot.slane %v8174_v30, %v9832_v47  ;;  %v8767_v29 = vcombine.low %v8500_v15, %v8504_v1  ;;  %v9171_v15 = vld [vmem:[%s9933_s20 + $0x78] sm:$0xff] }
 0x2d2   : > { %v7948_v14 = vsel %vm7636_vm9, %v7712_v20, 0.0  ;;  %v8524_v38 = vrot.slane %v8175_v34, %v9832_v47  ;;  %v7287_v46 = vrot.slane %v11177_v8, %v9828_v44  ;;  %v7311_v40 = vrot.slane %v6991_v26, %v9828_v44 }
 0x2d3   : > { %v8528_v36 = vrot.slane %v8176_v32, %v9832_v47  ;;  %v8768_v53 = vcombine.low %v8508_v50, %v8512_v6  ;;  %v8775_v2 = vrot.slane %v8767_v29, %v9834_v48  ;;  %v8784_v19 = vcombine.low %v8516_v7, %v8520_v58 }
 0x2d4   : > { %v7288_v49 = vcombine.high %v7287_v46, %v7287_v46  ;;  %v7295_v21 = vrot.slane %v7287_v46, %v9828_v44  ;;  %v7312_v5 = vcombine.high %v7311_v40, %v7311_v40  ;;  %v7319_v42 = vrot.slane %v7311_v40, %v9828_v44 }
 0x2d5   : > { %v8782_v56 = vrot.slane %v8768_v53, %v9834_v48  ;;  %v8785_v60 = vcombine.low %v8524_v38, %v8528_v36  ;;  %v8792_v25 = vrot.slane %v8784_v19, %v9834_v48  ;;  %v8079_v8 = vcombine.high %v11192_v52, %v11192_v52 }
 0x2d6   : > { %v7302_v22 = vrot.slane %v7288_v49, %v9828_v44  ;;  %v7303_v37 = vcombine.high %v7295_v21, %v7295_v21  ;;  %v7326_v0 = vrot.slane %v7312_v5, %v9828_v44  ;;  %v7327_v45 = vcombine.high %v7319_v42, %v7319_v42 }
 0x2d7   : > { %v8783_v31 = vcombine.low %v8775_v2, %v8782_v56  ;;  %v8799_v51 = vrot.slane %v8785_v60, %v9834_v48  ;;  %v7572_v59 = vrot.slane %v7295_v21, %v9832_v47  ;;  %v7588_v55 = vrot.slane %v7319_v42, %v9832_v47 }
 0x2d8   : > { %v7304_v41 = vcombine.high %v7302_v22, %v7302_v22  ;;  %v7328_v11 = vcombine.high %v7326_v0, %v7326_v0  ;;  %v7576_v3 = vrot.slane %v7302_v22, %v9832_v47  ;;  %v7580_v27 = vrot.slane %v7303_v37, %v9832_v47 }
 0x2d9   : > { %v8800_v13 = vcombine.low %v8792_v25, %v8799_v51  ;;  %v9034_v24 = vsel %vm8724_vm10, %v8783_v31, %v7946_v18  ;;  %v7592_v57 = vrot.slane %v7326_v0, %v9832_v47  ;;  %v7596_v35 = vrot.slane %v7327_v45, %v9832_v47 }
 0x2da   : > { %v9105_v33 = vadd.f32 %v11298_v17, %v9034_v24  ;;  %v7584_v16 = vrot.slane %v7304_v41, %v9832_v47  ;;  %v7600_v10 = vrot.slane %v7328_v11, %v9832_v47  ;;  %v7849_v4 = vcombine.low %v7572_v59, %v7576_v3 }
 0x2db   : > { %v9036_v62 = vsel %vm8724_vm10, %v8800_v13, %v7948_v14  ;;  %v7866_v61 = vcombine.low %v7588_v55, %v7592_v57  ;;  %v8375_v18 = vrot.slane %v11192_v52, %v9828_v44  ;;  %v8399_v30 = vrot.slane %v8079_v8, %v9828_v44 }
 0x2dc   : > { %v9107_v1 = vadd.f32 %v11298_v17, %v9036_v62  ;;  %v9233_v50 = vadd.f32 %v9169_v43, %v9105_v33  ;;  %v7850_v20 = vcombine.low %v7580_v27, %v7584_v16  ;;  %v7857_v34 = vrot.slane %v7849_v4, %v9834_v48 }
 0x2dd   : > { %v7867_v7 = vcombine.low %v7596_v35, %v7600_v10  ;;  %v7874_v26 = vrot.slane %v7866_v61, %v9834_v48  ;;  %v8376_v32 = vcombine.high %v8375_v18, %v8375_v18  ;;  %v8383_v6 = vrot.slane %v8375_v18, %v9828_v44 }
 0x2de   : > { %v9235_v58 = vadd.f32 %v9171_v15, %v9107_v1  ;;  %9298 = vst.msk [vmem:[%s9973_s25 + $0x68] sm:$0xff] %vm9284_vm4, %v9233_v50  ;;  %v7864_v52 = vrot.slane %v7850_v20, %v9834_v48  ;;  %v8400_v29 = vcombine.high %v8399_v30, %v8399_v30  ;;  %v8407_v14 = vrot.slane %v8399_v30, %v9828_v44 }
 0x2df   : > { %v7881_v17 = vrot.slane %v7867_v7, %v9834_v48  ;;  %v8390_v38 = vrot.slane %v8376_v32, %v9828_v44  ;;  %v8391_v46 = vcombine.high %v8383_v6, %v8383_v6  ;;  %v8660_v40 = vrot.slane %v8383_v6, %v9832_v47 }
 0x2e0   : > { %9300 = vst.msk [vmem:[%s9973_s25 + $0x78] sm:$0xff] %vm9284_vm4, %v9235_v58  ;;  %v7865_v36 = vcombine.low %v7857_v34, %v7864_v52  ;;  %v8414_v53 = vrot.slane %v8400_v29, %v9828_v44  ;;  %v8415_v2 = vcombine.high %v8407_v14, %v8407_v14  ;;  %v8676_v19 = vrot.slane %v8407_v14, %v9832_v47  ;;  %v11724_v29 = vld [vmem:[%s11900_s3] ss:$0 sm:$0xff] }
 0x2e1   : > { %v7882_v49 = vcombine.low %v7874_v26, %v7881_v17  ;;  %v8392_v21 = vcombine.high %v8390_v38, %v8390_v38  ;;  %v8664_v5 = vrot.slane %v8390_v38, %v9832_v47  ;;  %v8668_v42 = vrot.slane %v8391_v46, %v9832_v47  ;;  %v9213_v26 = vld [vmem:[%s9933_s20 + $0x1c8] sm:$0xff]  ;;  %v9215_v17 = vld [vmem:[%s9933_s20 + $0x1d8] sm:$0xff] }
 0x2e2   : > { %v7990_v56 = vsel %vm7636_vm9, %v7865_v36, 0.0  ;;  %v8416_v60 = vcombine.high %v8414_v53, %v8414_v53  ;;  %v8680_v25 = vrot.slane %v8414_v53, %v9832_v47  ;;  %v8684_v8 = vrot.slane %v8415_v2, %v9832_v47 }
 0x2e3   : > { %v7992_v22 = vsel %vm7636_vm9, %v7882_v49, 0.0  ;;  %v8672_v37 = vrot.slane %v8392_v21, %v9832_v47  ;;  %v8937_v0 = vcombine.low %v8660_v40, %v8664_v5  ;;  %v6989_v45 = vcombine.high %v11221_v23, %v11221_v23 }
 0x2e4   : > { %v8688_v31 = vrot.slane %v8416_v60, %v9832_v47  ;;  %v8954_v51 = vcombine.low %v8676_v19, %v8680_v25  ;;  %v7191_v59 = vrot.slane %v11221_v23, %v9828_v44  ;;  %v8077_v55 = vcombine.high %v11251_v54, %v11251_v54 }
 0x2e5   : > { %v8938_v41 = vcombine.low %v8668_v42, %v8672_v37  ;;  %v8945_v11 = vrot.slane %v8937_v0, %v9834_v48  ;;  %v7215_v3 = vrot.slane %v6989_v45, %v9828_v44  ;;  %v8279_v27 = vrot.slane %v11251_v54, %v9828_v44 }
 0x2e6   : > { %v8955_v13 = vcombine.low %v8684_v8, %v8688_v31  ;;  %v8962_v24 = vrot.slane %v8954_v51, %v9834_v48  ;;  %v7192_v43 = vcombine.high %v7191_v59, %v7191_v59  ;;  %v7199_v57 = vrot.slane %v7191_v59, %v9828_v44 }
 0x2e7   : > { %v8952_v35 = vrot.slane %v8938_v41, %v9834_v48  ;;  %v7216_v23 = vcombine.high %v7215_v3, %v7215_v3  ;;  %v7223_v33 = vrot.slane %v7215_v3, %v9828_v44  ;;  %v8280_v16 = vcombine.high %v8279_v27, %v8279_v27 }
 0x2e8   : > { %v8969_v10 = vrot.slane %v8955_v13, %v9834_v48  ;;  %v7206_v4 = vrot.slane %v7192_v43, %v9828_v44  ;;  %v7207_v62 = vcombine.high %v7199_v57, %v7199_v57  ;;  %v7508_v54 = vrot.slane %v7199_v57, %v9832_v47 }
 0x2e9   : > { %v8953_v15 = vcombine.low %v8945_v11, %v8952_v35  ;;  %v7230_v61 = vrot.slane %v7216_v23, %v9828_v44  ;;  %v7231_v18 = vcombine.high %v7223_v33, %v7223_v33  ;;  %v7524_v30 = vrot.slane %v7223_v33, %v9832_v47 }
 0x2ea   : > { %v8970_v1 = vcombine.low %v8962_v24, %v8969_v10  ;;  %v7208_v50 = vcombine.high %v7206_v4, %v7206_v4  ;;  %v7512_v20 = vrot.slane %v7206_v4, %v9832_v47  ;;  %v7516_v34 = vrot.slane %v7207_v62, %v9832_v47 }
 0x2eb   : > { %v9078_v7 = vsel %vm8724_vm10, %v8953_v15, %v7990_v56  ;;  %v7232_v32 = vcombine.high %v7230_v61, %v7230_v61  ;;  %v7528_v6 = vrot.slane %v7230_v61, %v9832_v47  ;;  %v7532_v58 = vrot.slane %v7231_v18, %v9832_v47 }
 0x2ec   : > { %v9080_v52 = vsel %vm8724_vm10, %v8970_v1, %v7992_v22  ;;  %v9149_v14 = vadd.f32 %v11724_v29, %v9078_v7  ;;  %v7520_v38 = vrot.slane %v7208_v50, %v9832_v47  ;;  %v7781_v46 = vcombine.low %v7508_v54, %v7512_v20 }
 0x2ed   : > { %v9151_v40 = vadd.f32 %v11724_v29, %v9080_v52  ;;  %v7536_v36 = vrot.slane %v7232_v32, %v9832_v47  ;;  %v7798_v53 = vcombine.low %v7524_v30, %v7528_v6  ;;  %v8287_v2 = vrot.slane %v8279_v27, %v9828_v44 }
 0x2ee   : > { %v9277_v19 = vadd.f32 %v9213_v26, %v9149_v14  ;;  %v7782_v49 = vcombine.low %v7516_v34, %v7520_v38  ;;  %v7789_v21 = vrot.slane %v7781_v46, %v9834_v48  ;;  %v8294_v5 = vrot.slane %v8280_v16, %v9828_v44 }
 0x2ef   : > { %v9279_v42 = vadd.f32 %v9215_v17, %v9151_v40  ;;  %v7799_v56 = vcombine.low %v7532_v58, %v7536_v36  ;;  %v7806_v60 = vrot.slane %v7798_v53, %v9834_v48  ;;  %v8295_v25 = vcombine.high %v8287_v2, %v8287_v2  ;;  %v9197_v40 = vld [vmem:[%s9933_s20 + $0x148] sm:$0xff] }
 0x2f0   : > { %9342 = vst.msk [vmem:[%s9973_s25 + $0x1c8] sm:$0xff] %vm9284_vm4, %v9277_v19  ;;  %v7796_v8 = vrot.slane %v7782_v49, %v9834_v48  ;;  %v8296_v22 = vcombine.high %v8294_v5, %v8294_v5  ;;  %v8303_v37 = vrot.slane %v8077_v55, %v9828_v44  ;;  %v8596_v0 = vrot.slane %v8287_v2, %v9832_v47 }
 0x2f1   : > { %9344 = vst.msk [vmem:[%s9973_s25 + $0x1d8] sm:$0xff] %vm9284_vm4, %v9279_v42  ;;  %v7813_v45 = vrot.slane %v7799_v56, %v9834_v48  ;;  %v8600_v31 = vrot.slane %v8294_v5, %v9832_v47  ;;  %v8604_v51 = vrot.slane %v8295_v25, %v9832_v47  ;;  %v6992_v59 = vcombine.high %v11288_v63, %v11288_v63 }
 0x2f2   : > { %v7797_v41 = vcombine.low %v7789_v21, %v7796_v8  ;;  %v8304_v11 = vcombine.high %v8303_v37, %v8303_v37  ;;  %v8311_v3 = vrot.slane %v8303_v37, %v9828_v44  ;;  %v8608_v27 = vrot.slane %v8296_v22, %v9832_v47 }
 0x2f3   : > { %v7814_v55 = vcombine.low %v7806_v60, %v7813_v45  ;;  %v8869_v13 = vcombine.low %v8596_v0, %v8600_v31  ;;  %v7335_v24 = vrot.slane %v11288_v63, %v9828_v44  ;;  %v7359_v43 = vrot.slane %v6992_v59, %v9828_v44 }
 0x2f4   : > { %v7974_v57 = vsel %vm7636_vm9, %v7797_v41, 0.0  ;;  %v8318_v35 = vrot.slane %v8304_v11, %v9828_v44  ;;  %v8319_v23 = vcombine.high %v8311_v3, %v8311_v3  ;;  %v8612_v16 = vrot.slane %v8311_v3, %v9832_v47  ;;  %v9199_v41 = vld [vmem:[%s9933_s20 + $0x158] sm:$0xff] }
 0x2f5   : > { %v7976_v33 = vsel %vm7636_vm9, %v7814_v55, 0.0  ;;  %v8870_v10 = vcombine.low %v8604_v51, %v8608_v27  ;;  %v7336_v4 = vcombine.high %v7335_v24, %v7335_v24  ;;  %v8877_v63 = vrot.slane %v8869_v13, %v9834_v48 }
 0x2f6   : > { %v8320_v62 = vcombine.high %v8318_v35, %v8318_v35  ;;  %v8616_v54 = vrot.slane %v8318_v35, %v9832_v47  ;;  %v7343_v15 = vrot.slane %v7335_v24, %v9828_v44  ;;  %v7360_v30 = vcombine.high %v7359_v43, %v7359_v43 }
 0x2f7   : > { %v8884_v61 = vrot.slane %v8870_v10, %v9834_v48  ;;  %v7350_v18 = vrot.slane %v7336_v4, %v9828_v44  ;;  %v7367_v1 = vrot.slane %v7359_v43, %v9828_v44  ;;  %v8620_v50 = vrot.slane %v8319_v23, %v9832_v47 }
 0x2f8   : > { %v8624_v20 = vrot.slane %v8320_v62, %v9832_v47  ;;  %v8886_v34 = vcombine.low %v8612_v16, %v8616_v54  ;;  %v7351_v7 = vcombine.high %v7343_v15, %v7343_v15  ;;  %v7374_v6 = vrot.slane %v7360_v30, %v9828_v44 }
 0x2f9   : > { %v8885_v26 = vcombine.low %v8877_v63, %v8884_v61  ;;  %v7352_v32 = vcombine.high %v7350_v18, %v7350_v18  ;;  %v7375_v58 = vcombine.high %v7367_v1, %v7367_v1  ;;  %v7604_v17 = vrot.slane %v7343_v15, %v9832_v47 }
 0x2fa   : > { %v8887_v52 = vcombine.low %v8620_v50, %v8624_v20  ;;  %v8894_v14 = vrot.slane %v8886_v34, %v9834_v48  ;;  %v7608_v38 = vrot.slane %v7350_v18, %v9832_v47  ;;  %v7376_v36 = vcombine.high %v7374_v6, %v7374_v6 }
 0x2fb   : > { %v9062_v46 = vsel %vm8724_vm10, %v8885_v26, %v7974_v57  ;;  %v7612_v53 = vrot.slane %v7351_v7, %v9832_v47  ;;  %v7616_v2 = vrot.slane %v7352_v32, %v9832_v47  ;;  %v7624_v21 = vrot.slane %v7374_v6, %v9832_v47 }
 0x2fc   : > { %v8901_v19 = vrot.slane %v8887_v52, %v9834_v48  ;;  %v9133_v49 = vadd.f32 %v11724_v29, %v9062_v46  ;;  %v7628_v5 = vrot.slane %v7375_v58, %v9832_v47  ;;  %v7632_v42 = vrot.slane %v7376_v36, %v9832_v47 }
 0x2fd   : > { %v7883_v56 = vcombine.low %v7604_v17, %v7608_v38  ;;  %v7884_v60 = vcombine.low %v7612_v53, %v7616_v2  ;;  %v8080_v25 = vcombine.high %v11316_v28, %v11316_v28  ;;  %v8423_v37 = vrot.slane %v11316_v28, %v9828_v44 }
 0x2fe   : > { %v8902_v8 = vcombine.low %v8894_v14, %v8901_v19  ;;  %v9261_v22 = vadd.f32 %v9197_v40, %v9133_v49  ;;  %v7620_v0 = vrot.slane %v7367_v1, %v9832_v47  ;;  %v7901_v31 = vcombine.low %v7628_v5, %v7632_v42 }
 0x2ff   : > { %v7898_v45 = vrot.slane %v7884_v60, %v9834_v48  ;;  %v8447_v51 = vrot.slane %v8080_v25, %v9828_v44  ;;  %v8424_v11 = vcombine.high %v8423_v37, %v8423_v37  ;;  %v8431_v3 = vrot.slane %v8423_v37, %v9828_v44 }
 0x300   : > { %v9064_v59 = vsel %vm8724_vm10, %v8902_v8, %v7976_v33  ;;  %9326 = vst.msk [vmem:[%s9973_s25 + $0x148] sm:$0xff] %vm9284_vm4, %v9261_v22  ;;  %v7891_v28 = vrot.slane %v7883_v56, %v9834_v48  ;;  %v7900_v55 = vcombine.low %v7620_v0, %v7624_v21  ;;  %v7915_v33 = vrot.slane %v7901_v31, %v9834_v48  ;;  %v9217_v31 = vld [vmem:[%s9933_s20 + $0x1e8] sm:$0xff] }
 0x301   : > { %v9135_v27 = vadd.f32 %v11724_v29, %v9064_v59  ;;  %v8448_v13 = vcombine.high %v8447_v51, %v8447_v51  ;;  %v8438_v24 = vrot.slane %v8424_v11, %v9828_v44  ;;  %v8439_v43 = vcombine.high %v8431_v3, %v8431_v3 }
 0x302   : > { %v8455_v57 = vrot.slane %v8447_v51, %v9828_v44  ;;  %v7899_v23 = vcombine.low %v7891_v28, %v7898_v45  ;;  %v8692_v62 = vrot.slane %v8431_v3, %v9832_v47  ;;  %v7908_v63 = vrot.slane %v7900_v55, %v9834_v48 }
 0x303   : > { %v9263_v35 = vadd.f32 %v9199_v41, %v9135_v27  ;;  %v8462_v16 = vrot.slane %v8448_v13, %v9828_v44  ;;  %v8440_v10 = vcombine.high %v8438_v24, %v8438_v24  ;;  %v8696_v54 = vrot.slane %v8438_v24, %v9832_v47 }
 0x304   : > { %v8463_v4 = vcombine.high %v8455_v57, %v8455_v57  ;;  %v8708_v61 = vrot.slane %v8455_v57, %v9832_v47  ;;  %v8700_v30 = vrot.slane %v8439_v43, %v9832_v47  ;;  %v6990_v20 = vcombine.high %v11357_v9, %v11357_v9 }
 0x305   : > { %9328 = vst.msk [vmem:[%s9973_s25 + $0x158] sm:$0xff] %vm9284_vm4, %v9263_v35  ;;  %v8464_v15 = vcombine.high %v8462_v16, %v8462_v16  ;;  %v8712_v18 = vrot.slane %v8462_v16, %v9832_v47  ;;  %v8704_v1 = vrot.slane %v8440_v10, %v9832_v47  ;;  %v8971_v50 = vcombine.low %v8692_v62, %v8696_v54 }
 0x306   : > { %v8716_v34 = vrot.slane %v8463_v4, %v9832_v47  ;;  %v7239_v32 = vrot.slane %v11357_v9, %v9828_v44  ;;  %v7916_v6 = vcombine.low %v7908_v63, %v7915_v33  ;;  %v7994_v58 = vsel %vm7636_vm9, %v7899_v23, 0.0 }
 0x307   : > { %v8720_v7 = vrot.slane %v8464_v15, %v9832_v47  ;;  %v8988_v26 = vcombine.low %v8708_v61, %v8712_v18  ;;  %v8972_v52 = vcombine.low %v8700_v30, %v8704_v1  ;;  %v7263_v14 = vrot.slane %v6990_v20, %v9828_v44 }
 0x308   : > { %v7240_v38 = vcombine.high %v7239_v32, %v7239_v32  ;;  %v7247_v46 = vrot.slane %v7239_v32, %v9828_v44  ;;  %v8327_v40 = vrot.slane %v11379_v39, %v9828_v44  ;;  %v8979_v36 = vrot.slane %v8971_v50, %v9834_v48 }
 0x309   : > { %v8989_v17 = vcombine.low %v8716_v34, %v8720_v7  ;;  %v8986_v53 = vrot.slane %v8972_v52, %v9834_v48  ;;  %v7264_v9 = vcombine.high %v7263_v14, %v7263_v14  ;;  %v7271_v2 = vrot.slane %v7263_v14, %v9828_v44 }
 0x30a   : > { %v8996_v19 = vrot.slane %v8988_v26, %v9834_v48  ;;  %v7254_v21 = vrot.slane %v7240_v38, %v9828_v44  ;;  %v7255_v5 = vcombine.high %v7247_v46, %v7247_v46  ;;  %v7996_v42 = vsel %vm7636_vm9, %v7916_v6, 0.0 }
 0x30b   : > { %v9003_v49 = vrot.slane %v8989_v17, %v9834_v48  ;;  %v8987_v56 = vcombine.low %v8979_v36, %v8986_v53  ;;  %v7278_v60 = vrot.slane %v7264_v9, %v9828_v44  ;;  %v8078_v25 = vcombine.high %v11379_v39, %v11379_v39  ;;  %v9219_v39 = vld [vmem:[%s9933_s20 + $0x1f8] sm:$0xff] }
 0x30c   : > { %v7256_v22 = vcombine.high %v7254_v21, %v7254_v21  ;;  %v7544_v37 = vrot.slane %v7254_v21, %v9832_v47  ;;  %v8328_v0 = vcombine.high %v8327_v40, %v8327_v40  ;;  %v7279_v51 = vcombine.high %v7271_v2, %v7271_v2 }
 0x30d   : > { %v9004_v8 = vcombine.low %v8996_v19, %v9003_v49  ;;  %v9082_v45 = vsel %vm8724_vm10, %v8987_v56, %v7994_v58  ;;  %v7280_v59 = vcombine.high %v7278_v60, %v7278_v60  ;;  %v7540_v41 = vrot.slane %v7247_v46, %v9832_v47 }
 0x30e   : > { %v9153_v3 = vadd.f32 %v11724_v29, %v9082_v45  ;;  %v7548_v27 = vrot.slane %v7255_v5, %v9832_v47  ;;  %v7552_v28 = vrot.slane %v7256_v22, %v9832_v47  ;;  %v8335_v24 = vrot.slane %v8327_v40, %v9828_v44 }
 0x30f   : > { %v9084_v11 = vsel %vm8724_vm10, %v9004_v8, %v7996_v42  ;;  %v7568_v13 = vrot.slane %v7280_v59, %v9832_v47  ;;  %v7815_v57 = vcombine.low %v7540_v41, %v7544_v37  ;;  %v8342_v23 = vrot.slane %v8328_v0, %v9828_v44 }
 0x310   : > { %v9155_v55 = vadd.f32 %v11724_v29, %v9084_v11  ;;  %v9281_v43 = vadd.f32 %v9217_v31, %v9153_v3  ;;  %v7816_v35 = vcombine.low %v7548_v27, %v7552_v28  ;;  %v7560_v16 = vrot.slane %v7278_v60, %v9832_v47  ;;  %v9201_v60 = vld [vmem:[%s9933_s20 + $0x168] sm:$0xff]  ;;  %v9203_v31 = vld [vmem:[%s9933_s20 + $0x178] sm:$0xff] }
 0x311   : > { %v7564_v10 = vrot.slane %v7279_v51, %v9832_v47  ;;  %v8343_v4 = vcombine.high %v8335_v24, %v8335_v24  ;;  %v8344_v54 = vcombine.high %v8342_v23, %v8342_v23  ;;  %v8351_v63 = vrot.slane %v8078_v25, %v9828_v44 }
 0x312   : > { %v9283_v33 = vadd.f32 %v9219_v39, %v9155_v55  ;;  %9346 = vst.msk [vmem:[%s9973_s25 + $0x1e8] sm:$0xff] %vm9284_vm4, %v9281_v43  ;;  %v7830_v62 = vrot.slane %v7816_v35, %v9834_v48  ;;  %v7556_v15 = vrot.slane %v7271_v2, %v9832_v47  ;;  %v8628_v18 = vrot.slane %v8335_v24, %v9832_v47 }
 0x313   : > { %v7833_v61 = vcombine.low %v7564_v10, %v7568_v13  ;;  %v8632_v30 = vrot.slane %v8342_v23, %v9832_v47  ;;  %v7823_v1 = vrot.slane %v7815_v57, %v9834_v48  ;;  %v8352_v50 = vcombine.high %v8351_v63, %v8351_v63 }
 0x314   : > { %9348 = vst.msk [vmem:[%s9973_s25 + $0x1f8] sm:$0xff] %vm9284_vm4, %v9283_v33  ;;  %v8359_v20 = vrot.slane %v8351_v63, %v9828_v44  ;;  %v8640_v34 = vrot.slane %v8344_v54, %v9832_v47  ;;  %v7832_v7 = vcombine.low %v7556_v15, %v7560_v16  ;;  %v8636_v26 = vrot.slane %v8343_v4, %v9832_v47 }
 0x315   : > { %v8903_v32 = vcombine.low %v8628_v18, %v8632_v30  ;;  %v7831_v6 = vcombine.low %v7823_v1, %v7830_v62  ;;  %v8366_v58 = vrot.slane %v8352_v50, %v9828_v44  ;;  %v7847_v14 = vrot.slane %v7833_v61, %v9834_v48 }
 0x316   : > { %v8367_v52 = vcombine.high %v8359_v20, %v8359_v20  ;;  %v8904_v17 = vcombine.low %v8636_v26, %v8640_v34  ;;  %v8644_v46 = vrot.slane %v8359_v20, %v9832_v47  ;;  %v7840_v36 = vrot.slane %v7832_v7, %v9834_v48 }
 0x317   : > { %v8368_v38 = vcombine.high %v8366_v58, %v8366_v58  ;;  %v8648_v40 = vrot.slane %v8366_v58, %v9832_v47  ;;  %v8911_v53 = vrot.slane %v8903_v32, %v9834_v48  ;;  %v7978_v2 = vsel %vm7636_vm9, %v7831_v6, 0.0 }
 0x318   : > { %v8918_v9 = vrot.slane %v8904_v17, %v9834_v48  ;;  %v8652_v44 = vrot.slane %v8367_v52, %v9832_v47  ;;  %v7848_v21 = vcombine.low %v7840_v36, %v7847_v14 }
 0x319   : > { %v8656_v19 = vrot.slane %v8368_v38, %v9832_v47  ;;  %v8920_v49 = vcombine.low %v8644_v46, %v8648_v40 }
 0x31a   : > { %v8919_v5 = vcombine.low %v8911_v53, %v8918_v9  ;;  %v7980_v37 = vsel %vm7636_vm9, %v7848_v21, 0.0 }
 0x31b   : > { %v8921_v42 = vcombine.low %v8652_v44, %v8656_v19  ;;  %v8928_v25 = vrot.slane %v8920_v49, %v9834_v48 }
 0x31c   : > { %v9066_v56 = vsel %vm8724_vm10, %v8919_v5, %v7978_v2 }
 0x31d   : > { %v8935_v8 = vrot.slane %v8921_v42, %v9834_v48  ;;  %v9137_v22 = vadd.f32 %v11724_v29, %v9066_v56 }
 0x31f   : > { %v8936_v0 = vcombine.low %v8928_v25, %v8935_v8  ;;  %v9265_v47 = vadd.f32 %v9201_v60, %v9137_v22 }
 0x321   : > { %v9068_v45 = vsel %vm8724_vm10, %v8936_v0, %v7980_v37  ;;  %9330 = vst.msk [vmem:[%s9973_s25 + $0x168] sm:$0xff] %vm9284_vm4, %v9265_v47 }
 0x322   : > { %v9139_v51 = vadd.f32 %v11724_v29, %v9068_v45 }
 0x324   : > { %v9267_v59 = vadd.f32 %v9203_v31, %v9139_v51 }
 0x326   : > { %9332 = vst.msk [vmem:[%s9973_s25 + $0x178] sm:$0xff] %vm9284_vm4, %v9267_v59 }
 0x327 PF: > { %s14_s17 = sadd.s32 1, %s9703_s17   ;;  %s11902_s15 = smov %s9699_s16 }
 0x328   : > { %p11_p5 = scmp.ge.s32.totalorder %s14_s17, 4   ;;  %s11903_s16 = smov %s11905_s18 }
 0x32a   :  { %13 = sbr.rel (!%p11_p5) target bundleno = 2 (0x2), region = 69 }

</bundles_post_ra>
